<compile_context>
chip_gen: v6e
topology: v6e:2x2x1
jax: 0.10.0
libtpu: 0.0.40
codegen_flags: <defaults>
</compile_context>

<pallas_src>
import functools

import jax
import jax.numpy as jnp
from jax import lax
from jax.experimental import pallas as pl
from jax.experimental.pallas import tpu as pltpu

_LANE = 128
_SUBLANE = 8
_CHUNK_ROWS = 512                # rows per in-kernel accumulation chunk
_DEFAULT_TILE_ROWS = 4096        # 4096 x 128 f32 = 2 MiB per input per buffer
_SMALL_FALLBACK_ELEMS = 128 * 1024


def _round_up(x, m):
    return ((x + m - 1) // m) * m


def _d_loss_kernel(gen_ref, cart_ref, out_ref, *,
                   tile_r, chunk_r, tiles_per_split,
                   rows_gen, rows_cart,
                   mask_start_gen, mask_start_cart):
    h = pl.program_id(0)          # parallel split (megacore shard)
    i = pl.program_id(1)          # reduction step within the split
    t = h * tiles_per_split + i   # global row-tile index

    @pl.when(i == 0)
    def _init():
        out_ref[...] = jnp.zeros_like(out_ref)

    nchunks = tile_r // chunk_r

    def tile_partial(ref, rows, masked):
        """(8,128) f32 partial sum of the current (tile_r,128) tile."""

        def chunk_sum(start_rows, x):
            x = x.astype(jnp.float32)
            if masked:
                grow = (t * tile_r + start_rows
                        + lax.broadcasted_iota(jnp.int32, x.shape, 0))
                x = jnp.where(grow < rows, x, 0.0)
            return x.reshape(-1, _SUBLANE, _LANE).sum(axis=0)

        if nchunks == 1:
            return chunk_sum(0, ref[...])

        def body(c, acc):
            start = pl.multiple_of(c * chunk_r, chunk_r)
            return acc + chunk_sum(start, ref[pl.ds(start, chunk_r), :])

        return lax.fori_loop(0, nchunks, body,
                             jnp.zeros((_SUBLANE, _LANE), jnp.float32),
                             unroll=True)

    def accumulate(ref, idx, rows, mask_start):
        if mask_start is None:
            # No tile of this input ever needs masking: pure load+cast+add.
            out_ref[0, idx] += tile_partial(ref, rows, masked=False)
            return

        @pl.when(t < mask_start)
        def _plain():
            out_ref[0, idx] += tile_partial(ref, rows, masked=False)

        @pl.when(t >= mask_start)
        def _masked():
            out_ref[0, idx] += tile_partial(ref, rows, masked=True)

    accumulate(gen_ref, 0, rows_gen, mask_start_gen)
    accumulate(cart_ref, 1, rows_cart, mask_start_cart)


def _as_rows128(x):
    """(rows,128) lane-dense slab + optional <128-element tail (no full pad)."""
    flat = x.reshape(-1)
    n = flat.shape[0]
    main = (n // _LANE) * _LANE
    if main == n:
        return flat.reshape(n // _LANE, _LANE), None
    slab = flat[:main].reshape(main // _LANE, _LANE)
    tail = flat[main:]
    return slab, tail


def _default_num_splits():
    # Shard the parallel grid axis only on chips with 2 TensorCores (v7x);
    # on single-TC v5e/v6e the "parallel" axis is a serial loop -> splits=1.
    try:
        kind = jax.devices()[0].device_kind.lower()
    except Exception:
        return 1
    return 2 if "v7" in kind else 1


def discriminator_loss(d_out_for_generated, d_out_for_cartoon, *,
                       tile_rows=_DEFAULT_TILE_ROWS, num_splits=None):
    """Pallas implementation of newDiscriminatorLoss.forward (loss only)."""
    n_gen = d_out_for_generated.size
    n_cart = d_out_for_cartoon.size

    # Small-input fast path: a fused XLA reduction beats the pallas_call
    # launch + pipeline prologue for a few KB of data.
    if (n_gen + n_cart <= _SMALL_FALLBACK_ELEMS
            or n_gen < _LANE or n_cart < _LANE):
        return (jnp.mean(d_out_for_generated, dtype=jnp.float32)
                - jnp.mean(d_out_for_cartoon, dtype=jnp.float32))

    gen2d, tail_gen = _as_rows128(d_out_for_generated)
    cart2d, tail_cart = _as_rows128(d_out_for_cartoon)
    rows_gen, rows_cart = gen2d.shape[0], cart2d.shape[0]
    max_rows = max(rows_gen, rows_cart)

    # Tile rows: respect packed sublane tiles ((8,128) f32, (16,128) bf16,
    # (32,128) int8/fp8) and make tile_r a multiple of the in-kernel chunk.
    def row_mult(dt):
        return _SUBLANE * max(1, 4 // jnp.dtype(dt).itemsize)
    min_mult = max(row_mult(gen2d.dtype), row_mult(cart2d.dtype))

    tile_r = min(_round_up(tile_rows, min_mult), _round_up(max_rows, min_mult))
    chunk_r = min(_CHUNK_ROWS, tile_r)
    tile_r = _round_up(tile_r, chunk_r)

    tiles_gen = pl.cdiv(rows_gen, tile_r)
    tiles_cart = pl.cdiv(rows_cart, tile_r)
    max_tiles = max(tiles_gen, tiles_cart)

    if num_splits is None:
        num_splits = _default_num_splits()
    splits = num_splits if max_tiles >= num_splits else 1
    tiles_per_split = pl.cdiv(max_tiles, splits)
    grid_tiles = splits * tiles_per_split

    def make_in_map(tiles_x):
        if grid_tiles > tiles_x:
            last = tiles_x - 1
            return lambda h, i: (jnp.minimum(h * tiles_per_split + i, last), 0)
        return lambda h, i: (h * tiles_per_split + i, 0)

    def mask_start_of(rows_x, tiles_x):
        # First global tile index that needs the ragged / out-of-range row
        # mask; None => mask code is never emitted for this input.
        start = tiles_x - 1 if rows_x % tile_r else tiles_x
        return start if start < grid_tiles else None

    kernel = functools.partial(
        _d_loss_kernel,
        tile_r=tile_r, chunk_r=chunk_r, tiles_per_split=tiles_per_split,
        rows_gen=rows_gen, rows_cart=rows_cart,
        mask_start_gen=mask_start_of(rows_gen, tiles_gen),
        mask_start_cart=mask_start_of(rows_cart, tiles_cart))

    bytes_accessed = (gen2d.size * gen2d.dtype.itemsize
                      + cart2d.size * cart2d.dtype.itemsize
                      + splits * 2 * _SUBLANE * _LANE * 4)
    cost = pl.CostEstimate(flops=gen2d.size + cart2d.size,
                           transcendentals=0,
                           bytes_accessed=bytes_accessed)

    partials = pl.pallas_call(
        kernel,
        out_shape=jax.ShapeDtypeStruct((splits, 2, _SUBLANE, _LANE),
                                       jnp.float32),
        grid_spec=pltpu.PrefetchScalarGridSpec(
            num_scalar_prefetch=0,
            grid=(splits, tiles_per_split),
            in_specs=[
                pl.BlockSpec((tile_r, _LANE), make_in_map(tiles_gen)),
                pl.BlockSpec((tile_r, _LANE), make_in_map(tiles_cart)),
            ],
            out_specs=pl.BlockSpec((1, 2, _SUBLANE, _LANE),
                                   lambda h, i: (h, 0, 0, 0)),
        ),
        compiler_params=pltpu.CompilerParams(
            dimension_semantics=("parallel", "arbitrary")),
        cost_estimate=cost,
    )(gen2d, cart2d)

    sum_gen = jnp.sum(partials[:, 0])
    sum_cart = jnp.sum(partials[:, 1])
    if tail_gen is not None:
        sum_gen = sum_gen + jnp.sum(tail_gen.astype(jnp.float32))
    if tail_cart is not None:
        sum_cart = sum_cart + jnp.sum(tail_cart.astype(jnp.float32))

    # d_loss = -mean(D_out_for_cartoon) + mean(D_out_for_generated)
    return sum_gen * (1.0 / n_gen) - sum_cart * (1.0 / n_cart)


if __name__ == "__main__":
    key = jax.random.PRNGKey(0)
    k1, k2, k3, k4, k5, k6, k7, k8 = jax.random.split(key, 8)

    def check(name, gen, cart, atol=1e-5):
        out = jax.block_until_ready(discriminator_loss(gen, cart))
        ref = (jnp.mean(gen.astype(jnp.float32))
               - jnp.mean(cart.astype(jnp.float32)))
        assert jnp.allclose(out, ref, atol=atol, rtol=1e-5), (name, out, ref)

    # 1) Typical small patch-GAN discriminator outputs (fast path).
    check("small",
          jax.random.normal(k1, (2, 4, 16, 16), jnp.float32),
          jax.random.normal(k2, (2, 4, 16, 16), jnp.float32))

    # 2) Large f32 inputs: multi-tile pipelined reduction path (no masking).
    check("large_f32",
          jax.random.normal(k3, (8, 3, 256, 256), jnp.float32),
          jax.random.normal(k4, (8, 3, 256, 256), jnp.float32))

    # 3) bf16 inputs: exercises packed-sublane tile rounding + f32 accumulate.
    check("bf16",
          jax.random.normal(k5, (4, 3, 128, 128), jnp.bfloat16),
          jax.random.normal(k6, (4, 3, 128, 128), jnp.bfloat16),
          atol=1e-4)

    # 4) Ragged sizes (numel % 128 != 0), different per input: exercises the
    #    gated in-kernel row mask and the wrapper-side tail handling.
    check("ragged",
          jax.random.normal(k7, (3, 7, 129, 129), jnp.float32),
          jax.random.normal(k8, (5, 7, 33, 35), jnp.float32))

    # TODO(synk): tb_writer.add_scalar('d_loss', ...) is host-side TensorBoard
    # logging with no Pallas equivalent; current_epoch is only used for that.
    print("KERNEL_OK")
</pallas_src>

<mosaic_0001>
module attributes {stable_mosaic.version = 11 : i64} {
  func.func @_d_loss_kernel(%arg0: i32, %arg1: i32, %arg2: memref<4096x128xf32, #tpu.memory_space<vmem>>, %arg3: memref<4096x128xf32, #tpu.memory_space<vmem>>, %arg4: memref<1x2x8x128xf32, #tpu.memory_space<vmem>>) attributes {dimension_semantics = [#tpu.dimension_semantics<parallel>, #tpu.dimension_semantics<arbitrary>], iteration_bounds = array<i64: 1, 3>, scalar_prefetch = 0 : i64, scratch_operands = 0 : i64, tpu.core_type = #tpu.core_type<tc>, window_params = [{transform_indices = @transform_0, window_bounds = array<i64: 4096, 128>}, {transform_indices = @transform_1, window_bounds = array<i64: 4096, 128>}, {transform_indices = @transform_2, window_bounds = array<i64: 1, 2, 8, 128>}]} {
    %c0_i32 = arith.constant 0 : i32
    %0 = arith.cmpi eq, %arg1, %c0_i32 : i32
    %1 = arith.extui %0 : i1 to i32
    %c0_i32_0 = arith.constant 0 : i32
    %2 = arith.cmpi ne, %1, %c0_i32_0 : i32
    scf.if %2 {
      %cst_73 = arith.constant 0.000000e+00 : f32
      %129 = vector.broadcast %cst_73 : f32 to vector<1x2x8x128xf32>
      %c0_74 = arith.constant 0 : index
      %c0_75 = arith.constant 0 : index
      %c0_76 = arith.constant 0 : index
      %c0_77 = arith.constant 0 : index
      %130 = vector.load %arg4[%c0_74, %c0_75, %c0_76, %c0_77] : memref<1x2x8x128xf32, #tpu.memory_space<vmem>>, vector<1x2x8x128xf32>
      tpu.vector_store %arg4[%c0_74, %c0_75, %c0_76, %c0_77], %129 {strides = array<i32>} : memref<1x2x8x128xf32, #tpu.memory_space<vmem>>, vector<1x2x8x128xf32>,
    } else {
    }
    %c0 = arith.constant 0 : index
    %c0_1 = arith.constant 0 : index
    %c0_2 = arith.constant 0 : index
    %c0_3 = arith.constant 0 : index
    %3 = vector.load %arg4[%c0, %c0_1, %c0_2, %c0_3] : memref<1x2x8x128xf32, #tpu.memory_space<vmem>>, vector<1x1x8x128xf32>
    %4 = vector.shape_cast %3 : vector<1x1x8x128xf32> to vector<8x128xf32>
    %cst = arith.constant 0.000000e+00 : f32
    %5 = vector.broadcast %cst : f32 to vector<8x128xf32>
    %c0_i32_4 = arith.constant 0 : i32
    %c512_i32 = arith.constant 512 : i32
    %6 = arith.muli %c0_i32_4, %c512_i32 : i32
    %7 = tpu.assume_multiple %6, 512 : i32
    %8 = arith.index_cast %7 : i32 to index
    %c0_5 = arith.constant 0 : index
    %9 = vector.load %arg2[%8, %c0_5] : memref<4096x128xf32, #tpu.memory_space<vmem>>, vector<512x128xf32>
    %10 = vector.shape_cast %9 : vector<512x128xf32> to vector<64x8x128xf32>
    %cst_6 = arith.constant dense<0.000000e+00> : vector<8x128xf32>
    %11 = vector.multi_reduction <add>, %10, %cst_6 [0] : vector<64x8x128xf32> to vector<8x128xf32>
    %12 = arith.addf %5, %11 : vector<8x128xf32>
    %c1_i32 = arith.constant 1 : i32
    %c512_i32_7 = arith.constant 512 : i32
    %13 = arith.muli %c1_i32, %c512_i32_7 : i32
    %14 = tpu.assume_multiple %13, 512 : i32
    %15 = arith.index_cast %14 : i32 to index
    %c0_8 = arith.constant 0 : index
    %16 = vector.load %arg2[%15, %c0_8] : memref<4096x128xf32, #tpu.memory_space<vmem>>, vector<512x128xf32>
    %17 = vector.shape_cast %16 : vector<512x128xf32> to vector<64x8x128xf32>
    %cst_9 = arith.constant dense<0.000000e+00> : vector<8x128xf32>
    %18 = vector.multi_reduction <add>, %17, %cst_9 [0] : vector<64x8x128xf32> to vector<8x128xf32>
    %19 = arith.addf %12, %18 : vector<8x128xf32>
    %c2_i32 = arith.constant 2 : i32
    %c512_i32_10 = arith.constant 512 : i32
    %20 = arith.muli %c2_i32, %c512_i32_10 : i32
    %21 = tpu.assume_multiple %20, 512 : i32
    %22 = arith.index_cast %21 : i32 to index
    %c0_11 = arith.constant 0 : index
    %23 = vector.load %arg2[%22, %c0_11] : memref<4096x128xf32, #tpu.memory_space<vmem>>, vector<512x128xf32>
    %24 = vector.shape_cast %23 : vector<512x128xf32> to vector<64x8x128xf32>
    %cst_12 = arith.constant dense<0.000000e+00> : vector<8x128xf32>
    %25 = vector.multi_reduction <add>, %24, %cst_12 [0] : vector<64x8x128xf32> to vector<8x128xf32>
    %26 = arith.addf %19, %25 : vector<8x128xf32>
    %c3_i32 = arith.constant 3 : i32
    %c512_i32_13 = arith.constant 512 : i32
    %27 = arith.muli %c3_i32, %c512_i32_13 : i32
    %28 = tpu.assume_multiple %27, 512 : i32
    %29 = arith.index_cast %28 : i32 to index
    %c0_14 = arith.constant 0 : index
    %30 = vector.load %arg2[%29, %c0_14] : memref<4096x128xf32, #tpu.memory_space<vmem>>, vector<512x128xf32>
    %31 = vector.shape_cast %30 : vector<512x128xf32> to vector<64x8x128xf32>
    %cst_15 = arith.constant dense<0.000000e+00> : vector<8x128xf32>
    %32 = vector.multi_reduction <add>, %31, %cst_15 [0] : vector<64x8x128xf32> to vector<8x128xf32>
    %33 = arith.addf %26, %32 : vector<8x128xf32>
    %c4_i32 = arith.constant 4 : i32
    %c512_i32_16 = arith.constant 512 : i32
    %34 = arith.muli %c4_i32, %c512_i32_16 : i32
    %35 = tpu.assume_multiple %34, 512 : i32
    %36 = arith.index_cast %35 : i32 to index
    %c0_17 = arith.constant 0 : index
    %37 = vector.load %arg2[%36, %c0_17] : memref<4096x128xf32, #tpu.memory_space<vmem>>, vector<512x128xf32>
    %38 = vector.shape_cast %37 : vector<512x128xf32> to vector<64x8x128xf32>
    %cst_18 = arith.constant dense<0.000000e+00> : vector<8x128xf32>
    %39 = vector.multi_reduction <add>, %38, %cst_18 [0] : vector<64x8x128xf32> to vector<8x128xf32>
    %40 = arith.addf %33, %39 : vector<8x128xf32>
    %c5_i32 = arith.constant 5 : i32
    %c512_i32_19 = arith.constant 512 : i32
    %41 = arith.muli %c5_i32, %c512_i32_19 : i32
    %42 = tpu.assume_multiple %41, 512 : i32
    %43 = arith.index_cast %42 : i32 to index
    %c0_20 = arith.constant 0 : index
    %44 = vector.load %arg2[%43, %c0_20] : memref<4096x128xf32, #tpu.memory_space<vmem>>, vector<512x128xf32>
    %45 = vector.shape_cast %44 : vector<512x128xf32> to vector<64x8x128xf32>
    %cst_21 = arith.constant dense<0.000000e+00> : vector<8x128xf32>
    %46 = vector.multi_reduction <add>, %45, %cst_21 [0] : vector<64x8x128xf32> to vector<8x128xf32>
    %47 = arith.addf %40, %46 : vector<8x128xf32>
    %c6_i32 = arith.constant 6 : i32
    %c512_i32_22 = arith.constant 512 : i32
    %48 = arith.muli %c6_i32, %c512_i32_22 : i32
    %49 = tpu.assume_multiple %48, 512 : i32
    %50 = arith.index_cast %49 : i32 to index
    %c0_23 = arith.constant 0 : index
    %51 = vector.load %arg2[%50, %c0_23] : memref<4096x128xf32, #tpu.memory_space<vmem>>, vector<512x128xf32>
    %52 = vector.shape_cast %51 : vector<512x128xf32> to vector<64x8x128xf32>
    %cst_24 = arith.constant dense<0.000000e+00> : vector<8x128xf32>
    %53 = vector.multi_reduction <add>, %52, %cst_24 [0] : vector<64x8x128xf32> to vector<8x128xf32>
    %54 = arith.addf %47, %53 : vector<8x128xf32>
    %c7_i32 = arith.constant 7 : i32
    %c512_i32_25 = arith.constant 512 : i32
    %55 = arith.muli %c7_i32, %c512_i32_25 : i32
    %56 = tpu.assume_multiple %55, 512 : i32
    %57 = arith.index_cast %56 : i32 to index
    %c0_26 = arith.constant 0 : index
    %58 = vector.load %arg2[%57, %c0_26] : memref<4096x128xf32, #tpu.memory_space<vmem>>, vector<512x128xf32>
    %59 = vector.shape_cast %58 : vector<512x128xf32> to vector<64x8x128xf32>
    %cst_27 = arith.constant dense<0.000000e+00> : vector<8x128xf32>
    %60 = vector.multi_reduction <add>, %59, %cst_27 [0] : vector<64x8x128xf32> to vector<8x128xf32>
    %61 = arith.addf %54, %60 : vector<8x128xf32>
    %c8_i32 = arith.constant 8 : i32
    %62 = arith.addf %4, %61 : vector<8x128xf32>
    %c0_28 = arith.constant 0 : index
    %c0_29 = arith.constant 0 : index
    %c0_30 = arith.constant 0 : index
    %c0_31 = arith.constant 0 : index
    %63 = vector.load %arg4[%c0_28, %c0_29, %c0_30, %c0_31] : memref<1x2x8x128xf32, #tpu.memory_space<vmem>>, vector<1x1x8x128xf32>
    %64 = vector.shape_cast %63 : vector<1x1x8x128xf32> to vector<8x128xf32>
    %65 = vector.shape_cast %62 : vector<8x128xf32> to vector<1x1x8x128xf32>
    tpu.vector_store %arg4[%c0_28, %c0_29, %c0_30, %c0_31], %65 {strides = array<i32>} : memref<1x2x8x128xf32, #tpu.memory_space<vmem>>, vector<1x1x8x128xf32>,
    %c0_32 = arith.constant 0 : index
    %c1 = arith.constant 1 : index
    %c0_33 = arith.constant 0 : index
    %c0_34 = arith.constant 0 : index
    %66 = vector.load %arg4[%c0_32, %c1, %c0_33, %c0_34] : memref<1x2x8x128xf32, #tpu.memory_space<vmem>>, vector<1x1x8x128xf32>
    %67 = vector.shape_cast %66 : vector<1x1x8x128xf32> to vector<8x128xf32>
    %cst_35 = arith.constant 0.000000e+00 : f32
    %68 = vector.broadcast %cst_35 : f32 to vector<8x128xf32>
    %c0_i32_36 = arith.constant 0 : i32
    %c512_i32_37 = arith.constant 512 : i32
    %69 = arith.muli %c0_i32_36, %c512_i32_37 : i32
    %70 = tpu.assume_multiple %69, 512 : i32
    %71 = arith.index_cast %70 : i32 to index
    %c0_38 = arith.constant 0 : index
    %72 = vector.load %arg3[%71, %c0_38] : memref<4096x128xf32, #tpu.memory_space<vmem>>, vector<512x128xf32>
    %73 = vector.shape_cast %72 : vector<512x128xf32> to vector<64x8x128xf32>
    %cst_39 = arith.constant dense<0.000000e+00> : vector<8x128xf32>
    %74 = vector.multi_reduction <add>, %73, %cst_39 [0] : vector<64x8x128xf32> to vector<8x128xf32>
    %75 = arith.addf %68, %74 : vector<8x128xf32>
    %c1_i32_40 = arith.constant 1 : i32
    %c512_i32_41 = arith.constant 512 : i32
    %76 = arith.muli %c1_i32_40, %c512_i32_41 : i32
    %77 = tpu.assume_multiple %76, 512 : i32
    %78 = arith.index_cast %77 : i32 to index
    %c0_42 = arith.constant 0 : index
    %79 = vector.load %arg3[%78, %c0_42] : memref<4096x128xf32, #tpu.memory_space<vmem>>, vector<512x128xf32>
    %80 = vector.shape_cast %79 : vector<512x128xf32> to vector<64x8x128xf32>
    %cst_43 = arith.constant dense<0.000000e+00> : vector<8x128xf32>
    %81 = vector.multi_reduction <add>, %80, %cst_43 [0] : vector<64x8x128xf32> to vector<8x128xf32>
    %82 = arith.addf %75, %81 : vector<8x128xf32>
    %c2_i32_44 = arith.constant 2 : i32
    %c512_i32_45 = arith.constant 512 : i32
    %83 = arith.muli %c2_i32_44, %c512_i32_45 : i32
    %84 = tpu.assume_multiple %83, 512 : i32
    %85 = arith.index_cast %84 : i32 to index
    %c0_46 = arith.constant 0 : index
    %86 = vector.load %arg3[%85, %c0_46] : memref<4096x128xf32, #tpu.memory_space<vmem>>, vector<512x128xf32>
    %87 = vector.shape_cast %86 : vector<512x128xf32> to vector<64x8x128xf32>
    %cst_47 = arith.constant dense<0.000000e+00> : vector<8x128xf32>
    %88 = vector.multi_reduction <add>, %87, %cst_47 [0] : vector<64x8x128xf32> to vector<8x128xf32>
    %89 = arith.addf %82, %88 : vector<8x128xf32>
    %c3_i32_48 = arith.constant 3 : i32
    %c512_i32_49 = arith.constant 512 : i32
    %90 = arith.muli %c3_i32_48, %c512_i32_49 : i32
    %91 = tpu.assume_multiple %90, 512 : i32
    %92 = arith.index_cast %91 : i32 to index
    %c0_50 = arith.constant 0 : index
    %93 = vector.load %arg3[%92, %c0_50] : memref<4096x128xf32, #tpu.memory_space<vmem>>, vector<512x128xf32>
    %94 = vector.shape_cast %93 : vector<512x128xf32> to vector<64x8x128xf32>
    %cst_51 = arith.constant dense<0.000000e+00> : vector<8x128xf32>
    %95 = vector.multi_reduction <add>, %94, %cst_51 [0] : vector<64x8x128xf32> to vector<8x128xf32>
    %96 = arith.addf %89, %95 : vector<8x128xf32>
    %c4_i32_52 = arith.constant 4 : i32
    %c512_i32_53 = arith.constant 512 : i32
    %97 = arith.muli %c4_i32_52, %c512_i32_53 : i32
    %98 = tpu.assume_multiple %97, 512 : i32
    %99 = arith.index_cast %98 : i32 to index
    %c0_54 = arith.constant 0 : index
    %100 = vector.load %arg3[%99, %c0_54] : memref<4096x128xf32, #tpu.memory_space<vmem>>, vector<512x128xf32>
    %101 = vector.shape_cast %100 : vector<512x128xf32> to vector<64x8x128xf32>
    %cst_55 = arith.constant dense<0.000000e+00> : vector<8x128xf32>
    %102 = vector.multi_reduction <add>, %101, %cst_55 [0] : vector<64x8x128xf32> to vector<8x128xf32>
    %103 = arith.addf %96, %102 : vector<8x128xf32>
    %c5_i32_56 = arith.constant 5 : i32
    %c512_i32_57 = arith.constant 512 : i32
    %104 = arith.muli %c5_i32_56, %c512_i32_57 : i32
    %105 = tpu.assume_multiple %104, 512 : i32
    %106 = arith.index_cast %105 : i32 to index
    %c0_58 = arith.constant 0 : index
    %107 = vector.load %arg3[%106, %c0_58] : memref<4096x128xf32, #tpu.memory_space<vmem>>, vector<512x128xf32>
    %108 = vector.shape_cast %107 : vector<512x128xf32> to vector<64x8x128xf32>
    %cst_59 = arith.constant dense<0.000000e+00> : vector<8x128xf32>
    %109 = vector.multi_reduction <add>, %108, %cst_59 [0] : vector<64x8x128xf32> to vector<8x128xf32>
    %110 = arith.addf %103, %109 : vector<8x128xf32>
    %c6_i32_60 = arith.constant 6 : i32
    %c512_i32_61 = arith.constant 512 : i32
    %111 = arith.muli %c6_i32_60, %c512_i32_61 : i32
    %112 = tpu.assume_multiple %111, 512 : i32
    %113 = arith.index_cast %112 : i32 to index
    %c0_62 = arith.constant 0 : index
    %114 = vector.load %arg3[%113, %c0_62] : memref<4096x128xf32, #tpu.memory_space<vmem>>, vector<512x128xf32>
    %115 = vector.shape_cast %114 : vector<512x128xf32> to vector<64x8x128xf32>
    %cst_63 = arith.constant dense<0.000000e+00> : vector<8x128xf32>
    %116 = vector.multi_reduction <add>, %115, %cst_63 [0] : vector<64x8x128xf32> to vector<8x128xf32>
    %117 = arith.addf %110, %116 : vector<8x128xf32>
    %c7_i32_64 = arith.constant 7 : i32
    %c512_i32_65 = arith.constant 512 : i32
    %118 = arith.muli %c7_i32_64, %c512_i32_65 : i32
    %119 = tpu.assume_multiple %118, 512 : i32
    %120 = arith.index_cast %119 : i32 to index
    %c0_66 = arith.constant 0 : index
    %121 = vector.load %arg3[%120, %c0_66] : memref<4096x128xf32, #tpu.memory_space<vmem>>, vector<512x128xf32>
    %122 = vector.shape_cast %121 : vector<512x128xf32> to vector<64x8x128xf32>
    %cst_67 = arith.constant dense<0.000000e+00> : vector<8x128xf32>
    %123 = vector.multi_reduction <add>, %122, %cst_67 [0] : vector<64x8x128xf32> to vector<8x128xf32>
    %124 = arith.addf %117, %123 : vector<8x128xf32>
    %c8_i32_68 = arith.constant 8 : i32
    %125 = arith.addf %67, %124 : vector<8x128xf32>
    %c0_69 = arith.constant 0 : index
    %c1_70 = arith.constant 1 : index
    %c0_71 = arith.constant 0 : index
    %c0_72 = arith.constant 0 : index
    %126 = vector.load %arg4[%c0_69, %c1_70, %c0_71, %c0_72] : memref<1x2x8x128xf32, #tpu.memory_space<vmem>>, vector<1x1x8x128xf32>
    %127 = vector.shape_cast %126 : vector<1x1x8x128xf32> to vector<8x128xf32>
    %128 = vector.shape_cast %125 : vector<8x128xf32> to vector<1x1x8x128xf32>
    tpu.vector_store %arg4[%c0_69, %c1_70, %c0_71, %c0_72], %128 {strides = array<i32>} : memref<1x2x8x128xf32, #tpu.memory_space<vmem>>, vector<1x1x8x128xf32>,
    return
  }
  func.func @transform_0(%arg0: i32, %arg1: i32) -> (i32, i32) {
    %c3_i32 = arith.constant 3 : i32
    %0 = arith.muli %arg0, %c3_i32 : i32
    %1 = arith.addi %0, %arg1 : i32
    %c0_i32 = arith.constant 0 : i32
    %c0_i32_0 = arith.constant 0 : i32
    return %1, %c0_i32 : i32, i32
  }
  func.func @transform_1(%arg0: i32, %arg1: i32) -> (i32, i32) {
    %c3_i32 = arith.constant 3 : i32
    %0 = arith.muli %arg0, %c3_i32 : i32
    %1 = arith.addi %0, %arg1 : i32
    %c0_i32 = arith.constant 0 : i32
    %c0_i32_0 = arith.constant 0 : i32
    return %1, %c0_i32 : i32, i32
  }
  func.func @transform_2(%arg0: i32, %arg1: i32) -> (i32, i32, i32, i32) {
    %c0_i32 = arith.constant 0 : i32
    %c0_i32_0 = arith.constant 0 : i32
    %c0_i32_1 = arith.constant 0 : i32
    %c0_i32_2 = arith.constant 0 : i32
    return %arg0, %c0_i32, %c0_i32_0, %c0_i32_1 : i32, i32, i32, i32
  }
}

</mosaic_0001>

<bundles_post_ra>
// kernel: tpu_custom_call.1
= control target key start
LH: loop header
LB: loop body
LE: loop exit
PB: predicated region body
PF: predicated region fallthrough
CT: control target
= control target key end

     0   :  { %7 = vsyncpa [#allocation3], 0  ;;  %s4719_s0 = inlined_call_operand.hbm [shape: f32[12288,128], index: 0, kind: input, shape index: {}]   ;;  %s4720_s1 = inlined_call_operand.hbm [shape: f32[12288,128], index: 1, kind: input, shape index: {}]   ;;  %s4721_s2 = inlined_call_operand.hbm [shape: f32[1,2,8,128], index: 2, kind: output, shape index: {}]  }
   0x1   :  { %9 = vsyncpa [#allocation3 + $0x1], 0 }
   0x2   :  { %10 = vsyncpa [#allocation6], 0 }
   0x3   :  { %12 = vsyncpa [#allocation6 + $0x1], 0 }
   0x4   :  { %13 = vsyncpa [#allocation4], 0  ;;  %s3550_s9 = smov 0   ;;  %s3552_s10 = smov 0  }
   0x5   :  { %s3554_s11 = smov 0   ;;  %s3556_s12 = smov 0  }
   0x6   :  { %s3558_s13 = smov 0   ;;  %s3560_s14 = smov 0  }
   0x7 LB: > { %s2400_s15 = sadd.s32 4294967295, %s3525_s14   ;;  %s28_s16 = sadd.s32 1, %s3521_s13  ;;  %s3525_s14 = sphi %s3560_s14, %s19_s14   ;;  %s3521_s13 = sphi %s3558_s13, %s4731_s13   ;;  %s3517_s12 = sphi %s3556_s12, %s4730_s12   ;;  %s3513_s11 = sphi %s3554_s11, %s4729_s11   ;;  %s3509_s10 = sphi %s3552_s10, %s4728_s10   ;;  %s3505_s9 = sphi %s3550_s9, %s4727_s9  }
   0x8   : > { %p29_p0 = scmp.ge.s32.totalorder %s28_s16, 3  ;;  %s42_s17 = sadd.s32 1, %s3513_s11 }
   0x9   : > { %p49_p1 = scmp.ne.s32.totalorder %s3513_s11, %s3509_s10  ;;  %p50_p2 = scmp.eq.s32.totalorder %s3525_s14, 0 }
   0xa   : > { %s4733_s16 = smov (%p29_p0, %s28_s16), 0  ;;  %p55_p4 = scmp.ne.s32.totalorder %s3509_s10, %s3505_s9 }
   0xb   : > { %p3586_p3 = por %p50_p2, %p49_p1  ;;  %s39_s19 = ssub.s32 %s3521_s13, %s4733_s16 }
   0xc   : > { %p56_p5 = scmp.eq.s32.totalorder %s2400_s15, 0  ;;  %p40_p6 = scmp.eq.s32.totalorder %s39_s19, 0 }
   0xd   : > { %p3330_p8 = scmp.lt.s32.totalorder %s3525_s14, 3  ;;  %s3604_s22 = sand.u32 1, %s3513_s11  }
   0xe   : > { %p3595_p7 = por %p56_p5, %p55_p4  ;;  %s3313_s23 = sshll.u32 %s3521_s13, 16 }
   0xf   : > { %s3601_s21 = scalar_select %p40_p6, %s3513_s11, %s42_s17  }
  0x10   : > { %s2403_s24 = sshll.u32 %s3604_s22, 12  ;;  %s147_s27 = scalar_lea.hbm %s4719_s0, %s3313_s23 }
  0x11   : > { %s139_s28 = scalar_lea.vmem [#allocation2], %s2403_s24  ;;  %p3615_p9 = pnand %p3330_p8, %p3586_p3 }
  0x12   : > { %s148_s29 = sshll.u32 %s139_s28, 4  ;;  %s136_s3 = scalar_lea.sflag [#allocation3], %s3604_s22  ;;  %s149_s29 = int_to_ptr.vmem [resolvable:$true] %s148_s29 }
  0x13   : > { %p3389_p10 = pneg %p3615_p9  ;;  %s3400_s4 = scalar_lea.vmem %s149_s29, 65536 }
  0x14   : > { %p3401_p11 = scmp.ne.s32.totalorder %s149_s29, %s3400_s4  ;;  %s3527_s5 = smov [#allocation2]  }
  0x15   : > { %s3405_s6 = sshll.u32 %s3527_s5, 4  ;;  %s3406_s6 = int_to_ptr.vmem [resolvable:$false] %s3405_s6 }
  0x16   : > { %p3403_p12 = pnand %p3401_p11, %p3389_p10  ;;  %s3407_s7 = scalar_lea.vmem %s3406_s6, 131072 }
  0x17   : > { %p3408_p0 = scmp.lt.s32.totalorder %s149_s29, %s3406_s6  ;;  %p3409_p1 = scmp.lt.s32.totalorder %s3407_s7, %s3400_s4 }
  0x18   : > { %p3404_p13 = pneg %p3403_p12 }
  0x19   : > { %p3410_p2 = por %p3409_p1, %p3408_p0 }
  0x1b   : > { %p3411_p3 = pnand %p3410_p2, %p3404_p13 }
  0x1d   : > { %3414 = shalt.err (!%p3411_p3)
}
  0x1e   : > { %s3528_s8 = smov 128   ;;  %s3529_s9 = smov 8  }
  0x1f   : > { %3326 = dma.hbm_to_vmem [thread:$0]  (!%p3615_p9), %s147_s27, 65536, %s149_s29, %s136_s3, %s3528_s8, %s3528_s8, %s3529_s9  }
  0x20   : > { %p2409_p4 = scmp.ge.s32.totalorder %s3525_s14, 1  ;;  %p179_p5 = scmp.lt.s32.totalorder %s3525_s14, 4 }
  0x21   : > { %s170_s25 = scalar_lea.hbm %s4720_s1, %s3313_s23  ;;  %s162_s26 = scalar_lea.vmem [#allocation5], %s2403_s24 }
  0x22   : > { %p3629_p6 = pnand %p2409_p4, %p179_p5  ;;  %s171_s28 = sshll.u32 %s162_s26, 4  ;;  %s172_s28 = int_to_ptr.vmem [resolvable:$true] %s171_s28 }
  0x23   : > { %s159_s4 = scalar_lea.sflag [#allocation6], %s3604_s22  ;;  %s3428_s5 = scalar_lea.vmem %s172_s28, 65536 }
  0x24   : > { %p3429_p8 = scmp.ne.s32.totalorder %s172_s28, %s3428_s5  ;;  %s3530_s27 = smov [#allocation5]  }
  0x25   : > { %s3433_s29 = sshll.u32 %s3530_s27, 4  ;;  %s3434_s29 = int_to_ptr.vmem [resolvable:$false] %s3433_s29 }
  0x26   : > { %p3431_p11 = pnand %p3429_p8, %p3389_p10  ;;  %s3435_s3 = scalar_lea.vmem %s3434_s29, 131072 }
  0x27   : > { %p3436_p13 = scmp.lt.s32.totalorder %s172_s28, %s3434_s29  ;;  %p3437_p0 = scmp.lt.s32.totalorder %s3435_s3, %s3428_s5 }
  0x28   : > { %p3432_p12 = pneg %p3431_p11 }
  0x29   : > { %p3438_p1 = por %p3437_p0, %p3436_p13 }
  0x2b   : > { %p3439_p2 = pnand %p3438_p1, %p3432_p12 }
  0x2d   : > { %3442 = shalt.err (!%p3439_p2)
}
  0x2e   : > { %3329 = dma.hbm_to_vmem [thread:$0]  (!%p3615_p9), %s170_s25, 65536, %s172_s28, %s159_s4, %s3528_s8, %s3528_s8, %s3529_s9  }
  0x2f   : > { %183 = sbr.rel (%p3629_p6) target bundleno = 465 (0x1d1), region = 28  ;;  %s185_s22 = sand.u32 (!%p3629_p6), 1, %s3509_s10  }
  0x30   : > { %s2410_s23 = sshll.u32 (!%p3629_p6), %s185_s22, 12  ;;  %s186_s24 = scalar_lea.sflag (!%p3629_p6), [#allocation3], %s185_s22 }
  0x31   : > { %s3647_s6 = scalar_lea.vmem (!%p3629_p6), [#allocation2], %s2410_s23 }
  0x34   : > { %3492 = dma.done.wait (%p3595_p7), %s186_s24, 65536  }
  0x35   : > { %3494 = vsyncadd (%p3595_p7), %s186_s24, 4294901760  ;;  %s195_s7 = scalar_lea.sflag [#allocation6], %s185_s22  ;;  %s3653_s18 = scalar_lea.vmem [#allocation5], %s2410_s23 }
  0x36   : > { %3496 = dma.done.wait (%p3595_p7), %s195_s7, 65536  }
  0x37   : > { %3498 = vsyncadd (%p3595_p7), %s195_s7, 4294901760  ;;  %p2412_p9 = scmp.ne.s32.totalorder %s3517_s12, 0 }
  0x39   : > { %228 = sbr.rel (%p2412_p9) target bundleno = 64 (0x40), region = 40 }
  0x3e   : > { %v3531_v0 = vmov 0.0  }
  0x3f   : > { %229 = vst [vmem:[#allocation7] sm:$0xff] %v3531_v0  ;;  %230 = vst [vmem:[#allocation7 + $0x8] sm:$0xff] %v3531_v0 }
  0x40 PF: > { %v232_v1 = vld [vmem:[%s3647_s6] sm:$0xff]  ;;  %v233_v2 = vld [vmem:[%s3647_s6 + $0x8] sm:$0xff]  ;;  %v234_v3 = vld [vmem:[%s3647_s6 + $0x10] sm:$0xff]  ;;  %s3532_s12 = smov [#allocation7]   ;;  %p4686_p7 = scmp.eq.s32.totalorder %s2400_s15, 2 }
  0x41   : > { %v296_v4 = vadd.f32 %v233_v2, %v232_v1  ;;  %v235_v5 = vld [vmem:[%s3647_s6 + $0x18] sm:$0xff]  ;;  %v236_v8 = vld [vmem:[%s3647_s6 + $0x20] sm:$0xff]  ;;  %v237_v10 = vld [vmem:[%s3647_s6 + $0x28] sm:$0xff]  ;;  %s2309_s20 = sshll.u32 %s3532_s12, 4  ;;  %s2310_s20 = int_to_ptr.vmem [resolvable:$true] %s2309_s20 }
  0x42   : > { %v238_v12 = vld [vmem:[%s3647_s6 + $0x30] sm:$0xff]  ;;  %v239_v14 = vld [vmem:[%s3647_s6 + $0x38] sm:$0xff]  ;;  %v2413_v16 = vld [vmem:[%s3647_s6 + $0x200] sm:$0xff]  ;;  %s3443_s8 = scalar_lea.vmem %s2310_s20, 256  ;;  %p3450_p5 = scmp.lt.s32.totalorder %s2310_s20, %s2310_s20 }
  0x43   : > { %v297_v6 = vadd.f32 %v296_v4, %v234_v3  ;;  %v240_v17 = vld [vmem:[%s3647_s6 + $0x40] sm:$0xff]  ;;  %v2414_v18 = vld [vmem:[%s3647_s6 + $0x208] sm:$0xff]  ;;  %v2415_v19 = vld [vmem:[%s3647_s6 + $0x210] sm:$0xff]  ;;  %p3444_p10 = scmp.ne.s32.totalorder %s2310_s20, %s3443_s8  ;;  %p3451_p6 = scmp.lt.s32.totalorder %s3443_s8, %s3443_s8 }
  0x44   : > { %v425_v20 = vadd.f32 %v2414_v18, %v2413_v16  ;;  %v2416_v21 = vld [vmem:[%s3647_s6 + $0x218] sm:$0xff]  ;;  %v241_v24 = vld [vmem:[%s3647_s6 + $0x48] sm:$0xff]  ;;  %v2417_v25 = vld [vmem:[%s3647_s6 + $0x220] sm:$0xff] }
  0x45   : > { %v298_v7 = vadd.f32 %v297_v6, %v235_v5  ;;  %v2418_v27 = vld [vmem:[%s3647_s6 + $0x228] sm:$0xff]  ;;  %v242_v30 = vld [vmem:[%s3647_s6 + $0x50] sm:$0xff]  ;;  %v2420_v33 = vld [vmem:[%s3647_s6 + $0x238] sm:$0xff]  ;;  %p3445_p3 = pnand %p3444_p10, %p4686_p7  ;;  %p3452_p8 = por %p3451_p6, %p3450_p5 }
  0x46   : > { %v426_v23 = vadd.f32 %v2415_v19, %v425_v20  ;;  %v2419_v31 = vld [vmem:[%s3647_s6 + $0x230] sm:$0xff]  ;;  %v243_v36 = vld [vmem:[%s3647_s6 + $0x58] sm:$0xff]  ;;  %v2421_v37 = vld [vmem:[%s3647_s6 + $0x240] sm:$0xff] }
  0x47   : > { %v299_v9 = vadd.f32 %v298_v7, %v236_v8  ;;  %v2422_v39 = vld [vmem:[%s3647_s6 + $0x248] sm:$0xff]  ;;  %v244_v42 = vld [vmem:[%s3647_s6 + $0x60] sm:$0xff]  ;;  %v2423_v43 = vld [vmem:[%s3647_s6 + $0x250] sm:$0xff]  ;;  %p3446_p4 = pneg %p3445_p3 }
  0x48   : > { %v427_v26 = vadd.f32 %v2416_v21, %v426_v23  ;;  %v2424_v45 = vld [vmem:[%s3647_s6 + $0x258] sm:$0xff]  ;;  %v245_v48 = vld [vmem:[%s3647_s6 + $0x68] sm:$0xff]  ;;  %v2425_v49 = vld [vmem:[%s3647_s6 + $0x260] sm:$0xff] }
  0x49   : > { %v300_v11 = vadd.f32 %v299_v9, %v237_v10  ;;  %v2477_v51 = vld [vmem:[%s3647_s6 + $0x400] sm:$0xff]  ;;  %v2478_v52 = vld [vmem:[%s3647_s6 + $0x408] sm:$0xff]  ;;  %v2479_v53 = vld [vmem:[%s3647_s6 + $0x410] sm:$0xff]  ;;  %p3453_p11 = pnand %p3452_p8, %p3446_p4 }
  0x4a   : > { %v428_v29 = vadd.f32 %v2417_v25, %v427_v26  ;;  %v2426_v54 = vld [vmem:[%s3647_s6 + $0x268] sm:$0xff]  ;;  %v554_v55 = vadd.f32 %v2478_v52, %v2477_v51  ;;  %v2480_v58 = vld [vmem:[%s3647_s6 + $0x418] sm:$0xff]  ;;  %v246_v59 = vld [vmem:[%s3647_s6 + $0x70] sm:$0xff] }
  0x4b   : > { %v301_v13 = vadd.f32 %v300_v11, %v238_v12  ;;  %v2427_v61 = vld [vmem:[%s3647_s6 + $0x270] sm:$0xff]  ;;  %v2481_v63 = vld [vmem:[%s3647_s6 + $0x420] sm:$0xff]  ;;  %v2482_v2 = vld [vmem:[%s3647_s6 + $0x428] sm:$0xff] }
  0x4c   : > { %v429_v32 = vadd.f32 %v2418_v27, %v428_v29  ;;  %v555_v60 = vadd.f32 %v2479_v53, %v554_v55  ;;  %v247_v3 = vld [vmem:[%s3647_s6 + $0x78] sm:$0xff]  ;;  %v2483_v7 = vld [vmem:[%s3647_s6 + $0x430] sm:$0xff]  ;;  %v248_v11 = vld [vmem:[%s3647_s6 + $0x80] sm:$0xff] }
  0x4d   : > { %v302_v15 = vadd.f32 %v301_v13, %v239_v14  ;;  %v2428_v6 = vld [vmem:[%s3647_s6 + $0x278] sm:$0xff]  ;;  %v2429_v14 = vld [vmem:[%s3647_s6 + $0x280] sm:$0xff]  ;;  %v2486_v18 = vld [vmem:[%s3647_s6 + $0x448] sm:$0xff] }
  0x4e   : > { %v430_v35 = vadd.f32 %v2419_v31, %v429_v32  ;;  %v556_v0 = vadd.f32 %v2480_v58, %v555_v60  ;;  %v2484_v10 = vld [vmem:[%s3647_s6 + $0x438] sm:$0xff]  ;;  %v249_v19 = vld [vmem:[%s3647_s6 + $0x88] sm:$0xff]  ;;  %v2487_v23 = vld [vmem:[%s3647_s6 + $0x450] sm:$0xff] }
  0x4f   : > { %v303_v22 = vadd.f32 %v302_v15, %v240_v17  ;;  %v2485_v15 = vld [vmem:[%s3647_s6 + $0x440] sm:$0xff]  ;;  %v2488_v26 = vld [vmem:[%s3647_s6 + $0x458] sm:$0xff]  ;;  %v250_v27 = vld [vmem:[%s3647_s6 + $0x90] sm:$0xff] }
  0x50   : > { %v431_v38 = vadd.f32 %v2420_v33, %v430_v35  ;;  %v557_v5 = vadd.f32 %v2481_v63, %v556_v0  ;;  %v2489_v31 = vld [vmem:[%s3647_s6 + $0x460] sm:$0xff]  ;;  %v253_v63 = vld [vmem:[%s3647_s6 + $0xa8] sm:$0xff] }
  0x51   : > { %v304_v28 = vadd.f32 %v303_v22, %v241_v24  ;;  %v2430_v22 = vld [vmem:[%s3647_s6 + $0x288] sm:$0xff]  ;;  %v2541_v33 = vld [vmem:[%s3647_s6 + $0x600] sm:$0xff] }
  0x52   : > { %v432_v41 = vadd.f32 %v2421_v37, %v431_v38  ;;  %v558_v8 = vadd.f32 %v2482_v2, %v557_v5  ;;  %v2543_v37 = vld [vmem:[%s3647_s6 + $0x610] sm:$0xff]  ;;  %v252_v51 = vld [vmem:[%s3647_s6 + $0xa0] sm:$0xff]  ;;  %v2548_v2 = vld [vmem:[%s3647_s6 + $0x638] sm:$0xff] }
  0x53   : > { %v305_v34 = vadd.f32 %v304_v28, %v242_v30  ;;  %v2431_v30 = vld [vmem:[%s3647_s6 + $0x290] sm:$0xff]  ;;  %v2433_v55 = vld [vmem:[%s3647_s6 + $0x2a0] sm:$0xff] }
  0x54   : > { %v433_v44 = vadd.f32 %v2422_v39, %v432_v41  ;;  %v559_v13 = vadd.f32 %v2483_v7, %v558_v8  ;;  %v251_v39 = vld [vmem:[%s3647_s6 + $0x98] sm:$0xff]  ;;  %v2549_v7 = vld [vmem:[%s3647_s6 + $0x640] sm:$0xff] }
  0x55   : > { %v306_v40 = vadd.f32 %v305_v34, %v243_v36  ;;  %v2542_v34 = vld [vmem:[%s3647_s6 + $0x608] sm:$0xff] }
  0x56   : > { %v434_v47 = vadd.f32 %v2423_v43, %v433_v44  ;;  %v560_v16 = vadd.f32 %v2484_v10, %v559_v13  ;;  %v2490_v36 = vld [vmem:[%s3647_s6 + $0x468] sm:$0xff]  ;;  %v683_v38 = vadd.f32 %v2542_v34, %v2541_v33  ;;  %v2432_v43 = vld [vmem:[%s3647_s6 + $0x298] sm:$0xff]  ;;  %v2491_v44 = vld [vmem:[%s3647_s6 + $0x470] sm:$0xff] }
  0x57   : > { %v307_v46 = vadd.f32 %v306_v40, %v244_v42  ;;  %v2544_v42 = vld [vmem:[%s3647_s6 + $0x618] sm:$0xff] }
  0x58   : > { %v435_v50 = vadd.f32 %v2424_v45, %v434_v47  ;;  %v561_v21 = vadd.f32 %v2485_v15, %v560_v16  ;;  %v684_v45 = vadd.f32 %v2543_v37, %v683_v38  ;;  %v2545_v47 = vld [vmem:[%s3647_s6 + $0x620] sm:$0xff]  ;;  %v2435_v15 = vld [vmem:[%s3647_s6 + $0x2b0] sm:$0xff]  ;;  %v2554_v37 = vld [vmem:[%s3647_s6 + $0x668] sm:$0xff] }
  0x59   : > { %v308_v56 = vadd.f32 %v307_v46, %v245_v48  ;;  %v2497_v16 = vld [vmem:[%s3647_s6 + $0x4a0] sm:$0xff]  ;;  %v2606_v38 = vld [vmem:[%s3647_s6 + $0x808] sm:$0xff] }
  0x5a   : > { %v436_v57 = vadd.f32 %v2425_v49, %v435_v50  ;;  %v562_v24 = vadd.f32 %v2486_v18, %v561_v21  ;;  %v2492_v49 = vld [vmem:[%s3647_s6 + $0x478] sm:$0xff]  ;;  %v685_v50 = vadd.f32 %v2544_v42, %v684_v45  ;;  %v2498_v21 = vld [vmem:[%s3647_s6 + $0x4a8] sm:$0xff]  ;;  %v2555_v45 = vld [vmem:[%s3647_s6 + $0x670] sm:$0xff] }
  0x5b   : > { %v309_v1 = vadd.f32 %v308_v56, %v246_v59  ;;  %v2493_v56 = vld [vmem:[%s3647_s6 + $0x480] sm:$0xff]  ;;  %v2547_v59 = vld [vmem:[%s3647_s6 + $0x630] sm:$0xff] }
  0x5c   : > { %v437_v62 = vadd.f32 %v2426_v54, %v436_v57  ;;  %v563_v29 = vadd.f32 %v2487_v23, %v562_v24  ;;  %v2546_v54 = vld [vmem:[%s3647_s6 + $0x628] sm:$0xff]  ;;  %v686_v57 = vadd.f32 %v2545_v47, %v685_v50  ;;  %v255_v23 = vld [vmem:[%s3647_s6 + $0xb8] sm:$0xff] }
  0x5d   : > { %v310_v9 = vadd.f32 %v309_v1, %v247_v3  ;;  %v2434_v3 = vld [vmem:[%s3647_s6 + $0x2a8] sm:$0xff] }
  0x5e   : > { %v438_v4 = vadd.f32 %v2427_v61, %v437_v62  ;;  %v564_v32 = vadd.f32 %v2488_v26, %v563_v29  ;;  %v2494_v61 = vld [vmem:[%s3647_s6 + $0x488] sm:$0xff]  ;;  %v687_v62 = vadd.f32 %v2546_v54, %v686_v57  ;;  %v2552_v26 = vld [vmem:[%s3647_s6 + $0x658] sm:$0xff]  ;;  %v2499_v29 = vld [vmem:[%s3647_s6 + $0x4b0] sm:$0xff] }
  0x5f   : > { %v311_v17 = vadd.f32 %v310_v9, %v248_v11  ;;  %v2496_v9 = vld [vmem:[%s3647_s6 + $0x498] sm:$0xff]  ;;  %v254_v11 = vld [vmem:[%s3647_s6 + $0xb0] sm:$0xff]  ;;  %v257_v50 = vld [vmem:[%s3647_s6 + $0xc8] sm:$0xff] }
  0x60   : > { %v439_v12 = vadd.f32 %v2428_v6, %v438_v4  ;;  %v565_v41 = vadd.f32 %v2489_v31, %v564_v32  ;;  %v2495_v4 = vld [vmem:[%s3647_s6 + $0x490] sm:$0xff]  ;;  %v688_v5 = vadd.f32 %v2547_v59, %v687_v62  ;;  %v2553_v31 = vld [vmem:[%s3647_s6 + $0x660] sm:$0xff]  ;;  %v2438_v54 = vld [vmem:[%s3647_s6 + $0x2c8] sm:$0xff] }
  0x61   : > { %v312_v25 = vadd.f32 %v311_v17, %v249_v19  ;;  %v2551_v19 = vld [vmem:[%s3647_s6 + $0x650] sm:$0xff]  ;;  %v256_v32 = vld [vmem:[%s3647_s6 + $0xc0] sm:$0xff] }
  0x62   : > { %v440_v20 = vadd.f32 %v2429_v14, %v439_v12  ;;  %v566_v46 = vadd.f32 %v2490_v36, %v565_v41  ;;  %v689_v10 = vadd.f32 %v2548_v2, %v688_v5  ;;  %v2550_v14 = vld [vmem:[%s3647_s6 + $0x648] sm:$0xff]  ;;  %v2557_v59 = vld [vmem:[%s3647_s6 + $0x680] sm:$0xff] }
  0x63   : > { %v313_v35 = vadd.f32 %v312_v25, %v250_v27  ;;  %v2436_v27 = vld [vmem:[%s3647_s6 + $0x2b8] sm:$0xff]  ;;  %v2558_v2 = vld [vmem:[%s3647_s6 + $0x688] sm:$0xff] }
  0x64   : > { %v441_v28 = vadd.f32 %v2430_v22, %v440_v20  ;;  %v567_v53 = vadd.f32 %v2491_v44, %v566_v46  ;;  %v690_v17 = vadd.f32 %v2549_v7, %v689_v10  ;;  %v2500_v44 = vld [vmem:[%s3647_s6 + $0x4b8] sm:$0xff] }
  0x65   : > { %v314_v48 = vadd.f32 %v313_v35, %v251_v39  ;;  %v2605_v35 = vld [vmem:[%s3647_s6 + $0x800] sm:$0xff]  ;;  %v2607_v39 = vld [vmem:[%s3647_s6 + $0x810] sm:$0xff]  ;;  %v2608_v46 = vld [vmem:[%s3647_s6 + $0x818] sm:$0xff] }
  0x66   : > { %v442_v40 = vadd.f32 %v2431_v30, %v441_v28  ;;  %v568_v58 = vadd.f32 %v2492_v49, %v567_v53  ;;  %v691_v22 = vadd.f32 %v2550_v14, %v690_v17  ;;  %v2609_v53 = vld [vmem:[%s3647_s6 + $0x820] sm:$0xff]  ;;  %v2612_v10 = vld [vmem:[%s3647_s6 + $0x838] sm:$0xff] }
  0x67   : > { %v315_v60 = vadd.f32 %v314_v48, %v252_v51  ;;  %v259_v14 = vld [vmem:[%s3647_s6 + $0xd8] sm:$0xff]  ;;  %v2613_v17 = vld [vmem:[%s3647_s6 + $0x840] sm:$0xff] }
  0x68   : > { %v443_v52 = vadd.f32 %v2432_v43, %v442_v40  ;;  %v569_v1 = vadd.f32 %v2493_v56, %v568_v58  ;;  %v692_v28 = vadd.f32 %v2551_v19, %v691_v22  ;;  %v2437_v40 = vld [vmem:[%s3647_s6 + $0x2c0] sm:$0xff]  ;;  %v812_v43 = vadd.f32 %v2606_v38, %v2605_v35  ;;  %v2503_v22 = vld [vmem:[%s3647_s6 + $0x4d0] sm:$0xff]  ;;  %v2616_v38 = vld [vmem:[%s3647_s6 + $0x858] sm:$0xff] }
  0x69   : > { %v316_v8 = vadd.f32 %v315_v60, %v253_v63  ;;  %v2501_v58 = vld [vmem:[%s3647_s6 + $0x4c0] sm:$0xff]  ;;  %v2610_v60 = vld [vmem:[%s3647_s6 + $0x828] sm:$0xff] }
  0x6a   : > { %v444_v0 = vadd.f32 %v2433_v55, %v443_v52  ;;  %v570_v6 = vadd.f32 %v2494_v61, %v569_v1  ;;  %v693_v34 = vadd.f32 %v2552_v26, %v692_v28  ;;  %v813_v49 = vadd.f32 %v2607_v39, %v812_v43  ;;  %v2556_v52 = vld [vmem:[%s3647_s6 + $0x678] sm:$0xff]  ;;  %v260_v28 = vld [vmem:[%s3647_s6 + $0xe0] sm:$0xff]  ;;  %v261_v39 = vld [vmem:[%s3647_s6 + $0xe8] sm:$0xff] }
  0x6b   : > { %v317_v20 = vadd.f32 %v316_v8, %v254_v11  ;;  %v2502_v8 = vld [vmem:[%s3647_s6 + $0x4c8] sm:$0xff] }
  0x6c   : > { %v445_v12 = vadd.f32 %v2434_v3, %v444_v0  ;;  %v571_v13 = vadd.f32 %v2495_v4, %v570_v6  ;;  %v694_v42 = vadd.f32 %v2553_v31, %v693_v34  ;;  %v814_v57 = vadd.f32 %v2608_v46, %v813_v49  ;;  %v258_v0 = vld [vmem:[%s3647_s6 + $0xd0] sm:$0xff]  ;;  %v2442_v43 = vld [vmem:[%s3647_s6 + $0x2e8] sm:$0xff]  ;;  %v2617_v46 = vld [vmem:[%s3647_s6 + $0x860] sm:$0xff] }
  0x6d   : > { %v318_v33 = vadd.f32 %v317_v20, %v255_v23  ;;  %v2611_v3 = vld [vmem:[%s3647_s6 + $0x830] sm:$0xff]  ;;  %v2561_v23 = vld [vmem:[%s3647_s6 + $0x6a0] sm:$0xff] }
  0x6e   : > { %v572_v18 = vadd.f32 %v2496_v9, %v571_v13  ;;  %v446_v24 = vadd.f32 %v2435_v15, %v445_v12  ;;  %v695_v48 = vadd.f32 %v2554_v37, %v694_v42  ;;  %v815_v63 = vadd.f32 %v2609_v53, %v814_v57  ;;  %v2439_v4 = vld [vmem:[%s3647_s6 + $0x2d0] sm:$0xff]  ;;  %v2505_v53 = vld [vmem:[%s3647_s6 + $0x4e0] sm:$0xff] }
  0x6f   : > { %v319_v47 = vadd.f32 %v318_v33, %v256_v32  ;;  %v2559_v9 = vld [vmem:[%s3647_s6 + $0x690] sm:$0xff]  ;;  %v2441_v32 = vld [vmem:[%s3647_s6 + $0x2e0] sm:$0xff] }
  0x70   : > { %v573_v25 = vadd.f32 %v2497_v16, %v572_v18  ;;  %v447_v36 = vadd.f32 %v2436_v27, %v446_v24  ;;  %v696_v56 = vadd.f32 %v2555_v45, %v695_v48  ;;  %v816_v7 = vadd.f32 %v2610_v60, %v815_v63  ;;  %v2560_v16 = vld [vmem:[%s3647_s6 + $0x698] sm:$0xff]  ;;  %v2614_v24 = vld [vmem:[%s3647_s6 + $0x848] sm:$0xff]  ;;  %v2615_v31 = vld [vmem:[%s3647_s6 + $0x850] sm:$0xff] }
  0x71   : > { %v320_v61 = vadd.f32 %v319_v47, %v257_v50  ;;  %v2440_v18 = vld [vmem:[%s3647_s6 + $0x2d8] sm:$0xff]  ;;  %v2563_v37 = vld [vmem:[%s3647_s6 + $0x6b0] sm:$0xff]  ;;  %v2669_v50 = vld [vmem:[%s3647_s6 + $0xa00] sm:$0xff] }
  0x72   : > { %v574_v30 = vadd.f32 %v2498_v21, %v573_v25  ;;  %v448_v51 = vadd.f32 %v2437_v40, %v447_v36  ;;  %v697_v62 = vadd.f32 %v2556_v52, %v696_v56  ;;  %v817_v13 = vadd.f32 %v2611_v3, %v816_v7  ;;  %v2504_v36 = vld [vmem:[%s3647_s6 + $0x4d8] sm:$0xff]  ;;  %v2671_v52 = vld [vmem:[%s3647_s6 + $0xa10] sm:$0xff]  ;;  %v2566_v63 = vld [vmem:[%s3647_s6 + $0x6c8] sm:$0xff] }
  0x73   : > { %v321_v11 = vadd.f32 %v320_v61, %v258_v0  ;;  %v2564_v45 = vld [vmem:[%s3647_s6 + $0x6b8] sm:$0xff]  ;;  %v262_v61 = vld [vmem:[%s3647_s6 + $0xf0] sm:$0xff]  ;;  %v2506_v7 = vld [vmem:[%s3647_s6 + $0x4e8] sm:$0xff] }
  0x74   : > { %v575_v41 = vadd.f32 %v2499_v29, %v574_v30  ;;  %v449_v1 = vadd.f32 %v2438_v54, %v448_v51  ;;  %v698_v6 = vadd.f32 %v2557_v59, %v697_v62  ;;  %v818_v21 = vadd.f32 %v2612_v10, %v817_v13  ;;  %v2562_v30 = vld [vmem:[%s3647_s6 + $0x6a8] sm:$0xff]  ;;  %v2565_v54 = vld [vmem:[%s3647_s6 + $0x6c0] sm:$0xff]  ;;  %v2672_v60 = vld [vmem:[%s3647_s6 + $0xa18] sm:$0xff] }
  0x75   : > { %v322_v25 = vadd.f32 %v321_v11, %v259_v14  ;;  %v2670_v51 = vld [vmem:[%s3647_s6 + $0xa08] sm:$0xff]  ;;  %v2619_v0 = vld [vmem:[%s3647_s6 + $0x870] sm:$0xff] }
  0x76   : > { %v576_v55 = vadd.f32 %v2500_v44, %v575_v41  ;;  %v699_v12 = vadd.f32 %v2558_v2, %v698_v6  ;;  %v450_v15 = vadd.f32 %v2439_v4, %v449_v1  ;;  %v819_v27 = vadd.f32 %v2613_v17, %v818_v21  ;;  %v2443_v2 = vld [vmem:[%s3647_s6 + $0x2f0] sm:$0xff]  ;;  %v2673_v6 = vld [vmem:[%s3647_s6 + $0xa20] sm:$0xff]  ;;  %v2674_v14 = vld [vmem:[%s3647_s6 + $0xa28] sm:$0xff] }
  0x77   : > { %v323_v40 = vadd.f32 %v322_v25, %v260_v28  ;;  %v941_v56 = vadd.f32 %v2670_v51, %v2669_v50  ;;  %v2568_v17 = vld [vmem:[%s3647_s6 + $0x6d8] sm:$0xff]  ;;  %v2507_v25 = vld [vmem:[%s3647_s6 + $0x4f0] sm:$0xff]  ;;  %v2678_v50 = vld [vmem:[%s3647_s6 + $0xa48] sm:$0xff] }
  0x78   : > { %v577_v5 = vadd.f32 %v2501_v58, %v576_v55  ;;  %v700_v20 = vadd.f32 %v2559_v9, %v699_v12  ;;  %v451_v29 = vadd.f32 %v2440_v18, %v450_v15  ;;  %v820_v35 = vadd.f32 %v2614_v24, %v819_v27  ;;  %v2618_v55 = vld [vmem:[%s3647_s6 + $0x868] sm:$0xff]  ;;  %v2620_v9 = vld [vmem:[%s3647_s6 + $0x878] sm:$0xff]  ;;  %v2621_v18 = vld [vmem:[%s3647_s6 + $0x880] sm:$0xff] }
  0x79   : > { %v324_v57 = vadd.f32 %v323_v40, %v261_v39  ;;  %v942_v1 = vadd.f32 %v2671_v52, %v941_v56  ;;  %v263_v15 = vld [vmem:[%s3647_s6 + $0xf8] sm:$0xff]  ;;  %v2675_v24 = vld [vmem:[%s3647_s6 + $0xa30] sm:$0xff]  ;;  %v2622_v27 = vld [vmem:[%s3647_s6 + $0x888] sm:$0xff] }
  0x7a   : > { %v578_v19 = vadd.f32 %v2502_v8, %v577_v5  ;;  %v701_v26 = vadd.f32 %v2560_v16, %v700_v20  ;;  %v821_v42 = vadd.f32 %v2615_v31, %v820_v35  ;;  %v452_v44 = vadd.f32 %v2441_v32, %v451_v29  ;;  %v2567_v8 = vld [vmem:[%s3647_s6 + $0x6d0] sm:$0xff]  ;;  %v2444_v20 = vld [vmem:[%s3647_s6 + $0x2f8] sm:$0xff]  ;;  %v2570_v35 = vld [vmem:[%s3647_s6 + $0x6e8] sm:$0xff] }
  0x7b   : > { %v943_v10 = vadd.f32 %v2672_v60, %v942_v1  ;;  %v325_v11 = vadd.f32 %v324_v57, %v262_v61  ;;  %v2676_v32 = vld [vmem:[%s3647_s6 + $0xa38] sm:$0xff]  ;;  %v265_v51 = vld [vmem:[%s3647_s6 + $0x108] sm:$0xff] }
  0x7c   : > { %v579_v33 = vadd.f32 %v2503_v22, %v578_v19  ;;  %v702_v34 = vadd.f32 %v2561_v23, %v701_v26  ;;  %v822_v49 = vadd.f32 %v2616_v38, %v821_v42  ;;  %v453_v62 = vadd.f32 %v2442_v43, %v452_v44  ;;  %v2569_v26 = vld [vmem:[%s3647_s6 + $0x6e0] sm:$0xff]  ;;  %v2508_v43 = vld [vmem:[%s3647_s6 + $0x4f8] sm:$0xff]  ;;  %v2626_v61 = vld [vmem:[%s3647_s6 + $0x8a8] sm:$0xff] }
  0x7d   : > { %v944_v19 = vadd.f32 %v2673_v6, %v943_v10  ;;  %v326_v29 = vadd.f32 %v325_v11, %v263_v15  ;;  %v2445_v38 = vld [vmem:[%s3647_s6 + $0x300] sm:$0xff]  ;;  %v2624_v44 = vld [vmem:[%s3647_s6 + $0x898] sm:$0xff] }
  0x7e   : > { %v703_v41 = vadd.f32 %v2562_v30, %v702_v34  ;;  %v580_v47 = vadd.f32 %v2504_v36, %v579_v33  ;;  %v823_v59 = vadd.f32 %v2617_v46, %v822_v49  ;;  %v454_v16 = vadd.f32 %v2443_v2, %v453_v62  ;;  %v264_v33 = vld [vmem:[%s3647_s6 + $0x100] sm:$0xff]  ;;  %v2623_v36 = vld [vmem:[%s3647_s6 + $0x890] sm:$0xff]  ;;  %v2680_v2 = vld [vmem:[%s3647_s6 + $0xa58] sm:$0xff] }
  0x7f   : > { %v945_v28 = vadd.f32 %v2674_v14, %v944_v19  ;;  %v2677_v42 = vld [vmem:[%s3647_s6 + $0xa40] sm:$0xff]  ;;  %v327_v46 = vadd.f32 %v326_v29, %v264_v33  ;;  %v2511_v33 = vld [vmem:[%s3647_s6 + $0x510] sm:$0xff] }
  0x80   : > { %v704_v48 = vadd.f32 %v2563_v37, %v703_v41  ;;  %v581_v3 = vadd.f32 %v2505_v53, %v580_v47  ;;  %v824_v5 = vadd.f32 %v2618_v55, %v823_v59  ;;  %v455_v34 = vadd.f32 %v2444_v20, %v454_v16  ;;  %v2571_v47 = vld [vmem:[%s3647_s6 + $0x6f0] sm:$0xff]  ;;  %v2625_v53 = vld [vmem:[%s3647_s6 + $0x8a0] sm:$0xff]  ;;  %v2446_v55 = vld [vmem:[%s3647_s6 + $0x308] sm:$0xff] }
  0x81   : > { %v946_v37 = vadd.f32 %v2675_v24, %v945_v28  ;;  %v2509_v59 = vld [vmem:[%s3647_s6 + $0x500] sm:$0xff]  ;;  %v2734_v16 = vld [vmem:[%s3647_s6 + $0xc08] sm:$0xff]  ;;  %v2448_v28 = vld [vmem:[%s3647_s6 + $0x318] sm:$0xff] }
  0x82   : > { %v705_v58 = vadd.f32 %v2564_v45, %v704_v48  ;;  %v825_v13 = vadd.f32 %v2619_v0, %v824_v5  ;;  %v582_v21 = vadd.f32 %v2506_v7, %v581_v3  ;;  %v456_v52 = vadd.f32 %v2445_v38, %v455_v34  ;;  %v2572_v0 = vld [vmem:[%s3647_s6 + $0x6f8] sm:$0xff]  ;;  %v266_v3 = vld [vmem:[%s3647_s6 + $0x110] sm:$0xff]  ;;  %v2681_v11 = vld [vmem:[%s3647_s6 + $0xa60] sm:$0xff] }
  0x83   : > { %v947_v45 = vadd.f32 %v2676_v32, %v946_v37  ;;  %v2627_v5 = vld [vmem:[%s3647_s6 + $0x8b0] sm:$0xff]  ;;  %v2733_v15 = vld [vmem:[%s3647_s6 + $0xc00] sm:$0xff]  ;;  %v2682_v20 = vld [vmem:[%s3647_s6 + $0xa68] sm:$0xff] }
  0x84   : > { %v706_v4 = vadd.f32 %v2565_v54, %v705_v58  ;;  %v826_v23 = vadd.f32 %v2620_v9, %v825_v13  ;;  %v583_v39 = vadd.f32 %v2507_v25, %v582_v21  ;;  %v2679_v58 = vld [vmem:[%s3647_s6 + $0xa50] sm:$0xff]  ;;  %v2628_v13 = vld [vmem:[%s3647_s6 + $0x8b8] sm:$0xff]  ;;  %v2629_v25 = vld [vmem:[%s3647_s6 + $0x8c0] sm:$0xff] }
  0x85   : > { %v948_v54 = vadd.f32 %v2677_v42, %v947_v45  ;;  %v2447_v7 = vld [vmem:[%s3647_s6 + $0x310] sm:$0xff]  ;;  %v2737_v37 = vld [vmem:[%s3647_s6 + $0xc20] sm:$0xff] }
  0x86   : > { %v707_v12 = vadd.f32 %v2566_v63, %v706_v4  ;;  %v827_v31 = vadd.f32 %v2621_v18, %v826_v23  ;;  %v584_v56 = vadd.f32 %v2508_v43, %v583_v39  ;;  %v328_v63 = vadd.f32 %v327_v46, %v265_v51  ;;  %v2573_v18 = vld [vmem:[%s3647_s6 + $0x700] sm:$0xff]  ;;  %v2735_v21 = vld [vmem:[%s3647_s6 + $0xc10] sm:$0xff]  ;;  %v267_v23 = vld [vmem:[%s3647_s6 + $0x118] sm:$0xff] }
  0x87   : > { %v949_v62 = vadd.f32 %v2678_v50, %v948_v54  ;;  %v457_v4 = vadd.f32 %v2446_v55, %v456_v52  ;;  %v2574_v39 = vld [vmem:[%s3647_s6 + $0x708] sm:$0xff]  ;;  %v268_v43 = vld [vmem:[%s3647_s6 + $0x120] sm:$0xff]  ;;  %v2631_v45 = vld [vmem:[%s3647_s6 + $0x8d0] sm:$0xff] }
  0x88   : > { %v708_v22 = vadd.f32 %v2567_v8, %v707_v12  ;;  %v828_v41 = vadd.f32 %v2622_v27, %v827_v31  ;;  %v2510_v8 = vld [vmem:[%s3647_s6 + $0x508] sm:$0xff]  ;;  %v585_v9 = vadd.f32 %v2509_v59, %v584_v56  ;;  %v2736_v27 = vld [vmem:[%s3647_s6 + $0xc18] sm:$0xff]  ;;  %v2683_v31 = vld [vmem:[%s3647_s6 + $0xa70] sm:$0xff] }
  0x89   : > { %v950_v6 = vadd.f32 %v2679_v58, %v949_v62  ;;  %v458_v24 = vadd.f32 %v2447_v7, %v457_v4  ;;  %v2685_v51 = vld [vmem:[%s3647_s6 + $0xa80] sm:$0xff]  ;;  %v2632_v55 = vld [vmem:[%s3647_s6 + $0x8d8] sm:$0xff]  ;;  %v2575_v59 = vld [vmem:[%s3647_s6 + $0x710] sm:$0xff] }
  0x8a   : > { %v709_v30 = vadd.f32 %v2568_v17, %v708_v22  ;;  %v829_v49 = vadd.f32 %v2623_v36, %v828_v41  ;;  %v329_v17 = vadd.f32 %v328_v63, %v266_v3  ;;  %v1070_v22 = vadd.f32 %v2734_v16, %v2733_v15  ;;  %v2684_v41 = vld [vmem:[%s3647_s6 + $0xa78] sm:$0xff]  ;;  %v269_v63 = vld [vmem:[%s3647_s6 + $0x128] sm:$0xff]  ;;  %v2687_v7 = vld [vmem:[%s3647_s6 + $0xa90] sm:$0xff] }
  0x8b   : > { %v951_v14 = vadd.f32 %v2680_v2, %v950_v6  ;;  %v586_v29 = vadd.f32 %v2510_v8, %v585_v9  ;;  %v2740_v3 = vld [vmem:[%s3647_s6 + $0xc38] sm:$0xff]  ;;  %v2450_v4 = vld [vmem:[%s3647_s6 + $0x328] sm:$0xff]  ;;  %v2513_v9 = vld [vmem:[%s3647_s6 + $0x520] sm:$0xff] }
  0x8c   : > { %v710_v40 = vadd.f32 %v2569_v26, %v709_v30  ;;  %v830_v57 = vadd.f32 %v2624_v44, %v829_v49  ;;  %v1071_v32 = vadd.f32 %v2735_v21, %v1070_v22  ;;  %v330_v38 = vadd.f32 %v329_v17, %v267_v23  ;;  %v2576_v15 = vld [vmem:[%s3647_s6 + $0x718] sm:$0xff]  ;;  %v2635_v21 = vld [vmem:[%s3647_s6 + $0x8f0] sm:$0xff]  ;;  %v2742_v23 = vld [vmem:[%s3647_s6 + $0xc48] sm:$0xff] }
  0x8d   : > { %v952_v26 = vadd.f32 %v2681_v11, %v951_v14  ;;  %v459_v44 = vadd.f32 %v2448_v28, %v458_v24  ;;  %v587_v49 = vadd.f32 %v2511_v33, %v586_v29  ;;  %v2634_v11 = vld [vmem:[%s3647_s6 + $0x8e8] sm:$0xff]  ;;  %v2688_v17 = vld [vmem:[%s3647_s6 + $0xa98] sm:$0xff]  ;;  %v2451_v24 = vld [vmem:[%s3647_s6 + $0x330] sm:$0xff] }
  0x8e   : > { %v711_v48 = vadd.f32 %v2570_v35, %v710_v40  ;;  %v831_v1 = vadd.f32 %v2625_v53, %v830_v57  ;;  %v2630_v35 = vld [vmem:[%s3647_s6 + $0x8c8] sm:$0xff]  ;;  %v1072_v42 = vadd.f32 %v2736_v27, %v1071_v32  ;;  %v2512_v53 = vld [vmem:[%s3647_s6 + $0x518] sm:$0xff]  ;;  %v2739_v57 = vld [vmem:[%s3647_s6 + $0xc30] sm:$0xff]  ;;  %v331_v58 = vadd.f32 %v330_v38, %v268_v43 }
  0x8f   : > { %v953_v36 = vadd.f32 %v2682_v20, %v952_v26  ;;  %v2689_v27 = vld [vmem:[%s3647_s6 + $0xaa0] sm:$0xff]  ;;  %v2514_v29 = vld [vmem:[%s3647_s6 + $0x528] sm:$0xff]  ;;  %v2743_v33 = vld [vmem:[%s3647_s6 + $0xc50] sm:$0xff] }
  0x90   : > { %v712_v60 = vadd.f32 %v2571_v47, %v711_v48  ;;  %v832_v10 = vadd.f32 %v2626_v61, %v831_v1  ;;  %v2738_v47 = vld [vmem:[%s3647_s6 + $0xc28] sm:$0xff]  ;;  %v2449_v48 = vld [vmem:[%s3647_s6 + $0x320] sm:$0xff]  ;;  %v1073_v52 = vadd.f32 %v2737_v37, %v1072_v42  ;;  %v332_v14 = vadd.f32 %v331_v58, %v269_v63  ;;  %v2744_v43 = vld [vmem:[%s3647_s6 + $0xc58] sm:$0xff] }
  0x91   : > { %v954_v46 = vadd.f32 %v2683_v31, %v953_v36  ;;  %v2686_v61 = vld [vmem:[%s3647_s6 + $0xa88] sm:$0xff]  ;;  %v2633_v1 = vld [vmem:[%s3647_s6 + $0x8e0] sm:$0xff]  ;;  %v2636_v31 = vld [vmem:[%s3647_s6 + $0x8f8] sm:$0xff] }
  0x92   : > { %v713_v12 = vadd.f32 %v2572_v0, %v712_v60  ;;  %v833_v19 = vadd.f32 %v2627_v5, %v832_v10  ;;  %v1074_v62 = vadd.f32 %v2738_v47, %v1073_v52  ;;  %v460_v0 = vadd.f32 %v2449_v48, %v459_v44  ;;  %v2690_v37 = vld [vmem:[%s3647_s6 + $0xaa8] sm:$0xff]  ;;  %v2452_v44 = vld [vmem:[%s3647_s6 + $0x338] sm:$0xff]  ;;  %v2691_v48 = vld [vmem:[%s3647_s6 + $0xab0] sm:$0xff] }
  0x93   : > { %v955_v56 = vadd.f32 %v2684_v41, %v954_v46  ;;  %v588_v5 = vadd.f32 %v2512_v53, %v587_v49  ;;  %v2637_v41 = vld [vmem:[%s3647_s6 + $0x900] sm:$0xff]  ;;  %v2638_v53 = vld [vmem:[%s3647_s6 + $0x908] sm:$0xff] }
  0x94   : > { %v834_v30 = vadd.f32 %v2628_v13, %v833_v19  ;;  %v714_v34 = vadd.f32 %v2573_v18, %v713_v12  ;;  %v1075_v8 = vadd.f32 %v2739_v57, %v1074_v62  ;;  %v2741_v13 = vld [vmem:[%s3647_s6 + $0xc40] sm:$0xff]  ;;  %v270_v19 = vld [vmem:[%s3647_s6 + $0x130] sm:$0xff]  ;;  %v461_v20 = vadd.f32 %v2450_v4, %v460_v0  ;;  %v2746_v0 = vld [vmem:[%s3647_s6 + $0xc68] sm:$0xff] }
  0x95   : > { %v956_v2 = vadd.f32 %v2685_v51, %v955_v56  ;;  %v2578_v51 = vld [vmem:[%s3647_s6 + $0x728] sm:$0xff]  ;;  %v2639_v57 = vld [vmem:[%s3647_s6 + $0x910] sm:$0xff]  ;;  %v2516_v4 = vld [vmem:[%s3647_s6 + $0x538] sm:$0xff] }
  0x96   : > { %v835_v40 = vadd.f32 %v2629_v25, %v834_v30  ;;  %v715_v54 = vadd.f32 %v2574_v39, %v714_v34  ;;  %v1076_v18 = vadd.f32 %v2740_v3, %v1075_v8  ;;  %v589_v25 = vadd.f32 %v2513_v9, %v588_v5  ;;  %v271_v39 = vld [vmem:[%s3647_s6 + $0x138] sm:$0xff]  ;;  %v2453_v3 = vld [vmem:[%s3647_s6 + $0x340] sm:$0xff] }
  0x97   : > { %v957_v12 = vadd.f32 %v2686_v61, %v956_v2  ;;  %v333_v34 = vadd.f32 %v332_v14, %v270_v19  ;;  %v2797_v61 = vld [vmem:[%s3647_s6 + $0xe00] sm:$0xff]  ;;  %v2799_v2 = vld [vmem:[%s3647_s6 + $0xe10] sm:$0xff]  ;;  %v2800_v14 = vld [vmem:[%s3647_s6 + $0xe18] sm:$0xff] }
  0x98   : > { %v836_v50 = vadd.f32 %v2630_v35, %v835_v40  ;;  %v716_v10 = vadd.f32 %v2575_v59, %v715_v54  ;;  %v1077_v28 = vadd.f32 %v2741_v13, %v1076_v18  ;;  %v2577_v35 = vld [vmem:[%s3647_s6 + $0x720] sm:$0xff]  ;;  %v462_v40 = vadd.f32 %v2451_v24, %v461_v20  ;;  %v2692_v59 = vld [vmem:[%s3647_s6 + $0xab8] sm:$0xff]  ;;  %v2747_v13 = vld [vmem:[%s3647_s6 + $0xc70] sm:$0xff] }
  0x99   : > { %v958_v22 = vadd.f32 %v2687_v7, %v957_v12  ;;  %v590_v46 = vadd.f32 %v2514_v29, %v589_v25  ;;  %v334_v56 = vadd.f32 %v333_v34, %v271_v39  ;;  %v2693_v7 = vld [vmem:[%s3647_s6 + $0xac0] sm:$0xff]  ;;  %v2694_v19 = vld [vmem:[%s3647_s6 + $0xac8] sm:$0xff]  ;;  %v2748_v25 = vld [vmem:[%s3647_s6 + $0xc78] sm:$0xff] }
  0x9a   : > { %v837_v60 = vadd.f32 %v2631_v45, %v836_v50  ;;  %v717_v30 = vadd.f32 %v2576_v15, %v716_v10  ;;  %v1078_v38 = vadd.f32 %v2742_v23, %v1077_v28  ;;  %v2515_v45 = vld [vmem:[%s3647_s6 + $0x530] sm:$0xff]  ;;  %v272_v50 = vld [vmem:[%s3647_s6 + $0x140] sm:$0xff]  ;;  %v463_v62 = vadd.f32 %v2452_v44, %v462_v40  ;;  %v273_v15 = vld [vmem:[%s3647_s6 + $0x148] sm:$0xff] }
  0x9b   : > { %v959_v32 = vadd.f32 %v2688_v17, %v958_v22  ;;  %v591_v5 = vadd.f32 %v2515_v45, %v590_v46  ;;  %v2579_v17 = vld [vmem:[%s3647_s6 + $0x730] sm:$0xff]  ;;  %v2641_v23 = vld [vmem:[%s3647_s6 + $0x920] sm:$0xff] }
  0x9c   : > { %v838_v6 = vadd.f32 %v2632_v55, %v837_v60  ;;  %v1079_v49 = vadd.f32 %v2743_v33, %v1078_v38  ;;  %v718_v52 = vadd.f32 %v2577_v35, %v717_v30  ;;  %v2745_v55 = vld [vmem:[%s3647_s6 + $0xc60] sm:$0xff]  ;;  %v464_v22 = vadd.f32 %v2453_v3, %v463_v62  ;;  %v2642_v35 = vld [vmem:[%s3647_s6 + $0x928] sm:$0xff]  ;;  %v274_v39 = vld [vmem:[%s3647_s6 + $0x150] sm:$0xff] }
  0x9d   : > { %v960_v42 = vadd.f32 %v2689_v27, %v959_v32  ;;  %v2454_v27 = vld [vmem:[%s3647_s6 + $0x348] sm:$0xff]  ;;  %v2517_v28 = vld [vmem:[%s3647_s6 + $0x540] sm:$0xff]  ;;  %v592_v29 = vadd.f32 %v2516_v4, %v591_v5  ;;  %v275_v5 = vld [vmem:[%s3647_s6 + $0x158] sm:$0xff] }
  0x9e   : > { %v839_v16 = vadd.f32 %v2633_v1, %v838_v6  ;;  %v1080_v60 = vadd.f32 %v2744_v43, %v1079_v49  ;;  %v2798_v1 = vld [vmem:[%s3647_s6 + $0xe08] sm:$0xff]  ;;  %v719_v10 = vadd.f32 %v2578_v51, %v718_v52  ;;  %v2696_v43 = vld [vmem:[%s3647_s6 + $0xad8] sm:$0xff]  ;;  %v465_v46 = vadd.f32 %v2454_v27, %v464_v22  ;;  %v2455_v51 = vld [vmem:[%s3647_s6 + $0x350] sm:$0xff] }
  0x9f   : > { %v961_v54 = vadd.f32 %v2690_v37, %v960_v42  ;;  %v1199_v9 = vadd.f32 %v2798_v1, %v2797_v61  ;;  %v2749_v37 = vld [vmem:[%s3647_s6 + $0xc80] sm:$0xff]  ;;  %v2802_v38 = vld [vmem:[%s3647_s6 + $0xe28] sm:$0xff]  ;;  %v593_v52 = vadd.f32 %v2517_v28, %v592_v29  ;;  %v2804_v61 = vld [vmem:[%s3647_s6 + $0xe38] sm:$0xff] }
  0xa0   : > { %v840_v26 = vadd.f32 %v2634_v11, %v839_v16  ;;  %v1081_v8 = vadd.f32 %v2745_v55, %v1080_v60  ;;  %v2640_v11 = vld [vmem:[%s3647_s6 + $0x918] sm:$0xff]  ;;  %v335_v16 = vadd.f32 %v334_v56, %v272_v50  ;;  %v720_v34 = vadd.f32 %v2579_v17, %v719_v10  ;;  %v2750_v49 = vld [vmem:[%s3647_s6 + $0xc88] sm:$0xff]  ;;  %v2803_v50 = vld [vmem:[%s3647_s6 + $0xe30] sm:$0xff] }
  0xa1   : > { %v962_v63 = vadd.f32 %v2691_v48, %v961_v54  ;;  %v2697_v54 = vld [vmem:[%s3647_s6 + $0xae0] sm:$0xff]  ;;  %v2751_v60 = vld [vmem:[%s3647_s6 + $0xc90] sm:$0xff]  ;;  %v2456_v10 = vld [vmem:[%s3647_s6 + $0x358] sm:$0xff] }
  0xa2   : > { %v841_v36 = vadd.f32 %v2635_v21, %v840_v26  ;;  %v1082_v20 = vadd.f32 %v2746_v0, %v1081_v8  ;;  %v1200_v21 = vadd.f32 %v2799_v2, %v1199_v9  ;;  %v2801_v26 = vld [vmem:[%s3647_s6 + $0xe20] sm:$0xff]  ;;  %v336_v40 = vadd.f32 %v335_v16, %v273_v15  ;;  %v2644_v0 = vld [vmem:[%s3647_s6 + $0x938] sm:$0xff]  ;;  %v2698_v2 = vld [vmem:[%s3647_s6 + $0xae8] sm:$0xff] }
  0xa3   : > { %v963_v12 = vadd.f32 %v2692_v59, %v962_v63  ;;  %v2581_v63 = vld [vmem:[%s3647_s6 + $0x740] sm:$0xff]  ;;  %v2752_v8 = vld [vmem:[%s3647_s6 + $0xc98] sm:$0xff]  ;;  %v2519_v15 = vld [vmem:[%s3647_s6 + $0x550] sm:$0xff] }
  0xa4   : > { %v842_v47 = vadd.f32 %v2636_v31, %v841_v36  ;;  %v2695_v31 = vld [vmem:[%s3647_s6 + $0xad0] sm:$0xff]  ;;  %v1083_v32 = vadd.f32 %v2747_v13, %v1082_v20  ;;  %v1201_v33 = vadd.f32 %v2800_v14, %v1200_v21  ;;  %v337_v62 = vadd.f32 %v336_v40, %v274_v39  ;;  %v2805_v9 = vld [vmem:[%s3647_s6 + $0xe40] sm:$0xff]  ;;  %v2806_v20 = vld [vmem:[%s3647_s6 + $0xe48] sm:$0xff] }
  0xa5   : > { %v964_v24 = vadd.f32 %v2693_v7, %v963_v12  ;;  %v2699_v12 = vld [vmem:[%s3647_s6 + $0xaf0] sm:$0xff]  ;;  %v2582_v22 = vld [vmem:[%s3647_s6 + $0x748] sm:$0xff]  ;;  %v276_v27 = vld [vmem:[%s3647_s6 + $0x160] sm:$0xff] }
  0xa6   : > { %v843_v58 = vadd.f32 %v2637_v41, %v842_v47  ;;  %v2580_v41 = vld [vmem:[%s3647_s6 + $0x738] sm:$0xff]  ;;  %v1084_v44 = vadd.f32 %v2748_v25, %v1083_v32  ;;  %v1202_v45 = vadd.f32 %v2801_v26, %v1201_v33  ;;  %v2643_v47 = vld [vmem:[%s3647_s6 + $0x930] sm:$0xff]  ;;  %v338_v21 = vadd.f32 %v337_v62, %v275_v5  ;;  %v2457_v32 = vld [vmem:[%s3647_s6 + $0x360] sm:$0xff] }
  0xa7   : > { %v965_v36 = vadd.f32 %v2694_v19, %v964_v24  ;;  %v2753_v19 = vld [vmem:[%s3647_s6 + $0xca0] sm:$0xff]  ;;  %v2700_v24 = vld [vmem:[%s3647_s6 + $0xaf8] sm:$0xff] }
  0xa8   : > { %v844_v6 = vadd.f32 %v2638_v53, %v843_v58  ;;  %v1085_v55 = vadd.f32 %v2749_v37, %v1084_v44  ;;  %v1203_v56 = vadd.f32 %v2802_v38, %v1202_v45  ;;  %v721_v58 = vadd.f32 %v2580_v41, %v720_v34  ;;  %v2701_v34 = vld [vmem:[%s3647_s6 + $0xb00] sm:$0xff]  ;;  %v277_v37 = vld [vmem:[%s3647_s6 + $0x168] sm:$0xff]  ;;  %v2520_v38 = vld [vmem:[%s3647_s6 + $0x558] sm:$0xff] }
  0xa9   : > { %v966_v48 = vadd.f32 %v2695_v31, %v965_v36  ;;  %v2807_v31 = vld [vmem:[%s3647_s6 + $0xe50] sm:$0xff]  ;;  %v339_v44 = vadd.f32 %v338_v21, %v276_v27  ;;  %v2458_v45 = vld [vmem:[%s3647_s6 + $0x368] sm:$0xff] }
  0xaa   : > { %v845_v18 = vadd.f32 %v2639_v57, %v844_v6  ;;  %v2518_v57 = vld [vmem:[%s3647_s6 + $0x548] sm:$0xff]  ;;  %v1086_v3 = vadd.f32 %v2750_v49, %v1085_v55  ;;  %v1204_v4 = vadd.f32 %v2803_v50, %v1203_v56  ;;  %v466_v6 = vadd.f32 %v2455_v51, %v465_v46  ;;  %v2583_v46 = vld [vmem:[%s3647_s6 + $0x750] sm:$0xff]  ;;  %v2809_v55 = vld [vmem:[%s3647_s6 + $0xe60] sm:$0xff] }
  0xab   : > { %v967_v59 = vadd.f32 %v2696_v43, %v966_v48  ;;  %v722_v16 = vadd.f32 %v2581_v63, %v721_v58  ;;  %v2808_v43 = vld [vmem:[%s3647_s6 + $0xe58] sm:$0xff]  ;;  %v2702_v48 = vld [vmem:[%s3647_s6 + $0xb08] sm:$0xff]  ;;  %v340_v5 = vadd.f32 %v339_v44, %v277_v37  ;;  %v2759_v27 = vld [vmem:[%s3647_s6 + $0xcd0] sm:$0xff] }
  0xac   : > { %v846_v30 = vadd.f32 %v2640_v11, %v845_v18  ;;  %v594_v11 = vadd.f32 %v2518_v57, %v593_v52  ;;  %v1087_v13 = vadd.f32 %v2751_v60, %v1086_v3  ;;  %v1205_v14 = vadd.f32 %v2804_v61, %v1204_v4  ;;  %v2521_v52 = vld [vmem:[%s3647_s6 + $0x560] sm:$0xff]  ;;  %v2703_v57 = vld [vmem:[%s3647_s6 + $0xb10] sm:$0xff]  ;;  %v1268_v61 = vld [vmem:[%s3653_s18 + $0x8] sm:$0xff] }
  0xad   : > { %v968_v7 = vadd.f32 %v2697_v54, %v967_v59  ;;  %v467_v28 = vadd.f32 %v2456_v10, %v466_v6  ;;  %v723_v39 = vadd.f32 %v2582_v22, %v722_v16  ;;  %v2756_v54 = vld [vmem:[%s3647_s6 + $0xcb8] sm:$0xff]  ;;  %v1267_v60 = vld [vmem:[%s3653_s18] sm:$0xff]  ;;  %v1269_v3 = vld [vmem:[%s3653_s18 + $0x10] sm:$0xff] }
  0xae   : > { %v847_v42 = vadd.f32 %v2641_v23, %v846_v30  ;;  %v2645_v23 = vld [vmem:[%s3647_s6 + $0x940] sm:$0xff]  ;;  %v1088_v25 = vadd.f32 %v2752_v8, %v1087_v13  ;;  %v1206_v26 = vadd.f32 %v2805_v9, %v1205_v14  ;;  %v2754_v30 = vld [vmem:[%s3647_s6 + $0xca8] sm:$0xff]  ;;  %v595_v33 = vadd.f32 %v2519_v15, %v594_v11  ;;  %v2584_v6 = vld [vmem:[%s3647_s6 + $0x758] sm:$0xff] }
  0xaf   : > { %v969_v18 = vadd.f32 %v2698_v2, %v968_v7  ;;  %v468_v51 = vadd.f32 %v2457_v32, %v467_v28  ;;  %v724_v62 = vadd.f32 %v2583_v46, %v723_v39  ;;  %v2810_v2 = vld [vmem:[%s3647_s6 + $0xe68] sm:$0xff]  ;;  %v1331_v4 = vadd.f32 %v1268_v61, %v1267_v60  ;;  %v2647_v7 = vld [vmem:[%s3647_s6 + $0x950] sm:$0xff]  ;;  %v2704_v8 = vld [vmem:[%s3647_s6 + $0xb18] sm:$0xff] }
  0xb0   : > { %v848_v53 = vadd.f32 %v2642_v35, %v847_v42  ;;  %v1089_v35 = vadd.f32 %v2753_v19, %v1088_v25  ;;  %v1207_v36 = vadd.f32 %v2806_v20, %v1206_v26  ;;  %v2755_v42 = vld [vmem:[%s3647_s6 + $0xcb0] sm:$0xff]  ;;  %v596_v56 = vadd.f32 %v2520_v38, %v595_v33  ;;  %v2758_v14 = vld [vmem:[%s3647_s6 + $0xcc8] sm:$0xff]  ;;  %v2705_v19 = vld [vmem:[%s3647_s6 + $0xb20] sm:$0xff] }
  0xb1   : > { %v970_v29 = vadd.f32 %v2699_v12, %v969_v18  ;;  %v278_v11 = vld [vmem:[%s3647_s6 + $0x170] sm:$0xff]  ;;  %v469_v12 = vadd.f32 %v2458_v45, %v468_v51  ;;  %v1332_v16 = vadd.f32 %v1331_v4, %v1269_v3  ;;  %v1270_v22 = vld [vmem:[%s3653_s18 + $0x18] sm:$0xff]  ;;  %v2706_v32 = vld [vmem:[%s3647_s6 + $0xb28] sm:$0xff] }
  0xb2   : > { %v849_v1 = vadd.f32 %v2643_v47, %v848_v53  ;;  %v2646_v47 = vld [vmem:[%s3647_s6 + $0x948] sm:$0xff]  ;;  %v1090_v49 = vadd.f32 %v2754_v30, %v1089_v35  ;;  %v1208_v50 = vadd.f32 %v2807_v31, %v1207_v36  ;;  %v2811_v15 = vld [vmem:[%s3647_s6 + $0xe70] sm:$0xff]  ;;  %v597_v18 = vadd.f32 %v2521_v52, %v596_v56  ;;  %v2812_v28 = vld [vmem:[%s3647_s6 + $0xe78] sm:$0xff] }
  0xb3   : > { %v971_v41 = vadd.f32 %v2700_v24, %v970_v29  ;;  %v725_v24 = vadd.f32 %v2584_v6, %v724_v62  ;;  %v341_v29 = vadd.f32 %v340_v5, %v278_v11  ;;  %v2585_v30 = vld [vmem:[%s3647_s6 + $0x760] sm:$0xff]  ;;  %v2648_v31 = vld [vmem:[%s3647_s6 + $0x958] sm:$0xff]  ;;  %v2814_v52 = vld [vmem:[%s3647_s6 + $0xe88] sm:$0xff] }
  0xb4   : > { %v850_v17 = vadd.f32 %v2644_v0, %v849_v1  ;;  %v1091_v58 = vadd.f32 %v2755_v42, %v1090_v49  ;;  %v1209_v59 = vadd.f32 %v2808_v43, %v1208_v50  ;;  %v2757_v1 = vld [vmem:[%s3647_s6 + $0xcc0] sm:$0xff]  ;;  %v279_v35 = vld [vmem:[%s3647_s6 + $0x178] sm:$0xff]  ;;  %v2707_v43 = vld [vmem:[%s3647_s6 + $0xb30] sm:$0xff] }
  0xb5   : > { %v972_v53 = vadd.f32 %v2701_v34, %v971_v41  ;;  %v2760_v38 = vld [vmem:[%s3647_s6 + $0xcd8] sm:$0xff]  ;;  %v2813_v39 = vld [vmem:[%s3647_s6 + $0xe80] sm:$0xff]  ;;  %v2762_v62 = vld [vmem:[%s3647_s6 + $0xce8] sm:$0xff] }
  0xb6   : > { %v851_v40 = vadd.f32 %v2645_v23, %v850_v17  ;;  %v1092_v9 = vadd.f32 %v2756_v54, %v1091_v58  ;;  %v1210_v10 = vadd.f32 %v2809_v55, %v1209_v59  ;;  %v2459_v17 = vld [vmem:[%s3647_s6 + $0x370] sm:$0xff]  ;;  %v2522_v23 = vld [vmem:[%s3647_s6 + $0x568] sm:$0xff]  ;;  %v2460_v41 = vld [vmem:[%s3647_s6 + $0x378] sm:$0xff] }
  0xb7   : > { %v973_v0 = vadd.f32 %v2702_v48, %v972_v53  ;;  %v470_v36 = vadd.f32 %v2459_v17, %v469_v12  ;;  %v598_v42 = vadd.f32 %v2522_v23, %v597_v18  ;;  %v1271_v46 = vld [vmem:[%s3653_s18 + $0x20] sm:$0xff]  ;;  %v726_v48 = vadd.f32 %v2585_v30, %v725_v24  ;;  %v2586_v54 = vld [vmem:[%s3647_s6 + $0x768] sm:$0xff]  ;;  %v2708_v56 = vld [vmem:[%s3647_s6 + $0xb38] sm:$0xff] }
  0xb8   : > { %v852_v63 = vadd.f32 %v2646_v47, %v851_v40  ;;  %v1093_v20 = vadd.f32 %v2757_v1, %v1092_v9  ;;  %v1211_v21 = vadd.f32 %v2810_v2, %v1210_v10  ;;  %v1333_v40 = vadd.f32 %v1332_v16, %v1270_v22  ;;  %v2523_v47 = vld [vmem:[%s3647_s6 + $0x570] sm:$0xff]  ;;  %v2761_v51 = vld [vmem:[%s3647_s6 + $0xce0] sm:$0xff]  ;;  %v1272_v6 = vld [vmem:[%s3653_s18 + $0x28] sm:$0xff] }
  0xb9   : > { %v974_v13 = vadd.f32 %v2703_v57, %v973_v0  ;;  %v342_v53 = vadd.f32 %v341_v29, %v279_v35  ;;  %v2649_v55 = vld [vmem:[%s3647_s6 + $0x960] sm:$0xff]  ;;  %v471_v60 = vadd.f32 %v2460_v41, %v470_v36  ;;  %v599_v2 = vadd.f32 %v2523_v47, %v598_v42  ;;  %v2763_v11 = vld [vmem:[%s3647_s6 + $0xcf0] sm:$0xff]  ;;  %v2816_v12 = vld [vmem:[%s3647_s6 + $0xe98] sm:$0xff] }
  0xba   : > { %v853_v25 = vadd.f32 %v2647_v7, %v852_v63  ;;  %v1094_v33 = vadd.f32 %v2758_v14, %v1093_v20  ;;  %v1212_v34 = vadd.f32 %v2811_v15, %v1211_v21  ;;  %v280_v59 = vld [vmem:[%s3647_s6 + $0x180] sm:$0xff]  ;;  %v2815_v63 = vld [vmem:[%s3647_s6 + $0xe90] sm:$0xff]  ;;  %v1334_v0 = vadd.f32 %v1333_v40, %v1271_v46  ;;  %v2524_v7 = vld [vmem:[%s3647_s6 + $0x578] sm:$0xff] }
  0xbb   : > { %v975_v26 = vadd.f32 %v2704_v8, %v974_v13  ;;  %v2461_v1 = vld [vmem:[%s3647_s6 + $0x380] sm:$0xff]  ;;  %v727_v8 = vadd.f32 %v2586_v54, %v726_v48  ;;  %v343_v13 = vadd.f32 %v342_v53, %v280_v59  ;;  %v2587_v14 = vld [vmem:[%s3647_s6 + $0x770] sm:$0xff]  ;;  %v2650_v15 = vld [vmem:[%s3647_s6 + $0x968] sm:$0xff] }
  0xbc   : > { %v1095_v44 = vadd.f32 %v2759_v27, %v1094_v33  ;;  %v1213_v45 = vadd.f32 %v2812_v28, %v1212_v34  ;;  %v854_v49 = vadd.f32 %v2648_v31, %v853_v25  ;;  %v2709_v3 = vld [vmem:[%s3647_s6 + $0xb40] sm:$0xff]  ;;  %v2710_v16 = vld [vmem:[%s3647_s6 + $0xb48] sm:$0xff]  ;;  %v472_v20 = vadd.f32 %v2461_v1, %v471_v60  ;;  %v2764_v22 = vld [vmem:[%s3647_s6 + $0xcf8] sm:$0xff] }
  0xbd   : > { %v976_v37 = vadd.f32 %v2705_v19, %v975_v26  ;;  %v281_v19 = vld [vmem:[%s3647_s6 + $0x188] sm:$0xff]  ;;  %v2817_v23 = vld [vmem:[%s3647_s6 + $0xea0] sm:$0xff]  ;;  %v1335_v24 = vadd.f32 %v1334_v0, %v1272_v6  ;;  %v600_v26 = vadd.f32 %v2524_v7, %v599_v2  ;;  %v2711_v27 = vld [vmem:[%s3647_s6 + $0xb50] sm:$0xff]  ;;  %v728_v33 = vadd.f32 %v2587_v14, %v727_v8 }
  0xbe   : > { %v1096_v57 = vadd.f32 %v2760_v38, %v1095_v44  ;;  %v1214_v58 = vadd.f32 %v2813_v39, %v1213_v45  ;;  %v855_v9 = vadd.f32 %v2649_v55, %v854_v49  ;;  %v2462_v25 = vld [vmem:[%s3647_s6 + $0x388] sm:$0xff]  ;;  %v1273_v30 = vld [vmem:[%s3653_s18 + $0x30] sm:$0xff]  ;;  %v2765_v36 = vld [vmem:[%s3647_s6 + $0xd00] sm:$0xff]  ;;  %v344_v38 = vadd.f32 %v343_v13, %v281_v19 }
  0xbf   : > { %v977_v50 = vadd.f32 %v2706_v32, %v976_v37  ;;  %v282_v31 = vld [vmem:[%s3647_s6 + $0x190] sm:$0xff]  ;;  %v2525_v32 = vld [vmem:[%s3647_s6 + $0x580] sm:$0xff]  ;;  %v2818_v37 = vld [vmem:[%s3647_s6 + $0xea8] sm:$0xff]  ;;  %v473_v45 = vadd.f32 %v2462_v25, %v472_v20 }
  0xc0   : > { %v1097_v4 = vadd.f32 %v2761_v51, %v1096_v57  ;;  %v1215_v5 = vadd.f32 %v2814_v52, %v1214_v58  ;;  %v856_v34 = vadd.f32 %v2650_v15, %v855_v9  ;;  %v2463_v39 = vld [vmem:[%s3647_s6 + $0x390] sm:$0xff]  ;;  %v2588_v40 = vld [vmem:[%s3647_s6 + $0x778] sm:$0xff]  ;;  %v2526_v46 = vld [vmem:[%s3647_s6 + $0x588] sm:$0xff]  ;;  %v601_v51 = vadd.f32 %v2525_v32, %v600_v26 }
  0xc1   : > { %v978_v61 = vadd.f32 %v2707_v43, %v977_v50  ;;  %v2651_v41 = vld [vmem:[%s3647_s6 + $0x970] sm:$0xff]  ;;  %v2712_v42 = vld [vmem:[%s3647_s6 + $0xb58] sm:$0xff]  ;;  %v2766_v48 = vld [vmem:[%s3647_s6 + $0xd08] sm:$0xff]  ;;  %v1336_v50 = vadd.f32 %v1335_v24, %v1273_v30  ;;  %v729_v59 = vadd.f32 %v2588_v40, %v728_v33  ;;  %v345_v1 = vadd.f32 %v344_v38, %v282_v31 }
  0xc2   : > { %v1098_v17 = vadd.f32 %v2762_v62, %v1097_v4  ;;  %v1216_v18 = vadd.f32 %v2815_v63, %v1215_v5  ;;  %v2819_v49 = vld [vmem:[%s3647_s6 + $0xeb0] sm:$0xff]  ;;  %v2589_v52 = vld [vmem:[%s3647_s6 + $0x780] sm:$0xff]  ;;  %v2652_v53 = vld [vmem:[%s3647_s6 + $0x978] sm:$0xff]  ;;  %v857_v60 = vadd.f32 %v2651_v41, %v856_v34  ;;  %v474_v8 = vadd.f32 %v2463_v39, %v473_v45 }
  0xc3   : > { %v979_v10 = vadd.f32 %v2708_v56, %v978_v61  ;;  %v2713_v54 = vld [vmem:[%s3647_s6 + $0xb60] sm:$0xff]  ;;  %v1274_v57 = vld [vmem:[%s3653_s18 + $0x38] sm:$0xff]  ;;  %v2767_v62 = vld [vmem:[%s3647_s6 + $0xd10] sm:$0xff]  ;;  %v602_v14 = vadd.f32 %v2526_v46, %v601_v51 }
  0xc4   : > { %v1099_v28 = vadd.f32 %v2763_v11, %v1098_v17  ;;  %v1217_v29 = vadd.f32 %v2816_v12, %v1216_v18  ;;  %v283_v58 = vld [vmem:[%s3647_s6 + $0x198] sm:$0xff]  ;;  %v2861_v0 = vld [vmem:[%s3653_s18 + $0x200] sm:$0xff]  ;;  %v2714_v2 = vld [vmem:[%s3647_s6 + $0xb68] sm:$0xff]  ;;  %v1337_v12 = vadd.f32 %v1336_v50, %v1274_v57 }
  0xc5   : > { %v980_v21 = vadd.f32 %v2709_v3, %v979_v10  ;;  %v2820_v63 = vld [vmem:[%s3647_s6 + $0xeb8] sm:$0xff]  ;;  %v2862_v5 = vld [vmem:[%s3653_s18 + $0x208] sm:$0xff]  ;;  %v2863_v6 = vld [vmem:[%s3653_s18 + $0x210] sm:$0xff] }
  0xc6   : > { %v1100_v43 = vadd.f32 %v2764_v22, %v1099_v28  ;;  %v1218_v44 = vadd.f32 %v2817_v23, %v1217_v29  ;;  %v2464_v7 = vld [vmem:[%s3647_s6 + $0x398] sm:$0xff]  ;;  %v2821_v11 = vld [vmem:[%s3647_s6 + $0xec0] sm:$0xff]  ;;  %v1460_v13 = vadd.f32 %v2862_v5, %v2861_v0  ;;  %v2715_v15 = vld [vmem:[%s3647_s6 + $0xb70] sm:$0xff]  ;;  %v858_v22 = vadd.f32 %v2652_v53, %v857_v60 }
  0xc7   : > { %v981_v35 = vadd.f32 %v2710_v16, %v980_v21  ;;  %v2768_v10 = vld [vmem:[%s3647_s6 + $0xd18] sm:$0xff]  ;;  %v1275_v18 = vld [vmem:[%s3653_s18 + $0x40] sm:$0xff]  ;;  %v2527_v20 = vld [vmem:[%s3647_s6 + $0x590] sm:$0xff]  ;;  %v730_v21 = vadd.f32 %v2589_v52, %v729_v59  ;;  %v346_v28 = vadd.f32 %v345_v1, %v283_v58  ;;  %v475_v34 = vadd.f32 %v2464_v7, %v474_v8 }
  0xc8   : > { %v1101_v55 = vadd.f32 %v2765_v36, %v1100_v43  ;;  %v1219_v56 = vadd.f32 %v2818_v37, %v1218_v44  ;;  %v2864_v19 = vld [vmem:[%s3653_s18 + $0x218] sm:$0xff]  ;;  %v2769_v24 = vld [vmem:[%s3647_s6 + $0xd20] sm:$0xff]  ;;  %v2822_v25 = vld [vmem:[%s3647_s6 + $0xec8] sm:$0xff]  ;;  %v1461_v26 = vadd.f32 %v2863_v6, %v1460_v13  ;;  %v1338_v39 = vadd.f32 %v1337_v12, %v1275_v18 }
  0xc9   : > { %v982_v47 = vadd.f32 %v2711_v27, %v981_v35  ;;  %v284_v27 = vld [vmem:[%s3647_s6 + $0x1a0] sm:$0xff]  ;;  %v2590_v29 = vld [vmem:[%s3647_s6 + $0x788] sm:$0xff]  ;;  %v2716_v35 = vld [vmem:[%s3647_s6 + $0xb78] sm:$0xff] }
  0xca   : > { %v1102_v3 = vadd.f32 %v2766_v48, %v1101_v55  ;;  %v1220_v4 = vadd.f32 %v2819_v49, %v1219_v56  ;;  %v2653_v30 = vld [vmem:[%s3647_s6 + $0x980] sm:$0xff]  ;;  %v2770_v37 = vld [vmem:[%s3647_s6 + $0xd28] sm:$0xff]  ;;  %v2823_v38 = vld [vmem:[%s3647_s6 + $0xed0] sm:$0xff]  ;;  %v1462_v40 = vadd.f32 %v2864_v19, %v1461_v26  ;;  %v731_v48 = vadd.f32 %v2590_v29, %v730_v21 }
  0xcb   : > { %v983_v61 = vadd.f32 %v2712_v42, %v982_v47  ;;  %v2865_v33 = vld [vmem:[%s3653_s18 + $0x220] sm:$0xff]  ;;  %v1276_v44 = vld [vmem:[%s3653_s18 + $0x48] sm:$0xff]  ;;  %v2528_v46 = vld [vmem:[%s3647_s6 + $0x598] sm:$0xff]  ;;  %v603_v47 = vadd.f32 %v2527_v20, %v602_v14  ;;  %v859_v49 = vadd.f32 %v2653_v30, %v858_v22  ;;  %v347_v60 = vadd.f32 %v346_v28, %v284_v27 }
  0xcc   : > { %v1103_v16 = vadd.f32 %v2767_v62, %v1102_v3  ;;  %v1221_v17 = vadd.f32 %v2820_v63, %v1220_v4  ;;  %v2465_v41 = vld [vmem:[%s3647_s6 + $0x3a0] sm:$0xff]  ;;  %v2866_v45 = vld [vmem:[%s3653_s18 + $0x228] sm:$0xff]  ;;  %v2771_v50 = vld [vmem:[%s3647_s6 + $0xd30] sm:$0xff]  ;;  %v1463_v52 = vadd.f32 %v2865_v33, %v1462_v40  ;;  %v1339_v1 = vadd.f32 %v1338_v39, %v1276_v44 }
  0xcd   : > { %v984_v9 = vadd.f32 %v2713_v54, %v983_v61  ;;  %v2824_v51 = vld [vmem:[%s3647_s6 + $0xed8] sm:$0xff]  ;;  %v285_v53 = vld [vmem:[%s3647_s6 + $0x1a8] sm:$0xff]  ;;  %v2591_v54 = vld [vmem:[%s3647_s6 + $0x790] sm:$0xff]  ;;  %v476_v61 = vadd.f32 %v2465_v41, %v475_v34 }
  0xce   : > { %v1104_v31 = vadd.f32 %v2768_v10, %v1103_v16  ;;  %v1222_v32 = vadd.f32 %v2821_v11, %v1221_v17  ;;  %v2654_v55 = vld [vmem:[%s3647_s6 + $0x988] sm:$0xff]  ;;  %v2867_v59 = vld [vmem:[%s3653_s18 + $0x230] sm:$0xff]  ;;  %v2717_v62 = vld [vmem:[%s3647_s6 + $0xb80] sm:$0xff]  ;;  %v732_v10 = vadd.f32 %v2591_v54, %v731_v48  ;;  %v348_v22 = vadd.f32 %v347_v60, %v285_v53 }
  0xcf   : > { %v985_v23 = vadd.f32 %v2714_v2, %v984_v9  ;;  %v2772_v63 = vld [vmem:[%s3647_s6 + $0xd38] sm:$0xff]  ;;  %v2825_v0 = vld [vmem:[%s3647_s6 + $0xee0] sm:$0xff]  ;;  %v1464_v2 = vadd.f32 %v2866_v45, %v1463_v52  ;;  %v2466_v3 = vld [vmem:[%s3647_s6 + $0x3a8] sm:$0xff]  ;;  %v604_v9 = vadd.f32 %v2528_v46, %v603_v47  ;;  %v860_v11 = vadd.f32 %v2654_v55, %v859_v49 }
  0xd0   : > { %v1105_v42 = vadd.f32 %v2769_v24, %v1104_v31  ;;  %v1223_v43 = vadd.f32 %v2822_v25, %v1222_v32  ;;  %v1277_v6 = vld [vmem:[%s3653_s18 + $0x50] sm:$0xff]  ;;  %v2868_v7 = vld [vmem:[%s3653_s18 + $0x238] sm:$0xff]  ;;  %v2529_v8 = vld [vmem:[%s3647_s6 + $0x5a0] sm:$0xff] }
  0xd1   : > { %v986_v36 = vadd.f32 %v2715_v15, %v985_v23  ;;  %v2773_v12 = vld [vmem:[%s3647_s6 + $0xd40] sm:$0xff]  ;;  %v2826_v13 = vld [vmem:[%s3647_s6 + $0xee8] sm:$0xff]  ;;  %v1465_v14 = vadd.f32 %v2867_v59, %v1464_v2  ;;  %v286_v15 = vld [vmem:[%s3647_s6 + $0x1b0] sm:$0xff]  ;;  %v477_v23 = vadd.f32 %v2466_v3, %v476_v61  ;;  %v1340_v27 = vadd.f32 %v1339_v1, %v1277_v6 }
  0xd2   : > { %v1106_v57 = vadd.f32 %v2770_v37, %v1105_v42  ;;  %v1224_v58 = vadd.f32 %v2823_v38, %v1223_v43  ;;  %v2592_v16 = vld [vmem:[%s3647_s6 + $0x798] sm:$0xff]  ;;  %v2655_v17 = vld [vmem:[%s3647_s6 + $0x990] sm:$0xff]  ;;  %v2869_v21 = vld [vmem:[%s3653_s18 + $0x240] sm:$0xff]  ;;  %v349_v49 = vadd.f32 %v348_v22, %v286_v15 }
  0xd3   : > { %v987_v56 = vadd.f32 %v2716_v35, %v986_v36  ;;  %v2718_v24 = vld [vmem:[%s3647_s6 + $0xb88] sm:$0xff]  ;;  %v2827_v26 = vld [vmem:[%s3647_s6 + $0xef0] sm:$0xff]  ;;  %v1466_v28 = vadd.f32 %v2868_v7, %v1465_v14  ;;  %v1278_v32 = vld [vmem:[%s3653_s18 + $0x58] sm:$0xff]  ;;  %v605_v35 = vadd.f32 %v2529_v8, %v604_v9  ;;  %v733_v36 = vadd.f32 %v2592_v16, %v732_v10 }
  0xd4   : > { %v1107_v4 = vadd.f32 %v2771_v50, %v1106_v57  ;;  %v1225_v5 = vadd.f32 %v2824_v51, %v1224_v58  ;;  %v2774_v25 = vld [vmem:[%s3647_s6 + $0xd48] sm:$0xff]  ;;  %v2467_v29 = vld [vmem:[%s3647_s6 + $0x3b0] sm:$0xff]  ;;  %v861_v37 = vadd.f32 %v2655_v17, %v860_v11  ;;  %v2828_v39 = vld [vmem:[%s3647_s6 + $0xef8] sm:$0xff]  ;;  %v1341_v54 = vadd.f32 %v1340_v27, %v1278_v32 }
  0xd5   : > { %v988_v18 = vadd.f32 %v2717_v62, %v987_v56  ;;  %v2870_v33 = vld [vmem:[%s3653_s18 + $0x248] sm:$0xff]  ;;  %v2775_v38 = vld [vmem:[%s3647_s6 + $0xd50] sm:$0xff]  ;;  %v1467_v40 = vadd.f32 %v2869_v21, %v1466_v28  ;;  %v287_v41 = vld [vmem:[%s3647_s6 + $0x1b8] sm:$0xff]  ;;  %v478_v50 = vadd.f32 %v2467_v29, %v477_v23 }
  0xd6   : > { %v1108_v19 = vadd.f32 %v2772_v63, %v1107_v4  ;;  %v1226_v20 = vadd.f32 %v2825_v0, %v1225_v5  ;;  %v2530_v34 = vld [vmem:[%s3647_s6 + $0x5a8] sm:$0xff]  ;;  %v2468_v42 = vld [vmem:[%s3647_s6 + $0x3b8] sm:$0xff]  ;;  %v2593_v43 = vld [vmem:[%s3647_s6 + $0x7a0] sm:$0xff]  ;;  %v350_v14 = vadd.f32 %v349_v49, %v287_v41 }
  0xd7   : > { %v2656_v44 = vld [vmem:[%s3647_s6 + $0x998] sm:$0xff]  ;;  %v989_v45 = vadd.f32 %v2718_v24, %v988_v18  ;;  %v2871_v48 = vld [vmem:[%s3653_s18 + $0x250] sm:$0xff]  ;;  %v2829_v53 = vld [vmem:[%s3647_s6 + $0xf00] sm:$0xff]  ;;  %v1468_v55 = vadd.f32 %v2870_v33, %v1467_v40  ;;  %v606_v63 = vadd.f32 %v2530_v34, %v605_v35  ;;  %v734_v0 = vadd.f32 %v2593_v43, %v733_v36 }
  0xd8   : > { %v1109_v30 = vadd.f32 %v2773_v12, %v1108_v19  ;;  %v1227_v31 = vadd.f32 %v2826_v13, %v1226_v20  ;;  %v2719_v51 = vld [vmem:[%s3647_s6 + $0xb90] sm:$0xff]  ;;  %v2776_v52 = vld [vmem:[%s3647_s6 + $0xd58] sm:$0xff]  ;;  %v2594_v57 = vld [vmem:[%s3647_s6 + $0x7a8] sm:$0xff]  ;;  %v862_v1 = vadd.f32 %v2656_v44, %v861_v37  ;;  %v479_v15 = vadd.f32 %v2468_v42, %v478_v50 }
  0xd9   : > { %v2531_v56 = vld [vmem:[%s3647_s6 + $0x5b0] sm:$0xff]  ;;  %v2657_v58 = vld [vmem:[%s3647_s6 + $0x9a0] sm:$0xff]  ;;  %v2872_v62 = vld [vmem:[%s3653_s18 + $0x258] sm:$0xff]  ;;  %v1469_v5 = vadd.f32 %v2871_v48, %v1468_v55  ;;  %v990_v8 = vadd.f32 %v2719_v51, %v989_v45  ;;  %v735_v28 = vadd.f32 %v2594_v57, %v734_v0 }
  0xda   : > { %v1110_v46 = vadd.f32 %v2774_v25, %v1109_v30  ;;  %v1228_v47 = vadd.f32 %v2827_v26, %v1227_v31  ;;  %v1279_v61 = vld [vmem:[%s3653_s18 + $0x60] sm:$0xff]  ;;  %v2720_v2 = vld [vmem:[%s3647_s6 + $0xb98] sm:$0xff]  ;;  %v2830_v4 = vld [vmem:[%s3647_s6 + $0xf08] sm:$0xff]  ;;  %v607_v27 = vadd.f32 %v2531_v56, %v606_v63  ;;  %v863_v29 = vadd.f32 %v2657_v58, %v862_v1 }
  0xdb   : > { %v2777_v3 = vld [vmem:[%s3647_s6 + $0xd60] sm:$0xff]  ;;  %v2778_v9 = vld [vmem:[%s3647_s6 + $0xd68] sm:$0xff]  ;;  %v2831_v11 = vld [vmem:[%s3647_s6 + $0xf10] sm:$0xff]  ;;  %v1342_v16 = vadd.f32 %v1341_v54, %v1279_v61  ;;  %v1470_v17 = vadd.f32 %v2872_v62, %v1469_v5 }
  0xdc   : > { %v1111_v59 = vadd.f32 %v2775_v38, %v1110_v46  ;;  %v1229_v60 = vadd.f32 %v2828_v39, %v1228_v47  ;;  %v288_v6 = vld [vmem:[%s3647_s6 + $0x1c0] sm:$0xff]  ;;  %v2926_v19 = vld [vmem:[%s3653_s18 + $0x408] sm:$0xff]  ;;  %v2927_v20 = vld [vmem:[%s3653_s18 + $0x410] sm:$0xff]  ;;  %v991_v39 = vadd.f32 %v2720_v2, %v990_v8 }
  0xdd   : > { %v2469_v7 = vld [vmem:[%s3647_s6 + $0x3c0] sm:$0xff]  ;;  %v2532_v21 = vld [vmem:[%s3647_s6 + $0x5b8] sm:$0xff]  ;;  %v2779_v22 = vld [vmem:[%s3647_s6 + $0xd70] sm:$0xff]  ;;  %v351_v43 = vadd.f32 %v350_v14, %v288_v6 }
  0xde   : > { %v1112_v10 = vadd.f32 %v2776_v52, %v1111_v59  ;;  %v1230_v12 = vadd.f32 %v2829_v53, %v1229_v60  ;;  %v2873_v13 = vld [vmem:[%s3653_s18 + $0x260] sm:$0xff]  ;;  %v1280_v25 = vld [vmem:[%s3653_s18 + $0x68] sm:$0xff]  ;;  %v2832_v30 = vld [vmem:[%s3647_s6 + $0xf18] sm:$0xff]  ;;  %v480_v44 = vadd.f32 %v2469_v7, %v479_v15  ;;  %v608_v56 = vadd.f32 %v2532_v21, %v607_v27 }
  0xdf   : > { %v2925_v18 = vld [vmem:[%s3653_s18 + $0x400] sm:$0xff]  ;;  %v2874_v31 = vld [vmem:[%s3653_s18 + $0x268] sm:$0xff]  ;;  %v1471_v32 = vadd.f32 %v2873_v13, %v1470_v17  ;;  %v2928_v33 = vld [vmem:[%s3653_s18 + $0x418] sm:$0xff]  ;;  %v1343_v47 = vadd.f32 %v1342_v16, %v1280_v25 }
  0xe0   : > { %v1113_v23 = vadd.f32 %v2777_v3, %v1112_v10  ;;  %v1231_v24 = vadd.f32 %v2830_v4, %v1230_v12  ;;  %v1589_v26 = vadd.f32 %v2926_v19, %v2925_v18  ;;  %v289_v34 = vld [vmem:[%s3647_s6 + $0x1c8] sm:$0xff]  ;;  %v2595_v36 = vld [vmem:[%s3647_s6 + $0x7b0] sm:$0xff]  ;;  %v2721_v38 = vld [vmem:[%s3647_s6 + $0xba0] sm:$0xff] }
  0xe1   : > { %v2470_v35 = vld [vmem:[%s3647_s6 + $0x3c8] sm:$0xff]  ;;  %v2780_v45 = vld [vmem:[%s3647_s6 + $0xd78] sm:$0xff]  ;;  %v2833_v46 = vld [vmem:[%s3647_s6 + $0xf20] sm:$0xff]  ;;  %v1472_v54 = vadd.f32 %v2874_v31, %v1471_v32  ;;  %v736_v57 = vadd.f32 %v2595_v36, %v735_v28  ;;  %v992_v3 = vadd.f32 %v2721_v38, %v991_v39  ;;  %v352_v7 = vadd.f32 %v351_v43, %v289_v34 }
  0xe2   : > { %v2658_v37 = vld [vmem:[%s3647_s6 + $0x9a8] sm:$0xff]  ;;  %v1114_v40 = vadd.f32 %v2778_v9, %v1113_v23  ;;  %v1232_v41 = vadd.f32 %v2831_v11, %v1231_v24  ;;  %v1590_v42 = vadd.f32 %v2927_v20, %v1589_v26  ;;  %v2929_v48 = vld [vmem:[%s3653_s18 + $0x420] sm:$0xff]  ;;  %v1281_v53 = vld [vmem:[%s3653_s18 + $0x70] sm:$0xff]  ;;  %v481_v8 = vadd.f32 %v2470_v35, %v480_v44 }
  0xe3   : > { %v2533_v49 = vld [vmem:[%s3647_s6 + $0x5c0] sm:$0xff]  ;;  %v864_v58 = vadd.f32 %v2658_v37, %v863_v29  ;;  %v2834_v59 = vld [vmem:[%s3647_s6 + $0xf28] sm:$0xff]  ;;  %v2875_v60 = vld [vmem:[%s3653_s18 + $0x270] sm:$0xff]  ;;  %v1344_v11 = vadd.f32 %v1343_v47, %v1281_v53 }
  0xe4   : > { %v2781_v50 = vld [vmem:[%s3647_s6 + $0xd80] sm:$0xff]  ;;  %v1115_v51 = vadd.f32 %v2779_v22, %v1114_v40  ;;  %v1233_v52 = vadd.f32 %v2832_v30, %v1232_v41  ;;  %v1591_v55 = vadd.f32 %v2928_v33, %v1590_v42  ;;  %v2930_v61 = vld [vmem:[%s3653_s18 + $0x428] sm:$0xff]  ;;  %v290_v62 = vld [vmem:[%s3647_s6 + $0x1d0] sm:$0xff]  ;;  %v1473_v18 = vadd.f32 %v2875_v60, %v1472_v54 }
  0xe5   : > { %v2471_v63 = vld [vmem:[%s3647_s6 + $0x3d0] sm:$0xff]  ;;  %v2596_v0 = vld [vmem:[%s3647_s6 + $0x7b8] sm:$0xff]  ;;  %v2722_v2 = vld [vmem:[%s3647_s6 + $0xba8] sm:$0xff]  ;;  %v609_v20 = vadd.f32 %v2533_v49, %v608_v56  ;;  %v353_v35 = vadd.f32 %v352_v7, %v290_v62 }
  0xe6   : > { %v2659_v1 = vld [vmem:[%s3647_s6 + $0x9b0] sm:$0xff]  ;;  %v1116_v4 = vadd.f32 %v2780_v45, %v1115_v51  ;;  %v1234_v5 = vadd.f32 %v2833_v46, %v1233_v52  ;;  %v1592_v6 = vadd.f32 %v2929_v48, %v1591_v55  ;;  %v2782_v9 = vld [vmem:[%s3647_s6 + $0xd88] sm:$0xff]  ;;  %v1282_v17 = vld [vmem:[%s3653_s18 + $0x78] sm:$0xff]  ;;  %v737_v21 = vadd.f32 %v2596_v0, %v736_v57 }
  0xe7   : > { %v2835_v10 = vld [vmem:[%s3647_s6 + $0xf30] sm:$0xff]  ;;  %v2534_v13 = vld [vmem:[%s3647_s6 + $0x5c8] sm:$0xff]  ;;  %v865_v22 = vadd.f32 %v2659_v1, %v864_v58  ;;  %v2836_v23 = vld [vmem:[%s3647_s6 + $0xf38] sm:$0xff]  ;;  %v993_v31 = vadd.f32 %v2722_v2, %v992_v3  ;;  %v482_v36 = vadd.f32 %v2471_v63, %v481_v8  ;;  %v1345_v39 = vadd.f32 %v1344_v11, %v1282_v17 }
  0xe8   : > { %v2931_v12 = vld [vmem:[%s3653_s18 + $0x430] sm:$0xff]  ;;  %v1117_v15 = vadd.f32 %v2781_v50, %v1116_v4  ;;  %v1235_v16 = vadd.f32 %v2834_v59, %v1234_v5  ;;  %v1593_v19 = vadd.f32 %v2930_v61, %v1592_v6  ;;  %v2876_v24 = vld [vmem:[%s3653_s18 + $0x278] sm:$0xff]  ;;  %v2597_v28 = vld [vmem:[%s3647_s6 + $0x7c0] sm:$0xff]  ;;  %v610_v48 = vadd.f32 %v2534_v13, %v609_v20 }
  0xe9   : > { %v2783_v14 = vld [vmem:[%s3647_s6 + $0xd90] sm:$0xff]  ;;  %v2932_v25 = vld [vmem:[%s3653_s18 + $0x438] sm:$0xff]  ;;  %v2837_v38 = vld [vmem:[%s3647_s6 + $0xf40] sm:$0xff]  ;;  %v1474_v46 = vadd.f32 %v2876_v24, %v1473_v18  ;;  %v738_v49 = vadd.f32 %v2597_v28, %v737_v21 }
  0xea   : > { %v291_v26 = vld [vmem:[%s3647_s6 + $0x1d8] sm:$0xff]  ;;  %v2723_v30 = vld [vmem:[%s3647_s6 + $0xbb0] sm:$0xff]  ;;  %v1118_v32 = vadd.f32 %v2782_v9, %v1117_v15  ;;  %v1236_v33 = vadd.f32 %v2835_v10, %v1235_v16  ;;  %v1594_v34 = vadd.f32 %v2931_v12, %v1593_v19  ;;  %v2933_v40 = vld [vmem:[%s3653_s18 + $0x440] sm:$0xff] }
  0xeb   : > { %v2472_v27 = vld [vmem:[%s3647_s6 + $0x3d8] sm:$0xff]  ;;  %v2535_v41 = vld [vmem:[%s3647_s6 + $0x5d0] sm:$0xff]  ;;  %v2785_v42 = vld [vmem:[%s3647_s6 + $0xda0] sm:$0xff]  ;;  %v994_v59 = vadd.f32 %v2723_v30, %v993_v31  ;;  %v354_v63 = vadd.f32 %v353_v35, %v291_v26 }
  0xec   : > { %v2660_v29 = vld [vmem:[%s3647_s6 + $0x9b8] sm:$0xff]  ;;  %v1119_v43 = vadd.f32 %v2783_v14, %v1118_v32  ;;  %v1237_v44 = vadd.f32 %v2836_v23, %v1236_v33  ;;  %v1283_v45 = vld [vmem:[%s3653_s18 + $0x80] sm:$0xff]  ;;  %v1595_v47 = vadd.f32 %v2932_v25, %v1594_v34  ;;  %v2838_v51 = vld [vmem:[%s3647_s6 + $0xf48] sm:$0xff]  ;;  %v483_v0 = vadd.f32 %v2472_v27, %v482_v36 }
  0xed   : > { %v2784_v37 = vld [vmem:[%s3647_s6 + $0xd98] sm:$0xff]  ;;  %v866_v50 = vadd.f32 %v2660_v29, %v865_v22  ;;  %v2877_v52 = vld [vmem:[%s3653_s18 + $0x280] sm:$0xff]  ;;  %v2934_v53 = vld [vmem:[%s3653_s18 + $0x448] sm:$0xff]  ;;  %v1346_v3 = vadd.f32 %v1345_v39, %v1283_v45  ;;  %v611_v13 = vadd.f32 %v2535_v41, %v610_v48 }
  0xee   : > { %v292_v54 = vld [vmem:[%s3647_s6 + $0x1e0] sm:$0xff]  ;;  %v2598_v56 = vld [vmem:[%s3647_s6 + $0x7c8] sm:$0xff]  ;;  %v2724_v58 = vld [vmem:[%s3647_s6 + $0xbb8] sm:$0xff]  ;;  %v1120_v60 = vadd.f32 %v2784_v37, %v1119_v43  ;;  %v1238_v61 = vadd.f32 %v2837_v38, %v1237_v44  ;;  %v1596_v62 = vadd.f32 %v2933_v40, %v1595_v47  ;;  %v1475_v11 = vadd.f32 %v2877_v52, %v1474_v46 }
  0xef   : > { %v2473_v55 = vld [vmem:[%s3647_s6 + $0x3e0] sm:$0xff]  ;;  %v2786_v1 = vld [vmem:[%s3647_s6 + $0xda8] sm:$0xff]  ;;  %v2839_v2 = vld [vmem:[%s3647_s6 + $0xf50] sm:$0xff]  ;;  %v739_v14 = vadd.f32 %v2598_v56, %v738_v49  ;;  %v995_v22 = vadd.f32 %v2724_v58, %v994_v59  ;;  %v355_v27 = vadd.f32 %v354_v63, %v292_v54 }
  0xf0   : > { %v2661_v57 = vld [vmem:[%s3647_s6 + $0x9c0] sm:$0xff]  ;;  %v2935_v4 = vld [vmem:[%s3653_s18 + $0x450] sm:$0xff]  ;;  %v2536_v5 = vld [vmem:[%s3647_s6 + $0x5d8] sm:$0xff]  ;;  %v1121_v8 = vadd.f32 %v2785_v42, %v1120_v60  ;;  %v1239_v9 = vadd.f32 %v2838_v51, %v1238_v61  ;;  %v1597_v12 = vadd.f32 %v2934_v53, %v1596_v62  ;;  %v484_v29 = vadd.f32 %v2473_v55, %v483_v0 }
  0xf1   : > { %v2599_v6 = vld [vmem:[%s3647_s6 + $0x7d0] sm:$0xff]  ;;  %v1284_v10 = vld [vmem:[%s3653_s18 + $0x88] sm:$0xff]  ;;  %v867_v15 = vadd.f32 %v2661_v57, %v866_v50  ;;  %v2840_v16 = vld [vmem:[%s3647_s6 + $0xf58] sm:$0xff]  ;;  %v612_v43 = vadd.f32 %v2536_v5, %v611_v13 }
  0xf2   : > { %v2787_v7 = vld [vmem:[%s3647_s6 + $0xdb0] sm:$0xff]  ;;  %v2878_v17 = vld [vmem:[%s3653_s18 + $0x288] sm:$0xff]  ;;  %v2936_v18 = vld [vmem:[%s3653_s18 + $0x458] sm:$0xff]  ;;  %v1122_v24 = vadd.f32 %v2786_v1, %v1121_v8  ;;  %v1240_v25 = vadd.f32 %v2839_v2, %v1239_v9  ;;  %v1598_v26 = vadd.f32 %v2935_v4, %v1597_v12  ;;  %v1347_v32 = vadd.f32 %v1346_v3, %v1284_v10 }
  0xf3   : > { %v293_v19 = vld [vmem:[%s3647_s6 + $0x1e8] sm:$0xff]  ;;  %v2725_v21 = vld [vmem:[%s3647_s6 + $0xbc0] sm:$0xff]  ;;  %v2788_v23 = vld [vmem:[%s3647_s6 + $0xdb8] sm:$0xff]  ;;  %v1476_v39 = vadd.f32 %v2878_v17, %v1475_v11  ;;  %v740_v44 = vadd.f32 %v2599_v6, %v739_v14 }
  0xf4   : > { %v2662_v20 = vld [vmem:[%s3647_s6 + $0x9c8] sm:$0xff]  ;;  %v2841_v30 = vld [vmem:[%s3647_s6 + $0xf60] sm:$0xff]  ;;  %v2600_v35 = vld [vmem:[%s3647_s6 + $0x7d8] sm:$0xff]  ;;  %v1123_v36 = vadd.f32 %v2787_v7, %v1122_v24  ;;  %v1241_v37 = vadd.f32 %v2840_v16, %v1240_v25  ;;  %v1599_v40 = vadd.f32 %v2936_v18, %v1598_v26  ;;  %v996_v53 = vadd.f32 %v2725_v21, %v995_v22 }
  0xf5   : > { %v2474_v28 = vld [vmem:[%s3647_s6 + $0x3e8] sm:$0xff]  ;;  %v2937_v33 = vld [vmem:[%s3653_s18 + $0x460] sm:$0xff]  ;;  %v1285_v38 = vld [vmem:[%s3653_s18 + $0x90] sm:$0xff]  ;;  %v868_v45 = vadd.f32 %v2662_v20, %v867_v15  ;;  %v356_v58 = vadd.f32 %v355_v27, %v293_v19  ;;  %v741_v10 = vadd.f32 %v2600_v35, %v740_v44 }
  0xf6   : > { %v2842_v31 = vld [vmem:[%s3647_s6 + $0xf68] sm:$0xff]  ;;  %v2537_v34 = vld [vmem:[%s3647_s6 + $0x5e0] sm:$0xff]  ;;  %v2879_v46 = vld [vmem:[%s3653_s18 + $0x290] sm:$0xff]  ;;  %v1124_v54 = vadd.f32 %v2788_v23, %v1123_v36  ;;  %v1242_v55 = vadd.f32 %v2841_v30, %v1241_v37  ;;  %v1600_v56 = vadd.f32 %v2937_v33, %v1599_v40  ;;  %v1348_v62 = vadd.f32 %v1347_v32, %v1285_v38 }
  0xf7   : > { %v2989_v41 = vld [vmem:[%s3653_s18 + $0x600] sm:$0xff]  ;;  %v2990_v42 = vld [vmem:[%s3653_s18 + $0x608] sm:$0xff]  ;;  %v2991_v48 = vld [vmem:[%s3653_s18 + $0x610] sm:$0xff]  ;;  %v485_v1 = vadd.f32 %v2474_v28, %v484_v29  ;;  %v1477_v6 = vadd.f32 %v2879_v46, %v1476_v39  ;;  %v613_v9 = vadd.f32 %v2537_v34, %v612_v43 }
  0xf8   : > { %v2938_v47 = vld [vmem:[%s3653_s18 + $0x468] sm:$0xff]  ;;  %v1718_v49 = vadd.f32 %v2990_v42, %v2989_v41  ;;  %v294_v50 = vld [vmem:[%s3647_s6 + $0x1f0] sm:$0xff]  ;;  %v2992_v57 = vld [vmem:[%s3653_s18 + $0x618] sm:$0xff]  ;;  %v1243_v4 = vadd.f32 %v2842_v31, %v1242_v55 }
  0xf9   : > { %v2663_v51 = vld [vmem:[%s3647_s6 + $0x9d0] sm:$0xff]  ;;  %v2726_v52 = vld [vmem:[%s3647_s6 + $0xbc8] sm:$0xff]  ;;  %v2789_v60 = vld [vmem:[%s3647_s6 + $0xdc0] sm:$0xff]  ;;  %v1601_v7 = vadd.f32 %v2938_v47, %v1600_v56  ;;  %v357_v24 = vadd.f32 %v356_v58, %v294_v50 }
  0xfa   : > { %v2475_v59 = vld [vmem:[%s3647_s6 + $0x3f0] sm:$0xff]  ;;  %v1719_v0 = vadd.f32 %v2991_v48, %v1718_v49  ;;  %v2538_v2 = vld [vmem:[%s3647_s6 + $0x5e8] sm:$0xff]  ;;  %v2601_v3 = vld [vmem:[%s3647_s6 + $0x7e0] sm:$0xff]  ;;  %v869_v11 = vadd.f32 %v2663_v51, %v868_v45  ;;  %v997_v19 = vadd.f32 %v2726_v52, %v996_v53  ;;  %v1125_v20 = vadd.f32 %v2789_v60, %v1124_v54 }
  0xfb   : > { %v2843_v61 = vld [vmem:[%s3647_s6 + $0xf70] sm:$0xff]  ;;  %v1286_v5 = vld [vmem:[%s3653_s18 + $0x98] sm:$0xff]  ;;  %v2993_v8 = vld [vmem:[%s3653_s18 + $0x620] sm:$0xff]  ;;  %v486_v31 = vadd.f32 %v2475_v59, %v485_v1  ;;  %v614_v39 = vadd.f32 %v2538_v2, %v613_v9  ;;  %v742_v40 = vadd.f32 %v2601_v3, %v741_v10 }
  0xfc   : > { %v2939_v63 = vld [vmem:[%s3653_s18 + $0x470] sm:$0xff]  ;;  %v2844_v12 = vld [vmem:[%s3647_s6 + $0xf78] sm:$0xff]  ;;  %v1720_v15 = vadd.f32 %v2992_v57, %v1719_v0  ;;  %v1244_v21 = vadd.f32 %v2843_v61, %v1243_v4  ;;  %v2994_v23 = vld [vmem:[%s3653_s18 + $0x628] sm:$0xff]  ;;  %v1349_v28 = vadd.f32 %v1348_v62, %v1286_v5 }
  0xfd   : > { %v2880_v13 = vld [vmem:[%s3653_s18 + $0x298] sm:$0xff]  ;;  %v2727_v18 = vld [vmem:[%s3647_s6 + $0xbd0] sm:$0xff]  ;;  %v1602_v22 = vadd.f32 %v2939_v63, %v1601_v7  ;;  %v2790_v26 = vld [vmem:[%s3647_s6 + $0xdc8] sm:$0xff] }
  0xfe   : > { %v2940_v14 = vld [vmem:[%s3653_s18 + $0x478] sm:$0xff]  ;;  %v2845_v27 = vld [vmem:[%s3647_s6 + $0xf80] sm:$0xff]  ;;  %v1721_v30 = vadd.f32 %v2993_v8, %v1720_v15  ;;  %v2539_v32 = vld [vmem:[%s3647_s6 + $0x5f0] sm:$0xff]  ;;  %v1245_v34 = vadd.f32 %v2844_v12, %v1244_v21  ;;  %v1478_v36 = vadd.f32 %v2880_v13, %v1477_v6  ;;  %v998_v48 = vadd.f32 %v2727_v18, %v997_v19 }
  0xff   : > { %v295_v16 = vld [vmem:[%s3647_s6 + $0x1f8] sm:$0xff]  ;;  %v2941_v29 = vld [vmem:[%s3653_s18 + $0x480] sm:$0xff]  ;;  %v2602_v33 = vld [vmem:[%s3647_s6 + $0x7e8] sm:$0xff]  ;;  %v1603_v37 = vadd.f32 %v2940_v14, %v1602_v22  ;;  %v1126_v49 = vadd.f32 %v2790_v26, %v1125_v20  ;;  %v615_v3 = vadd.f32 %v2539_v32, %v614_v39 }
 0x100   : > { %v2664_v17 = vld [vmem:[%s3647_s6 + $0x9d8] sm:$0xff]  ;;  %v1287_v35 = vld [vmem:[%s3653_s18 + $0xa0] sm:$0xff]  ;;  %v2995_v38 = vld [vmem:[%s3653_s18 + $0x630] sm:$0xff]  ;;  %v1722_v45 = vadd.f32 %v2994_v23, %v1721_v30  ;;  %v1246_v50 = vadd.f32 %v2845_v27, %v1245_v34  ;;  %v358_v53 = vadd.f32 %v357_v24, %v295_v16  ;;  %v743_v4 = vadd.f32 %v2602_v33, %v742_v40 }
 0x101   : > { %v2476_v25 = vld [vmem:[%s3647_s6 + $0x3f8] sm:$0xff]  ;;  %v870_v41 = vadd.f32 %v2664_v17, %v869_v11  ;;  %v2846_v42 = vld [vmem:[%s3647_s6 + $0xf88] sm:$0xff]  ;;  %v2881_v43 = vld [vmem:[%s3653_s18 + $0x2a0] sm:$0xff]  ;;  %v1604_v51 = vadd.f32 %v2941_v29, %v1603_v37  ;;  %v1350_v56 = vadd.f32 %v1349_v28, %v1287_v35 }
 0x102   : > { %v2942_v44 = vld [vmem:[%s3653_s18 + $0x488] sm:$0xff]  ;;  %v2665_v46 = vld [vmem:[%s3647_s6 + $0x9e0] sm:$0xff]  ;;  %v2728_v47 = vld [vmem:[%s3647_s6 + $0xbd8] sm:$0xff]  ;;  %v1723_v58 = vadd.f32 %v2995_v38, %v1722_v45  ;;  %v487_v59 = vadd.f32 %v2476_v25, %v486_v31  ;;  %v1247_v62 = vadd.f32 %v2846_v42, %v1246_v50  ;;  %v1479_v0 = vadd.f32 %v2881_v43, %v1478_v36 }
 0x103   : > { %v2996_v52 = vld [vmem:[%s3653_s18 + $0x638] sm:$0xff]  ;;  %v2791_v54 = vld [vmem:[%s3647_s6 + $0xdd0] sm:$0xff]  ;;  %v1288_v63 = vld [vmem:[%s3653_s18 + $0xa8] sm:$0xff]  ;;  %v1605_v1 = vadd.f32 %v2942_v44, %v1604_v51  ;;  %v871_v5 = vadd.f32 %v2665_v46, %v870_v41  ;;  %v999_v12 = vadd.f32 %v2728_v47, %v998_v48 }
 0x104   : > { %v2847_v55 = vld [vmem:[%s3647_s6 + $0xf90] sm:$0xff]  ;;  %v2540_v60 = vld [vmem:[%s3647_s6 + $0x5f8] sm:$0xff]  ;;  %v2997_v2 = vld [vmem:[%s3653_s18 + $0x640] sm:$0xff]  ;;  %v1724_v9 = vadd.f32 %v2996_v52, %v1723_v58  ;;  %v1127_v13 = vadd.f32 %v2791_v54, %v1126_v49  ;;  %v1351_v19 = vadd.f32 %v1350_v56, %v1288_v63  ;;  %v488_v22 = vadd.f32 %v487_v59, %v358_v53 }
 0x105   : > { %v2943_v57 = vld [vmem:[%s3653_s18 + $0x490] sm:$0xff]  ;;  %v2848_v6 = vld [vmem:[%s3647_s6 + $0xf98] sm:$0xff]  ;;  %v2882_v7 = vld [vmem:[%s3653_s18 + $0x2a8] sm:$0xff]  ;;  %v1248_v14 = vadd.f32 %v2847_v55, %v1247_v62  ;;  %v616_v28 = vadd.f32 %v2540_v60, %v615_v3 }
 0x106   : > { %v2603_v61 = vld [vmem:[%s3647_s6 + $0x7f0] sm:$0xff]  ;;  %v2944_v8 = vld [vmem:[%s3653_s18 + $0x498] sm:$0xff]  ;;  %v2666_v10 = vld [vmem:[%s3647_s6 + $0x9e8] sm:$0xff]  ;;  %v1606_v15 = vadd.f32 %v2943_v57, %v1605_v1  ;;  %v1725_v21 = vadd.f32 %v2997_v2, %v1724_v9  ;;  %v1480_v25 = vadd.f32 %v2882_v7, %v1479_v0 }
 0x107   : > { %v2729_v11 = vld [vmem:[%s3647_s6 + $0xbe0] sm:$0xff]  ;;  %v2998_v16 = vld [vmem:[%s3653_s18 + $0x648] sm:$0xff]  ;;  %v2792_v17 = vld [vmem:[%s3647_s6 + $0xdd8] sm:$0xff]  ;;  %v1249_v23 = vadd.f32 %v2848_v6, %v1248_v14  ;;  %v744_v29 = vadd.f32 %v2603_v61, %v743_v4  ;;  %v872_v30 = vadd.f32 %v2666_v10, %v871_v5  ;;  %v617_v53 = vadd.f32 %v616_v28, %v488_v22 }
 0x108   : > { %v2849_v18 = vld [vmem:[%s3647_s6 + $0xfa0] sm:$0xff]  ;;  %v1289_v24 = vld [vmem:[%s3653_s18 + $0xb0] sm:$0xff]  ;;  %v1607_v26 = vadd.f32 %v2944_v8, %v1606_v15  ;;  %v2850_v31 = vld [vmem:[%s3647_s6 + $0xfa8] sm:$0xff]  ;;  %v1726_v34 = vadd.f32 %v2998_v16, %v1725_v21  ;;  %v1000_v37 = vadd.f32 %v2729_v11, %v999_v12  ;;  %v1128_v38 = vadd.f32 %v2792_v17, %v1127_v13 }
 0x109   : > { %v2945_v20 = vld [vmem:[%s3653_s18 + $0x4a0] sm:$0xff]  ;;  %v2999_v27 = vld [vmem:[%s3653_s18 + $0x650] sm:$0xff]  ;;  %v2946_v33 = vld [vmem:[%s3653_s18 + $0x4a8] sm:$0xff]  ;;  %v1250_v39 = vadd.f32 %v2849_v18, %v1249_v23  ;;  %v1352_v45 = vadd.f32 %v1351_v19, %v1289_v24 }
 0x10a   : > { %v2883_v32 = vld [vmem:[%s3653_s18 + $0x2b0] sm:$0xff]  ;;  %v2604_v35 = vld [vmem:[%s3647_s6 + $0x7f8] sm:$0xff]  ;;  %v1608_v40 = vadd.f32 %v2945_v20, %v1607_v26  ;;  %v2730_v42 = vld [vmem:[%s3647_s6 + $0xbe8] sm:$0xff]  ;;  %v1727_v46 = vadd.f32 %v2999_v27, %v1726_v34 }
 0x10b   : > { %v2667_v36 = vld [vmem:[%s3647_s6 + $0x9f0] sm:$0xff]  ;;  %v3000_v41 = vld [vmem:[%s3653_s18 + $0x658] sm:$0xff]  ;;  %v2793_v43 = vld [vmem:[%s3647_s6 + $0xde0] sm:$0xff]  ;;  %v1251_v48 = vadd.f32 %v2850_v31, %v1250_v39  ;;  %v1481_v50 = vadd.f32 %v2883_v32, %v1480_v25  ;;  %v745_v54 = vadd.f32 %v2604_v35, %v744_v29  ;;  %v1001_v61 = vadd.f32 %v2730_v42, %v1000_v37 }
 0x10c   : > { %v2851_v44 = vld [vmem:[%s3647_s6 + $0xfb0] sm:$0xff]  ;;  %v2852_v47 = vld [vmem:[%s3647_s6 + $0xfb8] sm:$0xff]  ;;  %v1609_v51 = vadd.f32 %v2946_v33, %v1608_v40  ;;  %v3001_v52 = vld [vmem:[%s3653_s18 + $0x660] sm:$0xff]  ;;  %v1728_v58 = vadd.f32 %v3000_v41, %v1727_v46  ;;  %v873_v60 = vadd.f32 %v2667_v36, %v872_v30  ;;  %v1129_v62 = vadd.f32 %v2793_v43, %v1128_v38 }
 0x10d   : > { %v1290_v49 = vld [vmem:[%s3653_s18 + $0xb8] sm:$0xff]  ;;  %v2947_v57 = vld [vmem:[%s3653_s18 + $0x4b0] sm:$0xff]  ;;  %v3053_v59 = vld [vmem:[%s3653_s18 + $0x800] sm:$0xff]  ;;  %v1252_v63 = vadd.f32 %v2851_v44, %v1251_v48  ;;  %v746_v15 = vadd.f32 %v745_v54, %v617_v53 }
 0x10e   : > { %v2668_v55 = vld [vmem:[%s3647_s6 + $0x9f8] sm:$0xff]  ;;  %v3002_v0 = vld [vmem:[%s3653_s18 + $0x668] sm:$0xff]  ;;  %v3055_v2 = vld [vmem:[%s3653_s18 + $0x810] sm:$0xff]  ;;  %v1353_v6 = vadd.f32 %v1352_v45, %v1290_v49  ;;  %v1729_v7 = vadd.f32 %v3001_v52, %v1728_v58  ;;  %v1610_v12 = vadd.f32 %v2947_v57, %v1609_v51 }
 0x10f   : > { %v2884_v56 = vld [vmem:[%s3653_s18 + $0x2b8] sm:$0xff]  ;;  %v3054_v1 = vld [vmem:[%s3653_s18 + $0x808] sm:$0xff]  ;;  %v2731_v3 = vld [vmem:[%s3647_s6 + $0xbf0] sm:$0xff]  ;;  %v1253_v9 = vadd.f32 %v2852_v47, %v1252_v63  ;;  %v874_v21 = vadd.f32 %v2668_v55, %v873_v60 }
 0x110   : > { %v2794_v4 = vld [vmem:[%s3647_s6 + $0xde8] sm:$0xff]  ;;  %v2853_v5 = vld [vmem:[%s3647_s6 + $0xfc0] sm:$0xff]  ;;  %v1847_v8 = vadd.f32 %v3054_v1, %v3053_v59  ;;  %v1482_v11 = vadd.f32 %v2884_v56, %v1481_v50  ;;  %v3003_v13 = vld [vmem:[%s3653_s18 + $0x670] sm:$0xff]  ;;  %v1730_v19 = vadd.f32 %v3002_v0, %v1729_v7  ;;  %v1002_v22 = vadd.f32 %v2731_v3, %v1001_v61 }
 0x111   : > { %v1291_v10 = vld [vmem:[%s3653_s18 + $0xc0] sm:$0xff]  ;;  %v3056_v14 = vld [vmem:[%s3653_s18 + $0x818] sm:$0xff]  ;;  %v2854_v16 = vld [vmem:[%s3647_s6 + $0xfc8] sm:$0xff]  ;;  %v1130_v23 = vadd.f32 %v2794_v4, %v1129_v62  ;;  %v1254_v24 = vadd.f32 %v2853_v5, %v1253_v9  ;;  %v875_v44 = vadd.f32 %v874_v21, %v746_v15 }
 0x112   : > { %v2885_v17 = vld [vmem:[%s3653_s18 + $0x2c0] sm:$0xff]  ;;  %v2948_v18 = vld [vmem:[%s3653_s18 + $0x4b8] sm:$0xff]  ;;  %v1848_v20 = vadd.f32 %v3055_v2, %v1847_v8  ;;  %v2795_v28 = vld [vmem:[%s3647_s6 + $0xdf0] sm:$0xff]  ;;  %v1354_v30 = vadd.f32 %v1353_v6, %v1291_v10  ;;  %v1731_v31 = vadd.f32 %v3003_v13, %v1730_v19 }
 0x113   : > { %v3004_v25 = vld [vmem:[%s3653_s18 + $0x678] sm:$0xff]  ;;  %v3057_v26 = vld [vmem:[%s3653_s18 + $0x820] sm:$0xff]  ;;  %v2855_v29 = vld [vmem:[%s3647_s6 + $0xfd0] sm:$0xff]  ;;  %v1255_v33 = vadd.f32 %v2854_v16, %v1254_v24  ;;  %v1483_v35 = vadd.f32 %v2885_v17, %v1482_v11  ;;  %v1611_v36 = vadd.f32 %v2948_v18, %v1610_v12  ;;  %v1131_v46 = vadd.f32 %v2795_v28, %v1130_v23 }
 0x114   : > { %v2732_v27 = vld [vmem:[%s3647_s6 + $0xbf8] sm:$0xff]  ;;  %v1849_v32 = vadd.f32 %v3056_v14, %v1848_v20  ;;  %v1292_v34 = vld [vmem:[%s3653_s18 + $0xc8] sm:$0xff]  ;;  %v3005_v37 = vld [vmem:[%s3653_s18 + $0x680] sm:$0xff]  ;;  %v1732_v42 = vadd.f32 %v3004_v25, %v1731_v31 }
 0x115   : > { %v3058_v38 = vld [vmem:[%s3653_s18 + $0x828] sm:$0xff]  ;;  %v2856_v39 = vld [vmem:[%s3647_s6 + $0xfd8] sm:$0xff]  ;;  %v2949_v41 = vld [vmem:[%s3653_s18 + $0x4c0] sm:$0xff]  ;;  %v1003_v45 = vadd.f32 %v2732_v27, %v1002_v22  ;;  %v1256_v47 = vadd.f32 %v2855_v29, %v1255_v33  ;;  %v1355_v52 = vadd.f32 %v1354_v30, %v1292_v34 }
 0x116   : > { %v2886_v40 = vld [vmem:[%s3653_s18 + $0x2c8] sm:$0xff]  ;;  %v1850_v43 = vadd.f32 %v3057_v26, %v1849_v32  ;;  %v3059_v49 = vld [vmem:[%s3653_s18 + $0x830] sm:$0xff]  ;;  %v2796_v50 = vld [vmem:[%s3647_s6 + $0xdf8] sm:$0xff]  ;;  %v1733_v53 = vadd.f32 %v3005_v37, %v1732_v42  ;;  %v1612_v58 = vadd.f32 %v2949_v41, %v1611_v36 }
 0x117   : > { %v3006_v48 = vld [vmem:[%s3653_s18 + $0x688] sm:$0xff]  ;;  %v2857_v51 = vld [vmem:[%s3647_s6 + $0xfe0] sm:$0xff]  ;;  %v1257_v55 = vadd.f32 %v2856_v39, %v1256_v47  ;;  %v1293_v56 = vld [vmem:[%s3653_s18 + $0xd0] sm:$0xff]  ;;  %v1484_v57 = vadd.f32 %v2886_v40, %v1483_v35  ;;  %v1004_v2 = vadd.f32 %v1003_v45, %v875_v44  ;;  %v1132_v3 = vadd.f32 %v2796_v50, %v1131_v46 }
 0x118   : > { %v1851_v54 = vadd.f32 %v3058_v38, %v1850_v43  ;;  %v3007_v59 = vld [vmem:[%s3653_s18 + $0x690] sm:$0xff]  ;;  %v3060_v60 = vld [vmem:[%s3653_s18 + $0x838] sm:$0xff]  ;;  %v2858_v61 = vld [vmem:[%s3647_s6 + $0xfe8] sm:$0xff]  ;;  %v1734_v0 = vadd.f32 %v3006_v48, %v1733_v53  ;;  %v1356_v8 = vadd.f32 %v1355_v52, %v1293_v56 }
 0x119   : > { %v2887_v62 = vld [vmem:[%s3653_s18 + $0x2d0] sm:$0xff]  ;;  %v2950_v63 = vld [vmem:[%s3653_s18 + $0x4c8] sm:$0xff]  ;;  %v1258_v4 = vadd.f32 %v2857_v51, %v1257_v55  ;;  %v3008_v5 = vld [vmem:[%s3653_s18 + $0x698] sm:$0xff]  ;;  %v1133_v22 = vadd.f32 %v1132_v3, %v1004_v2 }
 0x11a   : > { %v1852_v1 = vadd.f32 %v3059_v49, %v1851_v54  ;;  %v3061_v6 = vld [vmem:[%s3653_s18 + $0x840] sm:$0xff]  ;;  %v2859_v7 = vld [vmem:[%s3647_s6 + $0xff0] sm:$0xff]  ;;  %v1735_v9 = vadd.f32 %v3007_v59, %v1734_v0  ;;  %v1294_v12 = vld [vmem:[%s3653_s18 + $0xd8] sm:$0xff]  ;;  %v1485_v13 = vadd.f32 %v2887_v62, %v1484_v57  ;;  %v1613_v14 = vadd.f32 %v2950_v63, %v1612_v58 }
 0x11b   : > { %v1259_v11 = vadd.f32 %v2858_v61, %v1258_v4  ;;  %v3009_v15 = vld [vmem:[%s3653_s18 + $0x6a0] sm:$0xff]  ;;  %v3062_v16 = vld [vmem:[%s3653_s18 + $0x848] sm:$0xff]  ;;  %v2860_v17 = vld [vmem:[%s3647_s6 + $0xff8] sm:$0xff]  ;;  %v1357_v26 = vadd.f32 %v1356_v8, %v1294_v12 }
 0x11c   : > { %v1853_v10 = vadd.f32 %v3060_v60, %v1852_v1  ;;  %v2888_v18 = vld [vmem:[%s3653_s18 + $0x2d8] sm:$0xff]  ;;  %v2951_v19 = vld [vmem:[%s3653_s18 + $0x4d0] sm:$0xff]  ;;  %v1736_v20 = vadd.f32 %v3008_v5, %v1735_v9  ;;  %v3010_v24 = vld [vmem:[%s3653_s18 + $0x6a8] sm:$0xff] }
 0x11d   : > { %v1260_v23 = vadd.f32 %v2859_v7, %v1259_v11  ;;  %v3063_v25 = vld [vmem:[%s3653_s18 + $0x850] sm:$0xff]  ;;  %v1295_v30 = vld [vmem:[%s3653_s18 + $0xe0] sm:$0xff]  ;;  %v1486_v31 = vadd.f32 %v2888_v18, %v1485_v13  ;;  %v1614_v32 = vadd.f32 %v2951_v19, %v1613_v14  ;;  %v3064_v34 = vld [vmem:[%s3653_s18 + $0x858] sm:$0xff] }
 0x11e   : > { %v1854_v21 = vadd.f32 %v3061_v6, %v1853_v10  ;;  %v1737_v27 = vadd.f32 %v3009_v15, %v1736_v20  ;;  %v3011_v33 = vld [vmem:[%s3653_s18 + $0x6b0] sm:$0xff]  ;;  %v231_v35 = vld [vmem:[#allocation7] sm:$0xff]  ;;  %v2952_v37 = vld [vmem:[%s3653_s18 + $0x4d8] sm:$0xff]  ;;  %v1358_v43 = vadd.f32 %v1357_v26, %v1295_v30 }
 0x11f   : > { %v1261_v29 = vadd.f32 %v2860_v17, %v1260_v23  ;;  %v2889_v36 = vld [vmem:[%s3653_s18 + $0x2e0] sm:$0xff]  ;;  %v3012_v41 = vld [vmem:[%s3653_s18 + $0x6b8] sm:$0xff]  ;;  %v3118_v47 = vld [vmem:[%s3653_s18 + $0xa08] sm:$0xff]  ;;  %v1615_v52 = vadd.f32 %v2952_v37, %v1614_v32 }
 0x120   : > { %v1855_v28 = vadd.f32 %v3062_v16, %v1854_v21  ;;  %v1738_v38 = vadd.f32 %v3010_v24, %v1737_v27  ;;  %v3065_v42 = vld [vmem:[%s3653_s18 + $0x860] sm:$0xff]  ;;  %v3119_v48 = vld [vmem:[%s3653_s18 + $0xa10] sm:$0xff]  ;;  %v1296_v50 = vld [vmem:[%s3653_s18 + $0xe8] sm:$0xff]  ;;  %v1487_v51 = vadd.f32 %v2889_v36, %v1486_v31 }
 0x121   : > { %v1262_v40 = vadd.f32 %v1261_v29, %v1133_v22  ;;  %v3117_v46 = vld [vmem:[%s3653_s18 + $0xa00] sm:$0xff]  ;;  %v3066_v54 = vld [vmem:[%s3653_s18 + $0x868] sm:$0xff]  ;;  %v3120_v60 = vld [vmem:[%s3653_s18 + $0xa18] sm:$0xff]  ;;  %v1359_v0 = vadd.f32 %v1358_v43, %v1296_v50 }
 0x122   : > { %v1856_v39 = vadd.f32 %v3063_v25, %v1855_v28  ;;  %v1739_v44 = vadd.f32 %v3011_v33, %v1738_v38  ;;  %v3013_v53 = vld [vmem:[%s3653_s18 + $0x6c0] sm:$0xff]  ;;  %v1976_v55 = vadd.f32 %v3118_v47, %v3117_v46  ;;  %v2890_v56 = vld [vmem:[%s3653_s18 + $0x2e8] sm:$0xff]  ;;  %v3067_v62 = vld [vmem:[%s3653_s18 + $0x870] sm:$0xff] }
 0x123   : > { %v1263_v49 = vadd.f32 %v1262_v40, %v231_v35  ;;  %v2953_v57 = vld [vmem:[%s3653_s18 + $0x4e0] sm:$0xff]  ;;  %v3014_v61 = vld [vmem:[%s3653_s18 + $0x6c8] sm:$0xff]  ;;  %v1297_v4 = vld [vmem:[%s3653_s18 + $0xf0] sm:$0xff]  ;;  %v1488_v5 = vadd.f32 %v2890_v56, %v1487_v51 }
 0x124   : > { %v1857_v45 = vadd.f32 %v3064_v34, %v1856_v39  ;;  %v1740_v58 = vadd.f32 %v3012_v41, %v1739_v44  ;;  %v1977_v63 = vadd.f32 %v3119_v48, %v1976_v55  ;;  %v3121_v3 = vld [vmem:[%s3653_s18 + $0xa20] sm:$0xff]  ;;  %v1616_v6 = vadd.f32 %v2953_v57, %v1615_v52  ;;  %v3015_v7 = vld [vmem:[%s3653_s18 + $0x6d0] sm:$0xff]  ;;  %v3068_v8 = vld [vmem:[%s3653_s18 + $0x878] sm:$0xff] }
 0x125   : > { %1264 = vst [vmem:[#allocation7] sm:$0xff] %v1263_v49  ;;  %v2891_v10 = vld [vmem:[%s3653_s18 + $0x2f0] sm:$0xff]  ;;  %v2954_v11 = vld [vmem:[%s3653_s18 + $0x4e8] sm:$0xff]  ;;  %v3016_v15 = vld [vmem:[%s3653_s18 + $0x6d8] sm:$0xff]  ;;  %v1360_v18 = vadd.f32 %v1359_v0, %v1297_v4 }
 0x126   : > { %v1858_v59 = vadd.f32 %v3065_v42, %v1857_v45  ;;  %v1741_v1 = vadd.f32 %v3013_v53, %v1740_v58  ;;  %v1978_v9 = vadd.f32 %v3120_v60, %v1977_v63  ;;  %v3122_v14 = vld [vmem:[%s3653_s18 + $0xa28] sm:$0xff]  ;;  %v3069_v16 = vld [vmem:[%s3653_s18 + $0x880] sm:$0xff]  ;;  %v3123_v21 = vld [vmem:[%s3653_s18 + $0xa30] sm:$0xff]  ;;  %v1489_v23 = vadd.f32 %v2891_v10, %v1488_v5 }
 0x127   : > { %v1298_v22 = vld [vmem:[%s3653_s18 + $0xf8] sm:$0xff]  ;;  %v1617_v24 = vadd.f32 %v2954_v11, %v1616_v6  ;;  %v3017_v25 = vld [vmem:[%s3653_s18 + $0x6e0] sm:$0xff]  ;;  %v3070_v26 = vld [vmem:[%s3653_s18 + $0x888] sm:$0xff] }
 0x128   : > { %v1859_v2 = vadd.f32 %v3066_v54, %v1858_v59  ;;  %v1742_v12 = vadd.f32 %v3014_v61, %v1741_v1  ;;  %v1979_v17 = vadd.f32 %v3121_v3, %v1978_v9  ;;  %v2892_v28 = vld [vmem:[%s3653_s18 + $0x2f8] sm:$0xff]  ;;  %v2955_v29 = vld [vmem:[%s3653_s18 + $0x4f0] sm:$0xff]  ;;  %v3018_v33 = vld [vmem:[%s3653_s18 + $0x6e8] sm:$0xff]  ;;  %v1361_v36 = vadd.f32 %v1360_v18, %v1298_v22 }
 0x129   : > { %v3124_v32 = vld [vmem:[%s3653_s18 + $0xa38] sm:$0xff]  ;;  %v3071_v34 = vld [vmem:[%s3653_s18 + $0x890] sm:$0xff]  ;;  %v3125_v39 = vld [vmem:[%s3653_s18 + $0xa40] sm:$0xff]  ;;  %v1490_v42 = vadd.f32 %v2892_v28, %v1489_v23  ;;  %v1618_v43 = vadd.f32 %v2955_v29, %v1617_v24 }
 0x12a   : > { %v1860_v13 = vadd.f32 %v3067_v62, %v1859_v2  ;;  %v1743_v19 = vadd.f32 %v3015_v7, %v1742_v12  ;;  %v1980_v27 = vadd.f32 %v3122_v14, %v1979_v17  ;;  %v1299_v40 = vld [vmem:[%s3653_s18 + $0x100] sm:$0xff]  ;;  %v3072_v44 = vld [vmem:[%s3653_s18 + $0x898] sm:$0xff]  ;;  %v3019_v47 = vld [vmem:[%s3653_s18 + $0x6f0] sm:$0xff] }
 0x12b   : > { %v2893_v41 = vld [vmem:[%s3653_s18 + $0x300] sm:$0xff]  ;;  %v2956_v46 = vld [vmem:[%s3653_s18 + $0x4f8] sm:$0xff]  ;;  %v3126_v50 = vld [vmem:[%s3653_s18 + $0xa48] sm:$0xff]  ;;  %v1362_v53 = vadd.f32 %v1361_v36, %v1299_v40 }
 0x12c   : > { %v1861_v20 = vadd.f32 %v3068_v8, %v1860_v13  ;;  %v1744_v30 = vadd.f32 %v3016_v15, %v1743_v19  ;;  %v1981_v35 = vadd.f32 %v3123_v21, %v1980_v27  ;;  %v3073_v51 = vld [vmem:[%s3653_s18 + $0x8a0] sm:$0xff]  ;;  %v3127_v55 = vld [vmem:[%s3653_s18 + $0xa50] sm:$0xff]  ;;  %v1300_v56 = vld [vmem:[%s3653_s18 + $0x108] sm:$0xff]  ;;  %v1491_v58 = vadd.f32 %v2893_v41, %v1490_v42 }
 0x12d   : > { %v2894_v57 = vld [vmem:[%s3653_s18 + $0x308] sm:$0xff]  ;;  %v1619_v59 = vadd.f32 %v2956_v46, %v1618_v43  ;;  %v2957_v63 = vld [vmem:[%s3653_s18 + $0x500] sm:$0xff]  ;;  %v3020_v0 = vld [vmem:[%s3653_s18 + $0x6f8] sm:$0xff]  ;;  %v1363_v6 = vadd.f32 %v1362_v53, %v1300_v56 }
 0x12e   : > { %v1862_v31 = vadd.f32 %v3069_v16, %v1861_v20  ;;  %v1745_v37 = vadd.f32 %v3017_v25, %v1744_v30  ;;  %v1982_v45 = vadd.f32 %v3124_v32, %v1981_v35  ;;  %v3074_v61 = vld [vmem:[%s3653_s18 + $0x8a8] sm:$0xff]  ;;  %v3128_v2 = vld [vmem:[%s3653_s18 + $0xa58] sm:$0xff]  ;;  %v1301_v3 = vld [vmem:[%s3653_s18 + $0x110] sm:$0xff]  ;;  %v1492_v11 = vadd.f32 %v2894_v57, %v1491_v58 }
 0x12f   : > { %v3075_v4 = vld [vmem:[%s3653_s18 + $0x8b0] sm:$0xff]  ;;  %v2958_v8 = vld [vmem:[%s3653_s18 + $0x508] sm:$0xff]  ;;  %v3129_v10 = vld [vmem:[%s3653_s18 + $0xa60] sm:$0xff]  ;;  %v1620_v12 = vadd.f32 %v2957_v63, %v1619_v59  ;;  %v1364_v27 = vadd.f32 %v1363_v6, %v1301_v3 }
 0x130   : > { %v1863_v38 = vadd.f32 %v3070_v26, %v1862_v31  ;;  %v1746_v48 = vadd.f32 %v3018_v33, %v1745_v37  ;;  %v1983_v52 = vadd.f32 %v3125_v39, %v1982_v45  ;;  %v2895_v7 = vld [vmem:[%s3653_s18 + $0x310] sm:$0xff]  ;;  %v3076_v14 = vld [vmem:[%s3653_s18 + $0x8b8] sm:$0xff]  ;;  %v3181_v16 = vld [vmem:[%s3653_s18 + $0xc00] sm:$0xff] }
 0x131   : > { %v3182_v17 = vld [vmem:[%s3653_s18 + $0xc08] sm:$0xff]  ;;  %v3021_v18 = vld [vmem:[%s3653_s18 + $0x700] sm:$0xff]  ;;  %v3183_v21 = vld [vmem:[%s3653_s18 + $0xc10] sm:$0xff]  ;;  %v1493_v32 = vadd.f32 %v2895_v7, %v1492_v11  ;;  %v1621_v33 = vadd.f32 %v2958_v8, %v1620_v12 }
 0x132   : > { %v1864_v49 = vadd.f32 %v3071_v34, %v1863_v38  ;;  %v1747_v60 = vadd.f32 %v3019_v47, %v1746_v48  ;;  %v1984_v62 = vadd.f32 %v3126_v50, %v1983_v52  ;;  %v3130_v20 = vld [vmem:[%s3653_s18 + $0xa68] sm:$0xff]  ;;  %v2105_v22 = vadd.f32 %v3182_v17, %v3181_v16  ;;  %v3077_v23 = vld [vmem:[%s3653_s18 + $0x8c0] sm:$0xff]  ;;  %v3184_v25 = vld [vmem:[%s3653_s18 + $0xc18] sm:$0xff] }
 0x133   : > { %v1302_v26 = vld [vmem:[%s3653_s18 + $0x118] sm:$0xff]  ;;  %v3131_v29 = vld [vmem:[%s3653_s18 + $0xa70] sm:$0xff]  ;;  %v3078_v35 = vld [vmem:[%s3653_s18 + $0x8c8] sm:$0xff] }
 0x134   : > { %v1865_v54 = vadd.f32 %v3072_v44, %v1864_v49  ;;  %v1985_v5 = vadd.f32 %v3127_v55, %v1984_v62  ;;  %v1748_v13 = vadd.f32 %v3020_v0, %v1747_v60  ;;  %v2106_v30 = vadd.f32 %v3183_v21, %v2105_v22  ;;  %v2896_v31 = vld [vmem:[%s3653_s18 + $0x318] sm:$0xff]  ;;  %v3185_v37 = vld [vmem:[%s3653_s18 + $0xc20] sm:$0xff]  ;;  %v2959_v38 = vld [vmem:[%s3653_s18 + $0x510] sm:$0xff] }
 0x135   : > { %v3022_v39 = vld [vmem:[%s3653_s18 + $0x708] sm:$0xff]  ;;  %v3132_v41 = vld [vmem:[%s3653_s18 + $0xa78] sm:$0xff]  ;;  %v3079_v43 = vld [vmem:[%s3653_s18 + $0x8d0] sm:$0xff]  ;;  %v1365_v47 = vadd.f32 %v1364_v27, %v1302_v26  ;;  %v1494_v52 = vadd.f32 %v2896_v31, %v1493_v32  ;;  %v1622_v53 = vadd.f32 %v2959_v38, %v1621_v33 }
 0x136   : > { %v1866_v1 = vadd.f32 %v3073_v51, %v1865_v54  ;;  %v1986_v15 = vadd.f32 %v3128_v2, %v1985_v5  ;;  %v1749_v34 = vadd.f32 %v3021_v18, %v1748_v13  ;;  %v2107_v42 = vadd.f32 %v3184_v25, %v2106_v30  ;;  %v3186_v45 = vld [vmem:[%s3653_s18 + $0xc28] sm:$0xff]  ;;  %v1303_v46 = vld [vmem:[%s3653_s18 + $0x120] sm:$0xff]  ;;  %v3080_v55 = vld [vmem:[%s3653_s18 + $0x8d8] sm:$0xff] }
 0x137   : > { %v3133_v49 = vld [vmem:[%s3653_s18 + $0xa80] sm:$0xff]  ;;  %v3187_v57 = vld [vmem:[%s3653_s18 + $0xc30] sm:$0xff]  ;;  %v2960_v58 = vld [vmem:[%s3653_s18 + $0x518] sm:$0xff]  ;;  %v1366_v3 = vadd.f32 %v1365_v47, %v1303_v46 }
 0x138   : > { %v1867_v9 = vadd.f32 %v3074_v61, %v1866_v1  ;;  %v1987_v24 = vadd.f32 %v3129_v10, %v1986_v15  ;;  %v2108_v50 = vadd.f32 %v3185_v37, %v2107_v42  ;;  %v2897_v51 = vld [vmem:[%s3653_s18 + $0x320] sm:$0xff]  ;;  %v1750_v54 = vadd.f32 %v3022_v39, %v1749_v34  ;;  %v3023_v59 = vld [vmem:[%s3653_s18 + $0x710] sm:$0xff]  ;;  %v3134_v61 = vld [vmem:[%s3653_s18 + $0xa88] sm:$0xff] }
 0x139   : > { %v3081_v63 = vld [vmem:[%s3653_s18 + $0x8e0] sm:$0xff]  ;;  %v3188_v1 = vld [vmem:[%s3653_s18 + $0xc38] sm:$0xff]  ;;  %v1304_v2 = vld [vmem:[%s3653_s18 + $0x128] sm:$0xff]  ;;  %v1495_v8 = vadd.f32 %v2897_v51, %v1494_v52 }
 0x13a   : > { %v1868_v19 = vadd.f32 %v3075_v4, %v1867_v9  ;;  %v1988_v36 = vadd.f32 %v3130_v20, %v1987_v24  ;;  %v2109_v62 = vadd.f32 %v3186_v45, %v2108_v50  ;;  %v3135_v5 = vld [vmem:[%s3653_s18 + $0xa90] sm:$0xff]  ;;  %v2898_v7 = vld [vmem:[%s3653_s18 + $0x328] sm:$0xff]  ;;  %v1623_v9 = vadd.f32 %v2960_v58, %v1622_v53  ;;  %v3189_v13 = vld [vmem:[%s3653_s18 + $0xc40] sm:$0xff] }
 0x13b   : > { %v1751_v10 = vadd.f32 %v3023_v59, %v1750_v54  ;;  %v3082_v11 = vld [vmem:[%s3653_s18 + $0x8e8] sm:$0xff]  ;;  %v3024_v15 = vld [vmem:[%s3653_s18 + $0x718] sm:$0xff]  ;;  %v1305_v22 = vld [vmem:[%s3653_s18 + $0x130] sm:$0xff] }
 0x13c   : > { %v1869_v28 = vadd.f32 %v3076_v14, %v1868_v19  ;;  %v1989_v44 = vadd.f32 %v3131_v29, %v1988_v36  ;;  %v2110_v6 = vadd.f32 %v3187_v57, %v2109_v62  ;;  %v2961_v14 = vld [vmem:[%s3653_s18 + $0x520] sm:$0xff]  ;;  %v3136_v17 = vld [vmem:[%s3653_s18 + $0xa98] sm:$0xff]  ;;  %v3083_v19 = vld [vmem:[%s3653_s18 + $0x8f0] sm:$0xff] }
 0x13d   : > { %v3190_v21 = vld [vmem:[%s3653_s18 + $0xc48] sm:$0xff]  ;;  %v3137_v25 = vld [vmem:[%s3653_s18 + $0xaa0] sm:$0xff]  ;;  %v2899_v27 = vld [vmem:[%s3653_s18 + $0x330] sm:$0xff]  ;;  %v1624_v29 = vadd.f32 %v2961_v14, %v1623_v9  ;;  %v1752_v30 = vadd.f32 %v3024_v15, %v1751_v10 }
 0x13e   : > { %v1870_v40 = vadd.f32 %v3077_v23, %v1869_v28  ;;  %v1990_v56 = vadd.f32 %v3132_v41, %v1989_v44  ;;  %v2111_v18 = vadd.f32 %v3188_v1, %v2110_v6  ;;  %v1367_v23 = vadd.f32 %v1366_v3, %v1304_v2  ;;  %v3084_v31 = vld [vmem:[%s3653_s18 + $0x8f8] sm:$0xff]  ;;  %v3191_v33 = vld [vmem:[%s3653_s18 + $0xc50] sm:$0xff]  ;;  %v2962_v34 = vld [vmem:[%s3653_s18 + $0x528] sm:$0xff] }
 0x13f   : > { %v1496_v28 = vadd.f32 %v2898_v7, %v1495_v8  ;;  %v3138_v37 = vld [vmem:[%s3653_s18 + $0xaa8] sm:$0xff]  ;;  %v1306_v39 = vld [vmem:[%s3653_s18 + $0x138] sm:$0xff]  ;;  %v2963_v45 = vld [vmem:[%s3653_s18 + $0x530] sm:$0xff]  ;;  %v1625_v50 = vadd.f32 %v2962_v34, %v1624_v29 }
 0x140   : > { %v1871_v48 = vadd.f32 %v3078_v35, %v1870_v40  ;;  %v1991_v0 = vadd.f32 %v3133_v49, %v1990_v56  ;;  %v2112_v26 = vadd.f32 %v3189_v13, %v2111_v18  ;;  %v3025_v35 = vld [vmem:[%s3653_s18 + $0x720] sm:$0xff]  ;;  %v3192_v42 = vld [vmem:[%s3653_s18 + $0xc58] sm:$0xff]  ;;  %v3139_v47 = vld [vmem:[%s3653_s18 + $0xab0] sm:$0xff] }
 0x141   : > { %v3085_v40 = vld [vmem:[%s3653_s18 + $0x900] sm:$0xff]  ;;  %v2900_v44 = vld [vmem:[%s3653_s18 + $0x338] sm:$0xff]  ;;  %v1497_v49 = vadd.f32 %v2899_v27, %v1496_v28  ;;  %v3026_v51 = vld [vmem:[%s3653_s18 + $0x728] sm:$0xff]  ;;  %v1753_v52 = vadd.f32 %v3025_v35, %v1752_v30  ;;  %v1626_v9 = vadd.f32 %v2963_v45, %v1625_v50 }
 0x142   : > { %v1872_v60 = vadd.f32 %v3079_v43, %v1871_v48  ;;  %v1992_v12 = vadd.f32 %v3134_v61, %v1991_v0  ;;  %v2113_v38 = vadd.f32 %v3190_v21, %v2112_v26  ;;  %v1368_v43 = vadd.f32 %v1367_v23, %v1305_v22  ;;  %v3086_v53 = vld [vmem:[%s3653_s18 + $0x908] sm:$0xff]  ;;  %v3087_v56 = vld [vmem:[%s3653_s18 + $0x910] sm:$0xff]  ;;  %v3140_v58 = vld [vmem:[%s3653_s18 + $0xab8] sm:$0xff] }
 0x143   : > { %v3194_v62 = vld [vmem:[%s3653_s18 + $0xc68] sm:$0xff]  ;;  %v3247_v0 = vld [vmem:[%s3653_s18 + $0xe10] sm:$0xff]  ;;  %v1307_v1 = vld [vmem:[%s3653_s18 + $0x140] sm:$0xff]  ;;  %v1498_v8 = vadd.f32 %v2900_v44, %v1497_v49  ;;  %v1754_v10 = vadd.f32 %v3026_v51, %v1753_v52 }
 0x144   : > { %v1873_v4 = vadd.f32 %v3080_v55, %v1872_v60  ;;  %v1993_v20 = vadd.f32 %v3135_v5, %v1992_v12  ;;  %v2114_v48 = vadd.f32 %v3191_v33, %v2113_v38  ;;  %v3193_v55 = vld [vmem:[%s3653_s18 + $0xc60] sm:$0xff]  ;;  %v1369_v2 = vadd.f32 %v1368_v43, %v1306_v39  ;;  %v3195_v13 = vld [vmem:[%s3653_s18 + $0xc70] sm:$0xff]  ;;  %v3248_v14 = vld [vmem:[%s3653_s18 + $0xe18] sm:$0xff] }
 0x145   : > { %v3245_v60 = vld [vmem:[%s3653_s18 + $0xe00] sm:$0xff]  ;;  %v2964_v15 = vld [vmem:[%s3653_s18 + $0x538] sm:$0xff]  ;;  %v3142_v18 = vld [vmem:[%s3653_s18 + $0xac8] sm:$0xff] }
 0x146   : > { %v1874_v16 = vadd.f32 %v3081_v63, %v1873_v4  ;;  %v1994_v32 = vadd.f32 %v3136_v17, %v1993_v20  ;;  %v2115_v59 = vadd.f32 %v3192_v42, %v2114_v48  ;;  %v3246_v63 = vld [vmem:[%s3653_s18 + $0xe08] sm:$0xff]  ;;  %v2901_v3 = vld [vmem:[%s3653_s18 + $0x340] sm:$0xff]  ;;  %v3196_v23 = vld [vmem:[%s3653_s18 + $0xc78] sm:$0xff]  ;;  %v1370_v26 = vadd.f32 %v1369_v2, %v1307_v1 }
 0x147   : > { %v3141_v5 = vld [vmem:[%s3653_s18 + $0xac0] sm:$0xff]  ;;  %v2234_v7 = vadd.f32 %v3246_v63, %v3245_v60  ;;  %v2902_v27 = vld [vmem:[%s3653_s18 + $0x348] sm:$0xff]  ;;  %v3143_v29 = vld [vmem:[%s3653_s18 + $0xad0] sm:$0xff]  ;;  %v1627_v33 = vadd.f32 %v2964_v15, %v1626_v9 }
 0x148   : > { %v1875_v24 = vadd.f32 %v3082_v11, %v1874_v16  ;;  %v1995_v41 = vadd.f32 %v3137_v25, %v1994_v32  ;;  %v2116_v6 = vadd.f32 %v3193_v55, %v2115_v59  ;;  %v3088_v11 = vld [vmem:[%s3653_s18 + $0x918] sm:$0xff]  ;;  %v3027_v16 = vld [vmem:[%s3653_s18 + $0x730] sm:$0xff]  ;;  %v3089_v21 = vld [vmem:[%s3653_s18 + $0x920] sm:$0xff]  ;;  %v1499_v32 = vadd.f32 %v2901_v3, %v1498_v8 }
 0x149   : > { %v2235_v20 = vadd.f32 %v3247_v0, %v2234_v7  ;;  %v1308_v25 = vld [vmem:[%s3653_s18 + $0x148] sm:$0xff]  ;;  %v1755_v34 = vadd.f32 %v3027_v16, %v1754_v10  ;;  %v2965_v39 = vld [vmem:[%s3653_s18 + $0x540] sm:$0xff]  ;;  %v3144_v42 = vld [vmem:[%s3653_s18 + $0xad8] sm:$0xff] }
 0x14a   : > { %v1876_v36 = vadd.f32 %v3083_v19, %v1875_v24  ;;  %v1996_v54 = vadd.f32 %v3138_v37, %v1995_v41  ;;  %v2117_v19 = vadd.f32 %v3194_v62, %v2116_v6  ;;  %v3249_v24 = vld [vmem:[%s3653_s18 + $0xe20] sm:$0xff]  ;;  %v3090_v35 = vld [vmem:[%s3653_s18 + $0x928] sm:$0xff]  ;;  %v3091_v45 = vld [vmem:[%s3653_s18 + $0x930] sm:$0xff]  ;;  %v1371_v50 = vadd.f32 %v1370_v26, %v1308_v25 }
 0x14b   : > { %v3197_v37 = vld [vmem:[%s3653_s18 + $0xc80] sm:$0xff]  ;;  %v3250_v38 = vld [vmem:[%s3653_s18 + $0xe28] sm:$0xff]  ;;  %v3251_v48 = vld [vmem:[%s3653_s18 + $0xe30] sm:$0xff] }
 0x14c   : > { %v1877_v46 = vadd.f32 %v3084_v31, %v1876_v36  ;;  %v1997_v61 = vadd.f32 %v3139_v47, %v1996_v54  ;;  %v2118_v30 = vadd.f32 %v3195_v13, %v2117_v19  ;;  %v2236_v31 = vadd.f32 %v3248_v14, %v2235_v20  ;;  %v3198_v47 = vld [vmem:[%s3653_s18 + $0xc88] sm:$0xff]  ;;  %v1309_v49 = vld [vmem:[%s3653_s18 + $0x150] sm:$0xff]  ;;  %v3145_v52 = vld [vmem:[%s3653_s18 + $0xae0] sm:$0xff] }
 0x14d   : > { %v2903_v55 = vld [vmem:[%s3653_s18 + $0x350] sm:$0xff]  ;;  %v2966_v62 = vld [vmem:[%s3653_s18 + $0x548] sm:$0xff]  ;;  %v3029_v63 = vld [vmem:[%s3653_s18 + $0x740] sm:$0xff]  ;;  %v1372_v9 = vadd.f32 %v1371_v50, %v1309_v49 }
 0x14e   : > { %v1878_v57 = vadd.f32 %v3085_v40, %v1877_v46  ;;  %v1998_v12 = vadd.f32 %v3140_v58, %v1997_v61  ;;  %v3028_v40 = vld [vmem:[%s3653_s18 + $0x738] sm:$0xff]  ;;  %v2119_v43 = vadd.f32 %v3196_v23, %v2118_v30  ;;  %v2237_v44 = vadd.f32 %v3249_v24, %v2236_v31  ;;  %v3199_v60 = vld [vmem:[%s3653_s18 + $0xc90] sm:$0xff]  ;;  %v3146_v1 = vld [vmem:[%s3653_s18 + $0xae8] sm:$0xff] }
 0x14f   : > { %v1756_v58 = vadd.f32 %v3028_v40, %v1755_v34  ;;  %v3252_v61 = vld [vmem:[%s3653_s18 + $0xe38] sm:$0xff]  ;;  %v3253_v7 = vld [vmem:[%s3653_s18 + $0xe40] sm:$0xff]  ;;  %v3147_v10 = vld [vmem:[%s3653_s18 + $0xaf0] sm:$0xff] }
 0x150   : > { %v1879_v4 = vadd.f32 %v3086_v53, %v1878_v57  ;;  %v1999_v22 = vadd.f32 %v3141_v5, %v1998_v12  ;;  %v2120_v53 = vadd.f32 %v3197_v37, %v2119_v43  ;;  %v2238_v54 = vadd.f32 %v3250_v38, %v2237_v44  ;;  %v3200_v6 = vld [vmem:[%s3653_s18 + $0xc98] sm:$0xff]  ;;  %v3254_v19 = vld [vmem:[%s3653_s18 + $0xe48] sm:$0xff]  ;;  %v2967_v20 = vld [vmem:[%s3653_s18 + $0x550] sm:$0xff] }
 0x151   : > { %v1628_v57 = vadd.f32 %v2965_v39, %v1627_v33  ;;  %v1310_v8 = vld [vmem:[%s3653_s18 + $0x158] sm:$0xff]  ;;  %v1757_v16 = vadd.f32 %v3029_v63, %v1756_v58  ;;  %v3093_v26 = vld [vmem:[%s3653_s18 + $0x940] sm:$0xff]  ;;  %v3203_v40 = vld [vmem:[%s3653_s18 + $0xcb0] sm:$0xff] }
 0x152   : > { %v1880_v17 = vadd.f32 %v3087_v56, %v1879_v4  ;;  %v2000_v36 = vadd.f32 %v3142_v18, %v1999_v22  ;;  %v1500_v56 = vadd.f32 %v2902_v27, %v1499_v32  ;;  %v2121_v2 = vadd.f32 %v3198_v47, %v2120_v53  ;;  %v3092_v4 = vld [vmem:[%s3653_s18 + $0x938] sm:$0xff]  ;;  %v3201_v18 = vld [vmem:[%s3653_s18 + $0xca0] sm:$0xff]  ;;  %v3031_v43 = vld [vmem:[%s3653_s18 + $0x750] sm:$0xff] }
 0x153   : > { %v2239_v3 = vadd.f32 %v3251_v48, %v2238_v54  ;;  %v2904_v13 = vld [vmem:[%s3653_s18 + $0x358] sm:$0xff]  ;;  %v1629_v15 = vadd.f32 %v2966_v62, %v1628_v57  ;;  %v1311_v30 = vld [vmem:[%s3653_s18 + $0x160] sm:$0xff]  ;;  %v1373_v31 = vadd.f32 %v1372_v9, %v1310_v8  ;;  %v3094_v48 = vld [vmem:[%s3653_s18 + $0x948] sm:$0xff] }
 0x154   : > { %v1881_v28 = vadd.f32 %v3088_v11, %v1880_v17  ;;  %v2001_v46 = vadd.f32 %v3143_v29, %v2000_v36  ;;  %v2122_v11 = vadd.f32 %v3199_v60, %v2121_v2  ;;  %v1501_v14 = vadd.f32 %v2903_v55, %v1500_v56  ;;  %v3148_v23 = vld [vmem:[%s3653_s18 + $0xaf8] sm:$0xff]  ;;  %v3255_v29 = vld [vmem:[%s3653_s18 + $0xe50] sm:$0xff]  ;;  %v3149_v32 = vld [vmem:[%s3653_s18 + $0xb00] sm:$0xff] }
 0x155   : > { %v2240_v12 = vadd.f32 %v3252_v61, %v2239_v3  ;;  %v1630_v37 = vadd.f32 %v2967_v20, %v1629_v15  ;;  %v3204_v50 = vld [vmem:[%s3653_s18 + $0xcb8] sm:$0xff]  ;;  %v1374_v53 = vadd.f32 %v1373_v31, %v1311_v30  ;;  %v3151_v54 = vld [vmem:[%s3653_s18 + $0xb10] sm:$0xff]  ;;  %v2906_v57 = vld [vmem:[%s3653_s18 + $0x368] sm:$0xff] }
 0x156   : > { %v1882_v41 = vadd.f32 %v3089_v21, %v1881_v28  ;;  %v2002_v59 = vadd.f32 %v3144_v42, %v2001_v46  ;;  %v3030_v21 = vld [vmem:[%s3653_s18 + $0x748] sm:$0xff]  ;;  %v2123_v24 = vadd.f32 %v3200_v6, %v2122_v11  ;;  %v1502_v36 = vadd.f32 %v2904_v13, %v1501_v14  ;;  %v2968_v42 = vld [vmem:[%s3653_s18 + $0x558] sm:$0xff]  ;;  %v3205_v62 = vld [vmem:[%s3653_s18 + $0xcc0] sm:$0xff] }
 0x157   : > { %v2241_v25 = vadd.f32 %v3253_v7, %v2240_v12  ;;  %v3202_v28 = vld [vmem:[%s3653_s18 + $0xca8] sm:$0xff]  ;;  %v1758_v38 = vadd.f32 %v3030_v21, %v1757_v16  ;;  %v3152_v3 = vld [vmem:[%s3653_s18 + $0xb18] sm:$0xff]  ;;  %v3095_v6 = vld [vmem:[%s3653_s18 + $0x950] sm:$0xff] }
 0x158   : > { %v1883_v51 = vadd.f32 %v3090_v35, %v1882_v41  ;;  %v2003_v5 = vadd.f32 %v3145_v52, %v2002_v59  ;;  %v2124_v33 = vadd.f32 %v3201_v18, %v2123_v24  ;;  %v2905_v35 = vld [vmem:[%s3653_s18 + $0x360] sm:$0xff]  ;;  %v3256_v41 = vld [vmem:[%s3653_s18 + $0xe58] sm:$0xff]  ;;  %v1312_v52 = vld [vmem:[%s3653_s18 + $0x168] sm:$0xff]  ;;  %v1631_v59 = vadd.f32 %v2968_v42, %v1630_v37 }
 0x159   : > { %v2242_v34 = vadd.f32 %v3254_v19, %v2241_v25  ;;  %v1503_v58 = vadd.f32 %v2905_v35, %v1502_v36  ;;  %v1759_v60 = vadd.f32 %v3031_v43, %v1758_v38  ;;  %v3258_v63 = vld [vmem:[%s3653_s18 + $0xe68] sm:$0xff]  ;;  %v3259_v9 = vld [vmem:[%s3653_s18 + $0xe70] sm:$0xff]  ;;  %v1375_v11 = vadd.f32 %v1374_v53, %v1312_v52  ;;  %v3153_v12 = vld [vmem:[%s3653_s18 + $0xb20] sm:$0xff] }
 0x15a   : > { %v1884_v0 = vadd.f32 %v3091_v45, %v1883_v51  ;;  %v2004_v17 = vadd.f32 %v3146_v1, %v2003_v5  ;;  %v3150_v45 = vld [vmem:[%s3653_s18 + $0xb08] sm:$0xff]  ;;  %v2125_v46 = vadd.f32 %v3202_v28, %v2124_v33  ;;  %v3257_v51 = vld [vmem:[%s3653_s18 + $0xe60] sm:$0xff]  ;;  %v3032_v1 = vld [vmem:[%s3653_s18 + $0x758] sm:$0xff] }
 0x15b   : > { %v2243_v47 = vadd.f32 %v3255_v29, %v2242_v34  ;;  %v3206_v8 = vld [vmem:[%s3653_s18 + $0xcc8] sm:$0xff]  ;;  %v2907_v15 = vld [vmem:[%s3653_s18 + $0x370] sm:$0xff]  ;;  %v1504_v16 = vadd.f32 %v2906_v57, %v1503_v58  ;;  %v1760_v18 = vadd.f32 %v3032_v1, %v1759_v60  ;;  %v3260_v21 = vld [vmem:[%s3653_s18 + $0xe78] sm:$0xff] }
 0x15c   : > { %v1885_v22 = vadd.f32 %v3092_v4, %v1884_v0  ;;  %v2005_v27 = vadd.f32 %v3147_v10, %v2004_v17  ;;  %v2126_v55 = vadd.f32 %v3203_v40, %v2125_v46  ;;  %v2969_v0 = vld [vmem:[%s3653_s18 + $0x560] sm:$0xff]  ;;  %v1313_v10 = vld [vmem:[%s3653_s18 + $0x170] sm:$0xff]  ;;  %v3154_v25 = vld [vmem:[%s3653_s18 + $0xb28] sm:$0xff] }
 0x15d   : > { %v2244_v56 = vadd.f32 %v3256_v41, %v2243_v47  ;;  %v1632_v17 = vadd.f32 %v2969_v0, %v1631_v59  ;;  %v3207_v20 = vld [vmem:[%s3653_s18 + $0xcd0] sm:$0xff]  ;;  %v3096_v28 = vld [vmem:[%s3653_s18 + $0x958] sm:$0xff]  ;;  %v3261_v31 = vld [vmem:[%s3653_s18 + $0xe80] sm:$0xff]  ;;  %v1376_v33 = vadd.f32 %v1375_v11, %v1313_v10  ;;  %v1505_v38 = vadd.f32 %v2907_v15, %v1504_v16 }
 0x15e   : > { %v2006_v39 = vadd.f32 %v3148_v23, %v2005_v27  ;;  %v1886_v44 = vadd.f32 %v3093_v26, %v1885_v22  ;;  %v2127_v4 = vadd.f32 %v3204_v50, %v2126_v55  ;;  %v2970_v22 = vld [vmem:[%s3653_s18 + $0x568] sm:$0xff]  ;;  %v3033_v23 = vld [vmem:[%s3653_s18 + $0x760] sm:$0xff]  ;;  %v3208_v30 = vld [vmem:[%s3653_s18 + $0xcd8] sm:$0xff] }
 0x15f   : > { %v2245_v5 = vadd.f32 %v3257_v51, %v2244_v56  ;;  %v3155_v34 = vld [vmem:[%s3653_s18 + $0xb30] sm:$0xff]  ;;  %v2908_v37 = vld [vmem:[%s3653_s18 + $0x378] sm:$0xff]  ;;  %v1761_v40 = vadd.f32 %v3033_v23, %v1760_v18  ;;  %v3209_v42 = vld [vmem:[%s3653_s18 + $0xce0] sm:$0xff] }
 0x160   : > { %v2007_v49 = vadd.f32 %v3149_v32, %v2006_v39  ;;  %v1887_v2 = vadd.f32 %v3094_v48, %v1886_v44  ;;  %v2128_v13 = vadd.f32 %v3205_v62, %v2127_v4  ;;  %v1314_v32 = vld [vmem:[%s3653_s18 + $0x178] sm:$0xff]  ;;  %v1633_v39 = vadd.f32 %v2970_v22, %v1632_v17  ;;  %v3262_v43 = vld [vmem:[%s3653_s18 + $0xe88] sm:$0xff]  ;;  %v2971_v44 = vld [vmem:[%s3653_s18 + $0x570] sm:$0xff] }
 0x161   : > { %v2246_v14 = vadd.f32 %v3258_v63, %v2245_v5  ;;  %v3156_v47 = vld [vmem:[%s3653_s18 + $0xb38] sm:$0xff]  ;;  %v3097_v50 = vld [vmem:[%s3653_s18 + $0x960] sm:$0xff]  ;;  %v3210_v52 = vld [vmem:[%s3653_s18 + $0xce8] sm:$0xff]  ;;  %v1377_v55 = vadd.f32 %v1376_v33, %v1314_v32  ;;  %v1506_v60 = vadd.f32 %v2908_v37, %v1505_v38 }
 0x162   : > { %v2008_v61 = vadd.f32 %v3150_v45, %v2007_v49  ;;  %v1888_v24 = vadd.f32 %v3095_v6, %v1887_v2  ;;  %v2129_v26 = vadd.f32 %v3206_v8, %v2128_v13  ;;  %v3034_v45 = vld [vmem:[%s3653_s18 + $0x768] sm:$0xff]  ;;  %v3263_v53 = vld [vmem:[%s3653_s18 + $0xe90] sm:$0xff]  ;;  %v3157_v56 = vld [vmem:[%s3653_s18 + $0xb40] sm:$0xff] }
 0x163   : > { %v2247_v27 = vadd.f32 %v3259_v9, %v2246_v14  ;;  %v2909_v59 = vld [vmem:[%s3653_s18 + $0x380] sm:$0xff]  ;;  %v1762_v62 = vadd.f32 %v3034_v45, %v1761_v40  ;;  %v3211_v0 = vld [vmem:[%s3653_s18 + $0xcf0] sm:$0xff]  ;;  %v3264_v1 = vld [vmem:[%s3653_s18 + $0xe98] sm:$0xff] }
 0x164   : > { %v2009_v7 = vadd.f32 %v3151_v54, %v2008_v61  ;;  %v2130_v35 = vadd.f32 %v3207_v20, %v2129_v26  ;;  %v1889_v46 = vadd.f32 %v3096_v28, %v1888_v24  ;;  %v1315_v54 = vld [vmem:[%s3653_s18 + $0x180] sm:$0xff]  ;;  %v1634_v61 = vadd.f32 %v2971_v44, %v1633_v39  ;;  %v2972_v2 = vld [vmem:[%s3653_s18 + $0x578] sm:$0xff]  ;;  %v3158_v5 = vld [vmem:[%s3653_s18 + $0xb48] sm:$0xff] }
 0x165   : > { %v2248_v36 = vadd.f32 %v3260_v21, %v2247_v27  ;;  %v3098_v8 = vld [vmem:[%s3653_s18 + $0x968] sm:$0xff]  ;;  %v3212_v10 = vld [vmem:[%s3653_s18 + $0xcf8] sm:$0xff]  ;;  %v3265_v11 = vld [vmem:[%s3653_s18 + $0xea0] sm:$0xff]  ;;  %v1378_v13 = vadd.f32 %v1377_v55, %v1315_v54  ;;  %v1507_v18 = vadd.f32 %v2909_v59, %v1506_v60 }
 0x166   : > { %v2010_v19 = vadd.f32 %v3152_v3, %v2009_v7  ;;  %v2131_v48 = vadd.f32 %v3208_v30, %v2130_v35  ;;  %v3035_v3 = vld [vmem:[%s3653_s18 + $0x770] sm:$0xff]  ;;  %v1890_v4 = vadd.f32 %v3097_v50, %v1889_v46  ;;  %v2910_v17 = vld [vmem:[%s3653_s18 + $0x388] sm:$0xff]  ;;  %v3213_v22 = vld [vmem:[%s3653_s18 + $0xd00] sm:$0xff] }
 0x167   : > { %v2249_v49 = vadd.f32 %v3261_v31, %v2248_v36  ;;  %v3159_v14 = vld [vmem:[%s3653_s18 + $0xb50] sm:$0xff]  ;;  %v1763_v20 = vadd.f32 %v3035_v3, %v1762_v62  ;;  %v3266_v23 = vld [vmem:[%s3653_s18 + $0xea8] sm:$0xff]  ;;  %v2973_v24 = vld [vmem:[%s3653_s18 + $0x580] sm:$0xff]  ;;  %v1508_v40 = vadd.f32 %v2910_v17, %v1507_v18 }
 0x168   : > { %v2011_v29 = vadd.f32 %v3153_v12, %v2010_v19  ;;  %v2132_v57 = vadd.f32 %v3209_v42, %v2131_v48  ;;  %v1316_v12 = vld [vmem:[%s3653_s18 + $0x188] sm:$0xff]  ;;  %v1635_v19 = vadd.f32 %v2972_v2, %v1634_v61  ;;  %v1891_v26 = vadd.f32 %v3098_v8, %v1890_v4  ;;  %v3160_v27 = vld [vmem:[%s3653_s18 + $0xb58] sm:$0xff]  ;;  %v3099_v30 = vld [vmem:[%s3653_s18 + $0x970] sm:$0xff] }
 0x169   : > { %v2250_v58 = vadd.f32 %v3262_v43, %v2249_v49  ;;  %v3214_v32 = vld [vmem:[%s3653_s18 + $0xd08] sm:$0xff]  ;;  %v3267_v33 = vld [vmem:[%s3653_s18 + $0xeb0] sm:$0xff]  ;;  %v1379_v35 = vadd.f32 %v1378_v13, %v1316_v12  ;;  %v3161_v36 = vld [vmem:[%s3653_s18 + $0xb60] sm:$0xff] }
 0x16a   : > { %v2012_v41 = vadd.f32 %v3154_v25, %v2011_v29  ;;  %v2133_v6 = vadd.f32 %v3210_v52, %v2132_v57  ;;  %v3036_v25 = vld [vmem:[%s3653_s18 + $0x778] sm:$0xff]  ;;  %v2911_v39 = vld [vmem:[%s3653_s18 + $0x390] sm:$0xff]  ;;  %v2974_v46 = vld [vmem:[%s3653_s18 + $0x588] sm:$0xff]  ;;  %v1892_v48 = vadd.f32 %v3099_v30, %v1891_v26 }
 0x16b   : > { %v2251_v7 = vadd.f32 %v3263_v53, %v2250_v58  ;;  %v1764_v42 = vadd.f32 %v3036_v25, %v1763_v20  ;;  %v3215_v44 = vld [vmem:[%s3653_s18 + $0xd10] sm:$0xff]  ;;  %v3268_v45 = vld [vmem:[%s3653_s18 + $0xeb8] sm:$0xff]  ;;  %v3162_v49 = vld [vmem:[%s3653_s18 + $0xb68] sm:$0xff]  ;;  %v1509_v62 = vadd.f32 %v2911_v39, %v1508_v40 }
 0x16c   : > { %v2013_v51 = vadd.f32 %v3155_v34, %v2012_v41  ;;  %v2134_v15 = vadd.f32 %v3211_v0, %v2133_v6  ;;  %v1317_v34 = vld [vmem:[%s3653_s18 + $0x190] sm:$0xff]  ;;  %v1636_v41 = vadd.f32 %v2973_v24, %v1635_v19  ;;  %v3100_v52 = vld [vmem:[%s3653_s18 + $0x978] sm:$0xff]  ;;  %v3269_v55 = vld [vmem:[%s3653_s18 + $0xec0] sm:$0xff] }
 0x16d   : > { %v2252_v16 = vadd.f32 %v3264_v1, %v2251_v7  ;;  %v3216_v54 = vld [vmem:[%s3653_s18 + $0xd18] sm:$0xff]  ;;  %v1380_v57 = vadd.f32 %v1379_v35, %v1317_v34  ;;  %v3163_v58 = vld [vmem:[%s3653_s18 + $0xb70] sm:$0xff]  ;;  %v3217_v2 = vld [vmem:[%s3653_s18 + $0xd20] sm:$0xff]  ;;  %v1893_v7 = vadd.f32 %v3100_v52, %v1892_v48 }
 0x16e   : > { %v2014_v63 = vadd.f32 %v3156_v47, %v2013_v51  ;;  %v2135_v28 = vadd.f32 %v3212_v10, %v2134_v15  ;;  %v3037_v47 = vld [vmem:[%s3653_s18 + $0x780] sm:$0xff]  ;;  %v2912_v61 = vld [vmem:[%s3653_s18 + $0x398] sm:$0xff]  ;;  %v3270_v3 = vld [vmem:[%s3653_s18 + $0xec8] sm:$0xff] }
 0x16f   : > { %v2253_v29 = vadd.f32 %v3265_v11, %v2252_v16  ;;  %v1765_v0 = vadd.f32 %v3037_v47, %v1764_v42  ;;  %v2975_v4 = vld [vmem:[%s3653_s18 + $0x590] sm:$0xff]  ;;  %v3101_v6 = vld [vmem:[%s3653_s18 + $0x980] sm:$0xff]  ;;  %v3164_v10 = vld [vmem:[%s3653_s18 + $0xb78] sm:$0xff]  ;;  %v1510_v19 = vadd.f32 %v2912_v61, %v1509_v62 }
 0x170   : > { %v2015_v9 = vadd.f32 %v3157_v56, %v2014_v63  ;;  %v2136_v37 = vadd.f32 %v3213_v22, %v2135_v28  ;;  %v1318_v56 = vld [vmem:[%s3653_s18 + $0x198] sm:$0xff]  ;;  %v1637_v63 = vadd.f32 %v2974_v46, %v1636_v41  ;;  %v3218_v12 = vld [vmem:[%s3653_s18 + $0xd28] sm:$0xff]  ;;  %v3271_v13 = vld [vmem:[%s3653_s18 + $0xed0] sm:$0xff] }
 0x171   : > { %v2254_v38 = vadd.f32 %v3266_v23, %v2253_v29  ;;  %v1381_v17 = vadd.f32 %v1380_v57, %v1318_v56  ;;  %v2913_v18 = vld [vmem:[%s3653_s18 + $0x3a0] sm:$0xff]  ;;  %v3219_v22 = vld [vmem:[%s3653_s18 + $0xd30] sm:$0xff]  ;;  %v3272_v23 = vld [vmem:[%s3653_s18 + $0xed8] sm:$0xff] }
 0x172   : > { %v2016_v21 = vadd.f32 %v3158_v5, %v2015_v9  ;;  %v2137_v50 = vadd.f32 %v3214_v32, %v2136_v37  ;;  %v3038_v5 = vld [vmem:[%s3653_s18 + $0x788] sm:$0xff]  ;;  %v1638_v20 = vadd.f32 %v2975_v4, %v1637_v63  ;;  %v2976_v24 = vld [vmem:[%s3653_s18 + $0x598] sm:$0xff]  ;;  %v3039_v25 = vld [vmem:[%s3653_s18 + $0x790] sm:$0xff]  ;;  %v1511_v39 = vadd.f32 %v2913_v18, %v1510_v19 }
 0x173   : > { %v2255_v51 = vadd.f32 %v3267_v33, %v2254_v38  ;;  %v3102_v26 = vld [vmem:[%s3653_s18 + $0x988] sm:$0xff]  ;;  %v3220_v32 = vld [vmem:[%s3653_s18 + $0xd38] sm:$0xff]  ;;  %v3273_v33 = vld [vmem:[%s3653_s18 + $0xee0] sm:$0xff] }
 0x174   : > { %v2017_v31 = vadd.f32 %v3159_v14, %v2016_v21  ;;  %v2138_v59 = vadd.f32 %v3215_v44, %v2137_v50  ;;  %v1319_v14 = vld [vmem:[%s3653_s18 + $0x1a0] sm:$0xff]  ;;  %v1766_v21 = vadd.f32 %v3038_v5, %v1765_v0  ;;  %v1320_v34 = vld [vmem:[%s3653_s18 + $0x1a8] sm:$0xff]  ;;  %v1639_v40 = vadd.f32 %v2976_v24, %v1638_v20  ;;  %v3103_v46 = vld [vmem:[%s3653_s18 + $0x990] sm:$0xff] }
 0x175   : > { %v2256_v60 = vadd.f32 %v3268_v45, %v2255_v51  ;;  %v1382_v37 = vadd.f32 %v1381_v17, %v1319_v14  ;;  %v2914_v38 = vld [vmem:[%s3653_s18 + $0x3a8] sm:$0xff]  ;;  %v3221_v42 = vld [vmem:[%s3653_s18 + $0xd40] sm:$0xff]  ;;  %v3040_v45 = vld [vmem:[%s3653_s18 + $0x798] sm:$0xff] }
 0x176   : > { %v2018_v43 = vadd.f32 %v3160_v27, %v2017_v31  ;;  %v2139_v8 = vadd.f32 %v3216_v54, %v2138_v59  ;;  %v1894_v27 = vadd.f32 %v3101_v6, %v1893_v7  ;;  %v3165_v31 = vld [vmem:[%s3653_s18 + $0xb80] sm:$0xff]  ;;  %v1767_v41 = vadd.f32 %v3039_v25, %v1766_v21  ;;  %v3166_v51 = vld [vmem:[%s3653_s18 + $0xb88] sm:$0xff]  ;;  %v1321_v54 = vld [vmem:[%s3653_s18 + $0x1b0] sm:$0xff] }
 0x177   : > { %v2257_v9 = vadd.f32 %v3269_v55, %v2256_v60  ;;  %v2977_v44 = vld [vmem:[%s3653_s18 + $0x5a0] sm:$0xff]  ;;  %v3222_v52 = vld [vmem:[%s3653_s18 + $0xd48] sm:$0xff]  ;;  %v1383_v57 = vadd.f32 %v1382_v37, %v1320_v34  ;;  %v1512_v59 = vadd.f32 %v2914_v38, %v1511_v39  ;;  %v3223_v62 = vld [vmem:[%s3653_s18 + $0xd50] sm:$0xff] }
 0x178   : > { %v2019_v53 = vadd.f32 %v3161_v36, %v2018_v43  ;;  %v2140_v15 = vadd.f32 %v3217_v2, %v2139_v8  ;;  %v3274_v43 = vld [vmem:[%s3653_s18 + $0xee8] sm:$0xff]  ;;  %v1895_v47 = vadd.f32 %v3102_v26, %v1894_v27  ;;  %v1640_v60 = vadd.f32 %v2977_v44, %v1639_v40  ;;  %v3276_v63 = vld [vmem:[%s3653_s18 + $0xef8] sm:$0xff]  ;;  %v3167_v7 = vld [vmem:[%s3653_s18 + $0xb90] sm:$0xff] }
 0x179   : > { %v2258_v16 = vadd.f32 %v3270_v3, %v2257_v9  ;;  %v1768_v61 = vadd.f32 %v3040_v45, %v1767_v41  ;;  %v2978_v0 = vld [vmem:[%s3653_s18 + $0x5a8] sm:$0xff]  ;;  %v3104_v2 = vld [vmem:[%s3653_s18 + $0x998] sm:$0xff]  ;;  %v3277_v9 = vld [vmem:[%s3653_s18 + $0xf00] sm:$0xff] }
 0x17a   : > { %v2020_v1 = vadd.f32 %v3162_v49, %v2019_v53  ;;  %v2141_v29 = vadd.f32 %v3218_v12, %v2140_v15  ;;  %v3275_v53 = vld [vmem:[%s3653_s18 + $0xef0] sm:$0xff]  ;;  %v1896_v3 = vadd.f32 %v3103_v46, %v1895_v47  ;;  %v3224_v8 = vld [vmem:[%s3653_s18 + $0xd58] sm:$0xff]  ;;  %v3225_v18 = vld [vmem:[%s3653_s18 + $0xd60] sm:$0xff] }
 0x17b   : > { %v2259_v30 = vadd.f32 %v3271_v13, %v2258_v16  ;;  %v1384_v13 = vadd.f32 %v1383_v57, %v1321_v54  ;;  %v2916_v14 = vld [vmem:[%s3653_s18 + $0x3b8] sm:$0xff]  ;;  %v1641_v16 = vadd.f32 %v2978_v0, %v1640_v60  ;;  %v3278_v19 = vld [vmem:[%s3653_s18 + $0xf08] sm:$0xff]  ;;  %v2979_v20 = vld [vmem:[%s3653_s18 + $0x5b0] sm:$0xff] }
 0x17c   : > { %v2021_v11 = vadd.f32 %v3163_v58, %v2020_v1  ;;  %v2142_v35 = vadd.f32 %v3219_v22, %v2141_v29  ;;  %v2915_v58 = vld [vmem:[%s3653_s18 + $0x3b0] sm:$0xff]  ;;  %v3041_v1 = vld [vmem:[%s3653_s18 + $0x7a0] sm:$0xff]  ;;  %v3042_v21 = vld [vmem:[%s3653_s18 + $0x7a8] sm:$0xff] }
 0x17d   : > { %v2260_v36 = vadd.f32 %v3272_v23, %v2259_v30  ;;  %v1513_v15 = vadd.f32 %v2915_v58, %v1512_v59  ;;  %v1769_v17 = vadd.f32 %v3041_v1, %v1768_v61  ;;  %v3105_v22 = vld [vmem:[%s3653_s18 + $0x9a0] sm:$0xff]  ;;  %v1897_v23 = vadd.f32 %v3104_v2, %v1896_v3  ;;  %v3168_v27 = vld [vmem:[%s3653_s18 + $0xb98] sm:$0xff]  ;;  %v3279_v29 = vld [vmem:[%s3653_s18 + $0xf10] sm:$0xff] }
 0x17e   : > { %v2022_v28 = vadd.f32 %v3164_v10, %v2021_v11  ;;  %v2143_v49 = vadd.f32 %v3220_v32, %v2142_v35  ;;  %v1322_v10 = vld [vmem:[%s3653_s18 + $0x1b8] sm:$0xff]  ;;  %v1323_v30 = vld [vmem:[%s3653_s18 + $0x1c0] sm:$0xff]  ;;  %v3227_v38 = vld [vmem:[%s3653_s18 + $0xd70] sm:$0xff] }
 0x17f   : > { %v2261_v50 = vadd.f32 %v3273_v33, %v2260_v36  ;;  %v1385_v33 = vadd.f32 %v1384_v13, %v1322_v10  ;;  %v2917_v34 = vld [vmem:[%s3653_s18 + $0x3c0] sm:$0xff]  ;;  %v1514_v35 = vadd.f32 %v2916_v14, %v1513_v15  ;;  %v1642_v36 = vadd.f32 %v2979_v20, %v1641_v16  ;;  %v3280_v39 = vld [vmem:[%s3653_s18 + $0xf18] sm:$0xff]  ;;  %v3043_v41 = vld [vmem:[%s3653_s18 + $0x7b0] sm:$0xff] }
 0x180   : > { %v2023_v48 = vadd.f32 %v3165_v31, %v2022_v28  ;;  %v2144_v55 = vadd.f32 %v3221_v42, %v2143_v49  ;;  %v3226_v28 = vld [vmem:[%s3653_s18 + $0xd68] sm:$0xff]  ;;  %v1770_v37 = vadd.f32 %v3042_v21, %v1769_v17  ;;  %v2980_v40 = vld [vmem:[%s3653_s18 + $0x5b8] sm:$0xff]  ;;  %v3169_v47 = vld [vmem:[%s3653_s18 + $0xba0] sm:$0xff] }
 0x181   : > { %v2262_v56 = vadd.f32 %v3274_v43, %v2261_v50  ;;  %v3106_v42 = vld [vmem:[%s3653_s18 + $0x9a8] sm:$0xff]  ;;  %v1898_v43 = vadd.f32 %v3105_v22, %v1897_v23  ;;  %v3281_v49 = vld [vmem:[%s3653_s18 + $0xf20] sm:$0xff]  ;;  %v3044_v61 = vld [vmem:[%s3653_s18 + $0x7b8] sm:$0xff] }
 0x182   : > { %v2024_v4 = vadd.f32 %v3166_v51, %v2023_v48  ;;  %v2145_v5 = vadd.f32 %v3222_v52, %v2144_v55  ;;  %v3228_v48 = vld [vmem:[%s3653_s18 + $0xd78] sm:$0xff]  ;;  %v1324_v50 = vld [vmem:[%s3653_s18 + $0x1c8] sm:$0xff]  ;;  %v1515_v55 = vadd.f32 %v2917_v34, %v1514_v35  ;;  %v1771_v57 = vadd.f32 %v3043_v41, %v1770_v37  ;;  %v3229_v58 = vld [vmem:[%s3653_s18 + $0xd80] sm:$0xff] }
 0x183   : > { %v2263_v6 = vadd.f32 %v3275_v53, %v2262_v56  ;;  %v1386_v53 = vadd.f32 %v1385_v33, %v1323_v30  ;;  %v2918_v54 = vld [vmem:[%s3653_s18 + $0x3c8] sm:$0xff]  ;;  %v1643_v56 = vadd.f32 %v2980_v40, %v1642_v36  ;;  %v2981_v60 = vld [vmem:[%s3653_s18 + $0x5c0] sm:$0xff]  ;;  %v2919_v10 = vld [vmem:[%s3653_s18 + $0x3d0] sm:$0xff] }
 0x184   : > { %v2146_v11 = vadd.f32 %v3223_v62, %v2145_v5  ;;  %v2025_v24 = vadd.f32 %v3167_v7, %v2024_v4  ;;  %v3282_v59 = vld [vmem:[%s3653_s18 + $0xf28] sm:$0xff]  ;;  %v3107_v62 = vld [vmem:[%s3653_s18 + $0x9b0] sm:$0xff]  ;;  %v1772_v13 = vadd.f32 %v3044_v61, %v1771_v57  ;;  %v3284_v15 = vld [vmem:[%s3653_s18 + $0xf38] sm:$0xff] }
 0x185   : > { %v2264_v12 = vadd.f32 %v3276_v63, %v2263_v6  ;;  %v1899_v63 = vadd.f32 %v3106_v42, %v1898_v43  ;;  %v3170_v3 = vld [vmem:[%s3653_s18 + $0xba8] sm:$0xff]  ;;  %v3283_v5 = vld [vmem:[%s3653_s18 + $0xf30] sm:$0xff]  ;;  %v3045_v17 = vld [vmem:[%s3653_s18 + $0x7c0] sm:$0xff] }
 0x186   : > { %v2147_v25 = vadd.f32 %v3224_v8, %v2146_v11  ;;  %v2026_v44 = vadd.f32 %v3168_v27, %v2025_v24  ;;  %v3230_v4 = vld [vmem:[%s3653_s18 + $0xd88] sm:$0xff]  ;;  %v1325_v6 = vld [vmem:[%s3653_s18 + $0x1d0] sm:$0xff]  ;;  %v1516_v11 = vadd.f32 %v2918_v54, %v1515_v55  ;;  %v3232_v24 = vld [vmem:[%s3653_s18 + $0xd98] sm:$0xff]  ;;  %v1773_v33 = vadd.f32 %v3045_v17, %v1772_v13 }
 0x187   : > { %v2265_v26 = vadd.f32 %v3277_v9, %v2264_v12  ;;  %v1387_v9 = vadd.f32 %v1386_v53, %v1324_v50  ;;  %v1644_v12 = vadd.f32 %v2981_v60, %v1643_v56  ;;  %v3231_v14 = vld [vmem:[%s3653_s18 + $0xd90] sm:$0xff]  ;;  %v2982_v16 = vld [vmem:[%s3653_s18 + $0x5c8] sm:$0xff]  ;;  %v2920_v30 = vld [vmem:[%s3653_s18 + $0x3d8] sm:$0xff] }
 0x188   : > { %v2148_v31 = vadd.f32 %v3225_v18, %v2147_v25  ;;  %v2027_v0 = vadd.f32 %v3169_v47, %v2026_v44  ;;  %v3108_v18 = vld [vmem:[%s3653_s18 + $0x9b8] sm:$0xff]  ;;  %v3171_v23 = vld [vmem:[%s3653_s18 + $0xbb0] sm:$0xff]  ;;  %v3285_v25 = vld [vmem:[%s3653_s18 + $0xf40] sm:$0xff] }
 0x189   : > { %v2266_v32 = vadd.f32 %v3278_v19, %v2265_v26  ;;  %v1900_v19 = vadd.f32 %v3107_v62, %v1899_v63  ;;  %v1326_v26 = vld [vmem:[%s3653_s18 + $0x1d8] sm:$0xff]  ;;  %v3233_v34 = vld [vmem:[%s3653_s18 + $0xda0] sm:$0xff]  ;;  %v3286_v35 = vld [vmem:[%s3653_s18 + $0xf48] sm:$0xff] }
 0x18a   : > { %v2149_v45 = vadd.f32 %v3226_v28, %v2148_v31  ;;  %v2028_v20 = vadd.f32 %v3170_v3, %v2027_v0  ;;  %v1517_v31 = vadd.f32 %v2919_v10, %v1516_v11  ;;  %v2983_v36 = vld [vmem:[%s3653_s18 + $0x5d0] sm:$0xff]  ;;  %v3046_v37 = vld [vmem:[%s3653_s18 + $0x7c8] sm:$0xff]  ;;  %v3172_v43 = vld [vmem:[%s3653_s18 + $0xbb8] sm:$0xff] }
 0x18b   : > { %v2267_v46 = vadd.f32 %v3279_v29, %v2266_v32  ;;  %v1388_v29 = vadd.f32 %v1387_v9, %v1325_v6  ;;  %v1645_v32 = vadd.f32 %v2982_v16, %v1644_v12  ;;  %v3234_v44 = vld [vmem:[%s3653_s18 + $0xda8] sm:$0xff]  ;;  %v2921_v50 = vld [vmem:[%s3653_s18 + $0x3e0] sm:$0xff]  ;;  %v1774_v53 = vadd.f32 %v3046_v37, %v1773_v33  ;;  %v3235_v54 = vld [vmem:[%s3653_s18 + $0xdb0] sm:$0xff] }
 0x18c   : > { %v2150_v51 = vadd.f32 %v3227_v38, %v2149_v45  ;;  %v3109_v38 = vld [vmem:[%s3653_s18 + $0x9c0] sm:$0xff]  ;;  %v2029_v40 = vadd.f32 %v3171_v23, %v2028_v20  ;;  %v3287_v45 = vld [vmem:[%s3653_s18 + $0xf50] sm:$0xff]  ;;  %v3288_v55 = vld [vmem:[%s3653_s18 + $0xf58] sm:$0xff] }
 0x18d   : > { %v2268_v52 = vadd.f32 %v3280_v39, %v2267_v46  ;;  %v1901_v39 = vadd.f32 %v3108_v18, %v1900_v19  ;;  %v1327_v46 = vld [vmem:[%s3653_s18 + $0x1e0] sm:$0xff]  ;;  %v2984_v56 = vld [vmem:[%s3653_s18 + $0x5d8] sm:$0xff]  ;;  %v3047_v57 = vld [vmem:[%s3653_s18 + $0x7d0] sm:$0xff] }
 0x18e   : > { %v2151_v1 = vadd.f32 %v3228_v48, %v2150_v51  ;;  %v1518_v51 = vadd.f32 %v2920_v30, %v1517_v31  ;;  %v2030_v60 = vadd.f32 %v3172_v43, %v2029_v40  ;;  %v3173_v63 = vld [vmem:[%s3653_s18 + $0xbc0] sm:$0xff]  ;;  %v3236_v0 = vld [vmem:[%s3653_s18 + $0xdb8] sm:$0xff]  ;;  %v2922_v6 = vld [vmem:[%s3653_s18 + $0x3e8] sm:$0xff]  ;;  %v1775_v9 = vadd.f32 %v3047_v57, %v1774_v53 }
 0x18f   : > { %v2269_v2 = vadd.f32 %v3281_v49, %v2268_v52  ;;  %v1389_v49 = vadd.f32 %v1388_v29, %v1326_v26  ;;  %v1646_v52 = vadd.f32 %v2983_v36, %v1645_v32  ;;  %v3290_v10 = vld [vmem:[%s3653_s18 + $0xf68] sm:$0xff]  ;;  %v2985_v11 = vld [vmem:[%s3653_s18 + $0x5e0] sm:$0xff]  ;;  %v3048_v12 = vld [vmem:[%s3653_s18 + $0x7d8] sm:$0xff] }
 0x190   : > { %v2152_v7 = vadd.f32 %v3229_v58, %v2151_v1  ;;  %v3110_v58 = vld [vmem:[%s3653_s18 + $0x9c8] sm:$0xff]  ;;  %v3289_v1 = vld [vmem:[%s3653_s18 + $0xf60] sm:$0xff]  ;;  %v3111_v13 = vld [vmem:[%s3653_s18 + $0x9d0] sm:$0xff] }
 0x191   : > { %v2270_v8 = vadd.f32 %v3282_v59, %v2269_v2  ;;  %v1902_v59 = vadd.f32 %v3109_v38, %v1901_v39  ;;  %v3174_v18 = vld [vmem:[%s3653_s18 + $0xbc8] sm:$0xff]  ;;  %v3237_v19 = vld [vmem:[%s3653_s18 + $0xdc0] sm:$0xff]  ;;  %v3291_v20 = vld [vmem:[%s3653_s18 + $0xf70] sm:$0xff] }
 0x192   : > { %v2153_v21 = vadd.f32 %v3230_v4, %v2152_v7  ;;  %v1328_v4 = vld [vmem:[%s3653_s18 + $0x1e8] sm:$0xff]  ;;  %v1519_v7 = vadd.f32 %v2921_v50, %v1518_v51  ;;  %v3049_v30 = vld [vmem:[%s3653_s18 + $0x7e0] sm:$0xff]  ;;  %v3112_v31 = vld [vmem:[%s3653_s18 + $0x9d8] sm:$0xff] }
 0x193   : > { %v2271_v22 = vadd.f32 %v3283_v5, %v2270_v8  ;;  %v1390_v5 = vadd.f32 %v1389_v49, %v1327_v46  ;;  %v1647_v8 = vadd.f32 %v2984_v56, %v1646_v52  ;;  %v2986_v29 = vld [vmem:[%s3653_s18 + $0x5e8] sm:$0xff]  ;;  %v3175_v36 = vld [vmem:[%s3653_s18 + $0xbd0] sm:$0xff]  ;;  %v3293_v38 = vld [vmem:[%s3653_s18 + $0xf80] sm:$0xff] }
 0x194   : > { %v2154_v27 = vadd.f32 %v3231_v14, %v2153_v21  ;;  %v1903_v14 = vadd.f32 %v3110_v58, %v1902_v59  ;;  %v3238_v37 = vld [vmem:[%s3653_s18 + $0xdc8] sm:$0xff]  ;;  %v1330_v40 = vld [vmem:[%s3653_s18 + $0x1f8] sm:$0xff]  ;;  %v3113_v49 = vld [vmem:[%s3653_s18 + $0x9e0] sm:$0xff] }
 0x195   : > { %v2272_v28 = vadd.f32 %v3284_v15, %v2271_v22  ;;  %v2031_v15 = vadd.f32 %v3173_v63, %v2030_v60  ;;  %v1329_v22 = vld [vmem:[%s3653_s18 + $0x1f0] sm:$0xff]  ;;  %v1391_v23 = vadd.f32 %v1390_v5, %v1328_v4  ;;  %v1648_v26 = vadd.f32 %v2985_v11, %v1647_v8  ;;  %v3294_v46 = vld [vmem:[%s3653_s18 + $0xf88] sm:$0xff]  ;;  %v2988_v63 = vld [vmem:[%s3653_s18 + $0x5f8] sm:$0xff] }
 0x196   : > { %v2155_v41 = vadd.f32 %v3232_v24, %v2154_v27  ;;  %v2923_v24 = vld [vmem:[%s3653_s18 + $0x3f0] sm:$0xff]  ;;  %v1776_v27 = vadd.f32 %v3048_v12, %v1775_v9  ;;  %v1904_v32 = vadd.f32 %v3111_v13, %v1903_v14  ;;  %v3297_v8 = vld [vmem:[%s3653_s18 + $0xfa0] sm:$0xff]  ;;  %v3298_v13 = vld [vmem:[%s3653_s18 + $0xfa8] sm:$0xff] }
 0x197   : > { %v2273_v42 = vadd.f32 %v3285_v25, %v2272_v28  ;;  %v1520_v25 = vadd.f32 %v2922_v6, %v1519_v7  ;;  %v3292_v28 = vld [vmem:[%s3653_s18 + $0xf78] sm:$0xff]  ;;  %v2032_v33 = vadd.f32 %v3174_v18, %v2031_v15  ;;  %v3295_v56 = vld [vmem:[%s3653_s18 + $0xf90] sm:$0xff]  ;;  %v3177_v6 = vld [vmem:[%s3653_s18 + $0xbe0] sm:$0xff] }
 0x198   : > { %v2156_v47 = vadd.f32 %v3233_v34, %v2155_v41  ;;  %v1392_v41 = vadd.f32 %v1391_v23, %v1329_v22  ;;  %v1905_v50 = vadd.f32 %v3112_v31, %v1904_v32  ;;  %v3240_v7 = vld [vmem:[%s3653_s18 + $0xdd8] sm:$0xff]  ;;  %v3115_v15 = vld [vmem:[%s3653_s18 + $0x9f0] sm:$0xff] }
 0x199   : > { %v2274_v48 = vadd.f32 %v3286_v35, %v2273_v42  ;;  %v2924_v42 = vld [vmem:[%s3653_s18 + $0x3f8] sm:$0xff]  ;;  %v1521_v43 = vadd.f32 %v2923_v24, %v1520_v25  ;;  %v2033_v51 = vadd.f32 %v3175_v36, %v2032_v33  ;;  %v3299_v22 = vld [vmem:[%s3653_s18 + $0xfb0] sm:$0xff]  ;;  %v3242_v33 = vld [vmem:[%s3653_s18 + $0xde8] sm:$0xff] }
 0x19a   : > { %v2157_v61 = vadd.f32 %v3234_v44, %v2156_v47  ;;  %v1649_v44 = vadd.f32 %v2986_v29, %v1648_v26  ;;  %v2987_v47 = vld [vmem:[%s3653_s18 + $0x5f0] sm:$0xff]  ;;  %v1393_v58 = vadd.f32 %v1392_v41, %v1330_v40  ;;  %v3052_v14 = vld [vmem:[%s3653_s18 + $0x7f8] sm:$0xff] }
 0x19b   : > { %v2275_v62 = vadd.f32 %v3287_v45, %v2274_v48  ;;  %v1777_v45 = vadd.f32 %v3049_v30, %v1776_v27  ;;  %v3050_v48 = vld [vmem:[%s3653_s18 + $0x7e8] sm:$0xff]  ;;  %v1522_v59 = vadd.f32 %v2924_v42, %v1521_v43  ;;  %v3300_v26 = vld [vmem:[%s3653_s18 + $0xfb8] sm:$0xff]  ;;  %v3179_v32 = vld [vmem:[%s3653_s18 + $0xbf0] sm:$0xff] }
 0x19c   : > { %v2158_v2 = vadd.f32 %v3235_v54, %v2157_v61  ;;  %v3176_v54 = vld [vmem:[%s3653_s18 + $0xbd8] sm:$0xff]  ;;  %v1650_v60 = vadd.f32 %v2987_v47, %v1649_v44  ;;  %v3243_v43 = vld [vmem:[%s3653_s18 + $0xdf0] sm:$0xff] }
 0x19d   : > { %v2276_v3 = vadd.f32 %v3288_v55, %v2275_v62  ;;  %v3239_v55 = vld [vmem:[%s3653_s18 + $0xdd0] sm:$0xff]  ;;  %v1778_v61 = vadd.f32 %v3050_v48, %v1777_v45  ;;  %v3296_v62 = vld [vmem:[%s3653_s18 + $0xf98] sm:$0xff] }
 0x19e   : > { %v2159_v16 = vadd.f32 %v3236_v0, %v2158_v2  ;;  %v3051_v0 = vld [vmem:[%s3653_s18 + $0x7f0] sm:$0xff]  ;;  %v1906_v2 = vadd.f32 %v3113_v49, %v1905_v50  ;;  %v1651_v11 = vadd.f32 %v2988_v63, %v1650_v60  ;;  %v3116_v27 = vld [vmem:[%s3653_s18 + $0x9f8] sm:$0xff] }
 0x19f   : > { %v2277_v17 = vadd.f32 %v3289_v1, %v2276_v3  ;;  %v3114_v1 = vld [vmem:[%s3653_s18 + $0x9e8] sm:$0xff]  ;;  %v2034_v3 = vadd.f32 %v3176_v54, %v2033_v51  ;;  %v1779_v12 = vadd.f32 %v3051_v0, %v1778_v61  ;;  %v3180_v42 = vld [vmem:[%s3653_s18 + $0xbf8] sm:$0xff]  ;;  %v3303_v44 = vld [vmem:[%s3653_s18 + $0xfd0] sm:$0xff] }
 0x1a0   : > { %v2160_v34 = vadd.f32 %v3237_v19, %v2159_v16  ;;  %v1907_v16 = vadd.f32 %v3114_v1, %v1906_v2  ;;  %v3244_v51 = vld [vmem:[%s3653_s18 + $0xdf8] sm:$0xff]  ;;  %v3306_v54 = vld [vmem:[%s3653_s18 + $0xfe8] sm:$0xff] }
 0x1a1   : > { %v2278_v21 = vadd.f32 %v3290_v10, %v2277_v17  ;;  %v1523_v10 = vadd.f32 %v1522_v59, %v1393_v58  ;;  %v2035_v17 = vadd.f32 %v3177_v6, %v2034_v3  ;;  %v1780_v25 = vadd.f32 %v3052_v14, %v1779_v12  ;;  %v3307_v58 = vld [vmem:[%s3653_s18 + $0xff0] sm:$0xff]  ;;  %v3308_v60 = vld [vmem:[%s3653_s18 + $0xff8] sm:$0xff]  ;;  %v1266_v0 = vld [vmem:[#allocation7 + $0x8] sm:$0xff] }
 0x1a2   : > { %v2161_v52 = vadd.f32 %v3238_v37, %v2160_v34  ;;  %v3301_v34 = vld [vmem:[%s3653_s18 + $0xfc0] sm:$0xff]  ;;  %v3302_v37 = vld [vmem:[%s3653_s18 + $0xfc8] sm:$0xff] }
 0x1a3   : > { %v2279_v35 = vadd.f32 %v3291_v20, %v2278_v21  ;;  %v3178_v20 = vld [vmem:[%s3653_s18 + $0xbe8] sm:$0xff]  ;;  %v3241_v21 = vld [vmem:[%s3653_s18 + $0xde0] sm:$0xff]  ;;  %v1652_v24 = vadd.f32 %v1651_v11, %v1523_v10 }
 0x1a4   : > { %v2162_v4 = vadd.f32 %v3239_v55, %v2161_v52  ;;  %v2036_v29 = vadd.f32 %v3178_v20, %v2035_v17  ;;  %v3305_v52 = vld [vmem:[%s3653_s18 + $0xfe0] sm:$0xff] }
 0x1a5   : > { %v2280_v39 = vadd.f32 %v3292_v28, %v2279_v35  ;;  %v1908_v28 = vadd.f32 %v3115_v15, %v1907_v16  ;;  %v1781_v36 = vadd.f32 %v1780_v25, %v1652_v24 }
 0x1a6   : > { %v2163_v18 = vadd.f32 %v3240_v7, %v2162_v4 }
 0x1a7   : > { %v2281_v53 = vadd.f32 %v3293_v38, %v2280_v39  ;;  %v1909_v38 = vadd.f32 %v3116_v27, %v1908_v28  ;;  %v2037_v39 = vadd.f32 %v3179_v32, %v2036_v29 }
 0x1a8   : > { %v2164_v30 = vadd.f32 %v3241_v21, %v2163_v18 }
 0x1a9   : > { %v2282_v57 = vadd.f32 %v3294_v46, %v2281_v53  ;;  %v3304_v46 = vld [vmem:[%s3653_s18 + $0xfd8] sm:$0xff]  ;;  %v1910_v47 = vadd.f32 %v1909_v38, %v1781_v36  ;;  %v2038_v48 = vadd.f32 %v3180_v42, %v2037_v39 }
 0x1aa   : > { %v2165_v40 = vadd.f32 %v3242_v33, %v2164_v30 }
 0x1ab   : > { %v2283_v5 = vadd.f32 %v3295_v56, %v2282_v57  ;;  %v2039_v55 = vadd.f32 %v2038_v48, %v1910_v47 }
 0x1ac   : > { %v2166_v49 = vadd.f32 %v3243_v43, %v2165_v40 }
 0x1ad   : > { %v2284_v9 = vadd.f32 %v3296_v62, %v2283_v5 }
 0x1ae   : > { %v2167_v56 = vadd.f32 %v3244_v51, %v2166_v49 }
 0x1af   : > { %v2285_v19 = vadd.f32 %v3297_v8, %v2284_v9 }
 0x1b0   : > { %v2168_v61 = vadd.f32 %v2167_v56, %v2039_v55 }
 0x1b1   : > { %v2286_v23 = vadd.f32 %v3298_v13, %v2285_v19 }
 0x1b3   : > { %v2287_v31 = vadd.f32 %v3299_v22, %v2286_v23 }
 0x1b5   : > { %v2288_v35 = vadd.f32 %v3300_v26, %v2287_v31 }
 0x1b7   : > { %v2289_v41 = vadd.f32 %v3301_v34, %v2288_v35 }
 0x1b9   : > { %v2290_v45 = vadd.f32 %v3302_v37, %v2289_v41 }
 0x1bb   : > { %v2291_v50 = vadd.f32 %v3303_v44, %v2290_v45 }
 0x1bd   : > { %v2292_v53 = vadd.f32 %v3304_v46, %v2291_v50 }
 0x1bf   : > { %v2293_v57 = vadd.f32 %v3305_v52, %v2292_v53 }
 0x1c1   : > { %v2294_v59 = vadd.f32 %v3306_v54, %v2293_v57 }
 0x1c3   : > { %v2295_v62 = vadd.f32 %v3307_v58, %v2294_v59 }
 0x1c5   : > { %v2296_v63 = vadd.f32 %v3308_v60, %v2295_v62 }
 0x1c7   : > { %v2297_v1 = vadd.f32 %v2296_v63, %v2168_v61 }
 0x1c9   : > { %v2298_v2 = vadd.f32 %v2297_v1, %v1266_v0 }
 0x1cb   : > { %2299 = vst [vmem:[#allocation7 + $0x8] sm:$0xff] %v2298_v2 }
 0x1cc   : > { %3456 = shalt.err (!%p3453_p11)
}
 0x1cd   : > { %s3533_s9 = smov 128   ;;  %s3534_s15 = smov 8  }
 0x1ce   : > { %3320 = dma.vmem_to_hbm [thread:$0]  (%p4686_p7), %s2310_s20, 256, %s4721_s2, [#allocation4], %s3533_s9, %s3533_s9, %s3534_s15  }
 0x1cf   : > { %3500 = dma.done.wait (%p4686_p7), [#allocation4], 256  }
 0x1d0   : > { %3502 = vsyncadd (%p4686_p7), [#allocation4], 4294967040 }
 0x1d1 PF: > { %s19_s14 = sadd.s32 1, %s3525_s14   ;;  %s4727_s9 = smov %s3509_s10 }
 0x1d2   : > { %p16_p12 = scmp.ge.s32.totalorder %s19_s14, 5   ;;  %s4728_s10 = smov %s3513_s11 }
 0x1d3   : > { %s4729_s11 = smov %s3601_s21  ;;  %s4730_s12 = smov %s3521_s13 }
 0x1d4   : > { %s4731_s13 = smov %s4733_s16  ;;  %18 = sbr.rel (!%p16_p12) target bundleno = 7 (0x7), region = 98 }
 0x1d9   :  { %2325 = vsyncpa [#allocation3], 1 }
 0x1da   :  { %2327 = vsyncpa [#allocation3 + $0x1], 1 }
 0x1db   :  { %2328 = vsyncpa [#allocation6], 1 }
 0x1dc   :  { %2330 = vsyncpa [#allocation6 + $0x1], 1 }
 0x1dd   :  { %2331 = vsyncpa [#allocation4], 1 }
 0x1de   :  { %2333 = vsyncpa [#allocation4 + $0x1], 1 }

</bundles_post_ra>
